<compile_context>
chip_gen: v7x
topology: tpu7x:2x2x1
jax: 0.10.0
libtpu: 0.0.40
codegen_flags: <defaults>
</compile_context>

<pallas_src>
import math
from functools import partial

import jax
import jax.numpy as jnp
from jax import lax
from jax.experimental import pallas as pl
from jax.experimental.pallas import tpu as pltpu

LOGTWOPI = math.log(2.0 * math.pi)


def _gelu_exact(x):
    # matches torch.nn.GELU() (erf-based, not tanh approx)
    return 0.5 * x * (1.0 + lax.erf(x * (1.0 / math.sqrt(2.0))))


def _round_up(x, m):
    return ((x + m - 1) // m) * m


def make_gfn_kernel(TB, D, H, E, T, DP, TP, dt, pf_std, log_var_range):
    sqrt_dt = math.sqrt(dt)
    c_pf = LOGTWOPI + math.log(dt)            # per-element constant of the logpf sum
    two_log_pf_std = 2.0 * math.log(pf_std)
    pf_var_dt = pf_std * pf_std * dt
    f32 = jnp.float32
    bf16 = jnp.bfloat16

    def kernel(s0_ref, noise_ref, tbias_ref,
               sW1_ref, sb1_ref, sW2_ref, sb2_ref,
               jW1s_ref, jW2_ref, jb2_ref,
               jW3f_ref, jb3m_ref, jb3v_ref,
               states_ref, logpf_ref, logpb_ref):
        # ---- hoist weight / table loads out of the unrolled trajectory loop
        sW1 = sW1_ref[...]                    # (D, H)  f32 (VPU path)
        sW2 = sW2_ref[...]                    # (H, E)  bf16
        jW1s = jW1s_ref[...]                  # (E, H)  bf16
        jW2 = jW2_ref[...]                    # (H, H)  bf16
        jW3f = jW3f_ref[...]                  # (H, 2*DP) bf16, fused [mean|pad|logvar|pad]
        tbias = tbias_ref[...]                # (T, H)  f32 (time contribution + jb1)

        # ---- hoist bias broadcasts (not CSE'd across the unroll otherwise)
        sb1 = jnp.broadcast_to(sb1_ref[...], (TB, H))
        sb2 = jnp.broadcast_to(sb2_ref[...], (TB, E))
        jb2 = jnp.broadcast_to(jb2_ref[...], (TB, H))
        jb3m = jnp.broadcast_to(jb3m_ref[...], (TB, D))
        jb3v = jnp.broadcast_to(jb3v_ref[...], (TB, D))

        noise = noise_ref[...]                # (T, TB, D)
        s = s0_ref[...]                       # (TB, D)  current state

        # PyTorch leaves states[:, 0] and logpb[:, 0] at their zero initialization.
        state_rows = [jnp.zeros((TB, D), f32)]
        logpf_cols = []
        logpb_cols = [jnp.zeros((TB, 1), f32)]

        for i in range(T):                    # fully unrolled (T is small)
            # ---- StateEncoding layer 1: K = D contraction done as VPU FMAs
            if D <= 16:
                pre1 = sb1
                for k in range(D):
                    pre1 = pre1 + s[:, k:k + 1] * sW1[k:k + 1, :]
            else:
                pre1 = jnp.dot(s.astype(bf16), sW1.astype(bf16),
                               preferred_element_type=f32) + sb1
            s_h = _gelu_exact(pre1)

            # ---- StateEncoding layer 2
            s_emb = _gelu_exact(
                jnp.dot(s_h.astype(bf16), sW2, preferred_element_type=f32) + sb2)

            # ---- JointPolicy on cat([s_emb, t_emb], -1): time contribution of layer 1
            #      is identical for every row; its value + jb1 is precomputed row i.
            h1 = _gelu_exact(
                jnp.dot(s_emb.astype(bf16), jW1s, preferred_element_type=f32)
                + tbias[i:i + 1, :])
            h2 = _gelu_exact(
                jnp.dot(h1.astype(bf16), jW2, preferred_element_type=f32) + jb2)

            # fused mean/logvar head, sliced at lane-aligned 0 / DP offsets
            heads = jnp.dot(h2.astype(bf16), jW3f, preferred_element_type=f32)
            pf_mean = heads[:, :D] + jb3m
            pflogvars = (jnp.tanh(heads[:, DP:DP + D] + jb3v)
                         * log_var_range + two_log_pf_std)

            # ---- Euler-Maruyama forward step (exploration_std=None, pis=False)
            eps = noise[i]                    # (TB, D)
            std = sqrt_dt * jnp.exp(0.5 * pflogvars)
            s_new = s + dt * pf_mean + std * eps

            # reconstructed noise == eps (sampling std == likelihood std in this config);
            # scalar constants folded outside the reduction.
            logpf_cols.append(
                -0.5 * (jnp.sum(eps * eps + pflogvars, axis=1, keepdims=True)
                        + D * c_pf))

            # ---- backward log-prob (learn_pb=False -> corrections are ones), i > 0 only
            if i > 0:
                mean_coef = i / (i + 1.0)                 # compile-time constants
                back_var = pf_var_dt * i / (i + 1.0)
                inv_back_std = 1.0 / math.sqrt(back_var)
                c_pb = LOGTWOPI + math.log(back_var)
                nb = (s - s_new * mean_coef) * inv_back_std
                logpb_cols.append(
                    -0.5 * (jnp.sum(nb * nb, axis=1, keepdims=True) + D * c_pb))

            state_rows.append(s_new)
            s = s_new

        # ---- single lane-dense stores (outputs padded to 128 lanes in the wrapper)
        states = jnp.stack(state_rows, axis=0)            # (T+1, TB, D)
        if DP > D:
            states = jnp.concatenate(
                [states, jnp.zeros((T + 1, TB, DP - D), f32)], axis=-1)
        states_ref[...] = states

        logpf = jnp.concatenate(logpf_cols, axis=1)       # (TB, T)
        logpb = jnp.concatenate(logpb_cols, axis=1)       # (TB, T)
        if TP > T:
            pad = jnp.zeros((TB, TP - T), f32)
            logpf = jnp.concatenate([logpf, pad], axis=1)
            logpb = jnp.concatenate([logpb, pad], axis=1)
        logpf_ref[...] = logpf
        logpb_ref[...] = logpb

    return kernel


@partial(jax.jit, static_argnames=("dt", "pf_std", "log_var_range"))
def gfn_forward(s0, noise, params, *, dt, pf_std, log_var_range):
    B, D = s0.shape
    T = noise.shape[0]
    H = params["sW1"].shape[1]
    E = params["sW2"].shape[1]

    DP = _round_up(D, 128)       # lane-padded state width
    TP = _round_up(T, 128)       # lane-padded trajectory width (logpf/logpb)

    # ---- TimeEncoding MLP for all T steps + the (rank-1 over batch) time block of the
    #      JointPolicy first layer: data-independent, hoisted out of the sequential kernel.
    t_vals = (jnp.arange(T, dtype=jnp.float32) * dt)[:, None]               # (T, 1)
    arg = t_vals * params["pe"]                                             # (T, HD)
    t_in = jnp.concatenate([jnp.sin(arg), jnp.cos(arg)], axis=-1)           # (T, 2HD)
    t_h = jax.nn.gelu(t_in @ params["tW1"] + params["tb1"], approximate=False)
    t_emb = jax.nn.gelu(t_h @ params["tW2"] + params["tb2"], approximate=False)  # (T, TD)
    jW1s = params["jW1"][:E, :]
    t_bias1 = t_emb @ params["jW1"][E:, :] + params["jb1"]                  # (T, H)

    # ---- fused, lane-padded output head: [mean | 0pad | logvar | 0pad] -> (H, 2*DP)
    jW3m, jW3v = params["jW3"][:, :D], params["jW3"][:, D:]
    jb3m, jb3v = params["jb3"][:, :D], params["jb3"][:, D:]
    zpad = jnp.zeros((H, DP - D), jnp.float32)
    jW3f = jnp.concatenate([jW3m, zpad, jW3v, zpad], axis=1)                # (H, 2*DP)

    bf16 = jnp.bfloat16
    inputs = (s0, noise, t_bias1,
              params["sW1"], params["sb1"],
              params["sW2"].astype(bf16), params["sb2"],
              jW1s.astype(bf16), params["jW2"].astype(bf16), params["jb2"],
              jW3f.astype(bf16), jb3m, jb3v)

    # ---- batch-tiling grid (parallel axis -> shards across TensorCores at scale)
    TB = B if B <= 128 else 128
    assert B % TB == 0, "batch must be a multiple of the batch tile"
    NB = B // TB

    vmem = pltpu.MemorySpace.VMEM

    def full_spec(arr):
        nd = arr.ndim
        return pl.BlockSpec(arr.shape, lambda b, _nd=nd: (0,) * _nd, memory_space=vmem)

    in_specs = [
        pl.BlockSpec((TB, D), lambda b: (b, 0), memory_space=vmem),          # s0
        pl.BlockSpec((T, TB, D), lambda b: (0, b, 0), memory_space=vmem),    # noise
        full_spec(t_bias1),
        full_spec(inputs[3]), full_spec(inputs[4]),
        full_spec(inputs[5]), full_spec(inputs[6]),
        full_spec(inputs[7]), full_spec(inputs[8]), full_spec(inputs[9]),
        full_spec(inputs[10]), full_spec(inputs[11]), full_spec(inputs[12]),
    ]

    out_shapes = (
        jax.ShapeDtypeStruct((T + 1, B, DP), jnp.float32),   # states (time-major, padded)
        jax.ShapeDtypeStruct((B, TP), jnp.float32),          # logpf  (batch-major, padded)
        jax.ShapeDtypeStruct((B, TP), jnp.float32),          # logpb  (batch-major, padded)
    )
    out_specs = (
        pl.BlockSpec((T + 1, TB, DP), lambda b: (0, b, 0), memory_space=vmem),
        pl.BlockSpec((TB, TP), lambda b: (b, 0), memory_space=vmem),
        pl.BlockSpec((TB, TP), lambda b: (b, 0), memory_space=vmem),
    )

    kernel = make_gfn_kernel(TB, D, H, E, T, DP, TP, dt, pf_std, log_var_range)
    states_pad, logpf_pad, logpb_pad = pl.pallas_call(
        kernel,
        grid=(NB,),
        out_shape=out_shapes,
        in_specs=in_specs,
        out_specs=out_specs,
        compiler_params=pltpu.CompilerParams(
            dimension_semantics=("parallel",),
            vmem_limit_bytes=32 * 1024 * 1024),
    )(*inputs)

    # back to PyTorch conventions: (B, T+1, D), (B, T), (B, T), (B, T+1)
    states = jnp.transpose(states_pad[:, :, :D], (1, 0, 2))
    logpf = logpf_pad[:, :T]
    logpb = logpb_pad[:, :T]

    # logf is flow (scalar parameter) for steps 0..T-1 and the untouched zero at step T.
    flow = params["flow"][0, 0]
    logf = jnp.concatenate(
        [jnp.full((B, T), flow, dtype=jnp.float32),
         jnp.zeros((B, 1), jnp.float32)], axis=1)

    return states, logpf, logpb, logf


def init_params(key, *, dim, harmonics_dim, t_dim, s_emb_dim, hidden_dim):
    """Deterministic init mimicking nn.Linear default U(-1/sqrt(fan_in), +1/sqrt(fan_in)).
    Weights stored in (in, out) layout for x @ W."""
    HD, TD, D, E, H = harmonics_dim, t_dim, dim, s_emb_dim, hidden_dim

    def lin(key, fan_in, fan_out):
        kw, kb = jax.random.split(key)
        bound = 1.0 / math.sqrt(fan_in)
        w = jax.random.uniform(kw, (fan_in, fan_out), jnp.float32, -bound, bound)
        b = jax.random.uniform(kb, (1, fan_out), jnp.float32, -bound, bound)
        return w, b

    keys = jax.random.split(key, 8)
    tW1, tb1 = lin(keys[0], 2 * HD, H)     # TimeEncoding Linear(2*HD, H)
    tW2, tb2 = lin(keys[1], H, TD)         # TimeEncoding Linear(H, TD)
    sW1, sb1 = lin(keys[2], D, H)          # StateEncoding Linear(D, H)
    sW2, sb2 = lin(keys[3], H, E)          # StateEncoding Linear(H, E)
    jW1, jb1 = lin(keys[4], E + TD, H)     # JointPolicy  Linear(E+TD, H)
    jW2, jb2 = lin(keys[5], H, H)          # JointPolicy  Linear(H, H)
    jW3, jb3 = lin(keys[6], H, 2 * D)      # JointPolicy  Linear(H, 2*D)

    pe = (jnp.arange(1, HD + 1, dtype=jnp.float32)[None, :]) * (2.0 * math.pi)

    return {
        "pe": pe,
        "tW1": tW1, "tb1": tb1, "tW2": tW2, "tb2": tb2,
        "sW1": sW1, "sb1": sb1, "sW2": sW2, "sb2": sb2,
        "jW1": jW1, "jb1": jb1, "jW2": jW2, "jb2": jb2, "jW3": jW3, "jb3": jb3,
        "flow": jnp.zeros((1, 1), jnp.float32),   # nn.Parameter(torch.tensor(0.0))
    }


if __name__ == "__main__":
    # small, forward-consistent shapes
    dim = 4
    s_emb_dim = 16
    hidden_dim = 32
    harmonics_dim = 8
    t_dim = 16
    trajectory_length = 8
    batch = 8
    t_scale = 1.0
    log_var_range = 4.0
    dt = 1.0 / trajectory_length
    pf_std = math.sqrt(t_scale)

    key = jax.random.PRNGKey(0)
    k_p, k_s, k_n = jax.random.split(key, 3)

    params = init_params(k_p, dim=dim, harmonics_dim=harmonics_dim, t_dim=t_dim,
                         s_emb_dim=s_emb_dim, hidden_dim=hidden_dim)
    s0 = jax.random.normal(k_s, (batch, dim), jnp.float32)
    # replaces torch.randn_like inside the trajectory loop (deterministic, precomputed)
    noise = jax.random.normal(k_n, (trajectory_length, batch, dim), jnp.float32)

    states, logpf, logpb, logf = gfn_forward(
        s0, noise, params, dt=dt, pf_std=pf_std, log_var_range=log_var_range)

    jax.block_until_ready((states, logpf, logpb, logf))

    assert states.shape == (batch, trajectory_length + 1, dim)
    assert logpf.shape == (batch, trajectory_length)
    assert logpb.shape == (batch, trajectory_length)
    assert logf.shape == (batch, trajectory_length + 1)

    print("KERNEL_OK")
</pallas_src>

<mosaic_0001>
module attributes {stable_mosaic.version = 11 : i64} {
  func.func @kernel(%arg0: i32, %arg1: memref<8x4xf32, #tpu.memory_space<vmem>>, %arg2: memref<8x8x4xf32, #tpu.memory_space<vmem>>, %arg3: memref<8x32xf32, #tpu.memory_space<vmem>>, %arg4: memref<4x32xf32, #tpu.memory_space<vmem>>, %arg5: memref<1x32xf32, #tpu.memory_space<vmem>>, %arg6: memref<32x16xbf16, #tpu.memory_space<vmem>>, %arg7: memref<1x16xf32, #tpu.memory_space<vmem>>, %arg8: memref<16x32xbf16, #tpu.memory_space<vmem>>, %arg9: memref<32x32xbf16, #tpu.memory_space<vmem>>, %arg10: memref<1x32xf32, #tpu.memory_space<vmem>>, %arg11: memref<32x256xbf16, #tpu.memory_space<vmem>>, %arg12: memref<1x4xf32, #tpu.memory_space<vmem>>, %arg13: memref<1x4xf32, #tpu.memory_space<vmem>>, %arg14: memref<9x8x128xf32, #tpu.memory_space<vmem>>, %arg15: memref<8x128xf32, #tpu.memory_space<vmem>>, %arg16: memref<8x128xf32, #tpu.memory_space<vmem>>) attributes {dimension_semantics = [#tpu.dimension_semantics<parallel>], iteration_bounds = array<i64: 1>, scalar_prefetch = 0 : i64, scratch_operands = 0 : i64, tpu.core_type = #tpu.core_type<tc>, window_params = [{transform_indices = @transform_0, window_bounds = array<i64: 8, 4>}, {transform_indices = @transform_1, window_bounds = array<i64: 8, 8, 4>}, {pipeline_mode = #tpu.pipeline_mode<synchronous>, transform_indices = @transform_2, window_bounds = array<i64: 8, 32>}, {pipeline_mode = #tpu.pipeline_mode<synchronous>, transform_indices = @transform_3, window_bounds = array<i64: 4, 32>}, {pipeline_mode = #tpu.pipeline_mode<synchronous>, transform_indices = @transform_4, window_bounds = array<i64: 1, 32>}, {pipeline_mode = #tpu.pipeline_mode<synchronous>, transform_indices = @transform_5, window_bounds = array<i64: 32, 16>}, {pipeline_mode = #tpu.pipeline_mode<synchronous>, transform_indices = @transform_6, window_bounds = array<i64: 1, 16>}, {pipeline_mode = #tpu.pipeline_mode<synchronous>, transform_indices = @transform_7, window_bounds = array<i64: 16, 32>}, {pipeline_mode = #tpu.pipeline_mode<synchronous>, transform_indices = @transform_8, window_bounds = array<i64: 32, 32>}, {pipeline_mode = #tpu.pipeline_mode<synchronous>, transform_indices = @transform_9, window_bounds = array<i64: 1, 32>}, {pipeline_mode = #tpu.pipeline_mode<synchronous>, transform_indices = @transform_10, window_bounds = array<i64: 32, 256>}, {pipeline_mode = #tpu.pipeline_mode<synchronous>, transform_indices = @transform_11, window_bounds = array<i64: 1, 4>}, {pipeline_mode = #tpu.pipeline_mode<synchronous>, transform_indices = @transform_12, window_bounds = array<i64: 1, 4>}, {transform_indices = @transform_13, window_bounds = array<i64: 9, 8, 128>}, {transform_indices = @transform_14, window_bounds = array<i64: 8, 128>}, {transform_indices = @transform_15, window_bounds = array<i64: 8, 128>}]} {
    %c0 = arith.constant 0 : index
    %c0_0 = arith.constant 0 : index
    %0 = vector.load %arg4[%c0, %c0_0] : memref<4x32xf32, #tpu.memory_space<vmem>>, vector<4x32xf32>
    %c0_1 = arith.constant 0 : index
    %c0_2 = arith.constant 0 : index
    %1 = vector.load %arg6[%c0_1, %c0_2] : memref<32x16xbf16, #tpu.memory_space<vmem>>, vector<32x16xbf16>
    %c0_3 = arith.constant 0 : index
    %c0_4 = arith.constant 0 : index
    %2 = vector.load %arg8[%c0_3, %c0_4] : memref<16x32xbf16, #tpu.memory_space<vmem>>, vector<16x32xbf16>
    %c0_5 = arith.constant 0 : index
    %c0_6 = arith.constant 0 : index
    %3 = vector.load %arg9[%c0_5, %c0_6] : memref<32x32xbf16, #tpu.memory_space<vmem>>, vector<32x32xbf16>
    %c0_7 = arith.constant 0 : index
    %c0_8 = arith.constant 0 : index
    %4 = vector.load %arg11[%c0_7, %c0_8] : memref<32x256xbf16, #tpu.memory_space<vmem>>, vector<32x256xbf16>
    %c0_9 = arith.constant 0 : index
    %c0_10 = arith.constant 0 : index
    %5 = vector.load %arg3[%c0_9, %c0_10] : memref<8x32xf32, #tpu.memory_space<vmem>>, vector<8x32xf32>
    %c0_11 = arith.constant 0 : index
    %c0_12 = arith.constant 0 : index
    %6 = vector.load %arg5[%c0_11, %c0_12] : memref<1x32xf32, #tpu.memory_space<vmem>>, vector<1x32xf32>
    %7 = vector.shape_cast %6 : vector<1x32xf32> to vector<1x32xf32>
    %8 = vector.broadcast %7 : vector<1x32xf32> to vector<8x32xf32>
    %c0_13 = arith.constant 0 : index
    %c0_14 = arith.constant 0 : index
    %9 = vector.load %arg7[%c0_13, %c0_14] : memref<1x16xf32, #tpu.memory_space<vmem>>, vector<1x16xf32>
    %10 = vector.shape_cast %9 : vector<1x16xf32> to vector<1x16xf32>
    %11 = vector.broadcast %10 : vector<1x16xf32> to vector<8x16xf32>
    %c0_15 = arith.constant 0 : index
    %c0_16 = arith.constant 0 : index
    %12 = vector.load %arg10[%c0_15, %c0_16] : memref<1x32xf32, #tpu.memory_space<vmem>>, vector<1x32xf32>
    %13 = vector.shape_cast %12 : vector<1x32xf32> to vector<1x32xf32>
    %14 = vector.broadcast %13 : vector<1x32xf32> to vector<8x32xf32>
    %c0_17 = arith.constant 0 : index
    %c0_18 = arith.constant 0 : index
    %15 = vector.load %arg12[%c0_17, %c0_18] : memref<1x4xf32, #tpu.memory_space<vmem>>, vector<1x4xf32>
    %16 = vector.shape_cast %15 : vector<1x4xf32> to vector<1x4xf32>
    %17 = vector.broadcast %16 : vector<1x4xf32> to vector<8x4xf32>
    %c0_19 = arith.constant 0 : index
    %c0_20 = arith.constant 0 : index
    %18 = vector.load %arg13[%c0_19, %c0_20] : memref<1x4xf32, #tpu.memory_space<vmem>>, vector<1x4xf32>
    %19 = vector.shape_cast %18 : vector<1x4xf32> to vector<1x4xf32>
    %20 = vector.broadcast %19 : vector<1x4xf32> to vector<8x4xf32>
    %c0_21 = arith.constant 0 : index
    %c0_22 = arith.constant 0 : index
    %c0_23 = arith.constant 0 : index
    %21 = vector.load %arg2[%c0_21, %c0_22, %c0_23] : memref<8x8x4xf32, #tpu.memory_space<vmem>>, vector<8x8x4xf32>
    %c0_24 = arith.constant 0 : index
    %c0_25 = arith.constant 0 : index
    %22 = vector.load %arg1[%c0_24, %c0_25] : memref<8x4xf32, #tpu.memory_space<vmem>>, vector<8x4xf32>
    %cst = arith.constant 0.000000e+00 : f32
    %23 = vector.broadcast %cst : f32 to vector<8x4xf32>
    %cst_26 = arith.constant 0.000000e+00 : f32
    %24 = vector.broadcast %cst_26 : f32 to vector<8x1xf32>
    %25 = vector.extract_strided_slice %22 {offsets = [0, 0], sizes = [8, 1], strides = [1, 1]} : vector<8x4xf32> to vector<8x1xf32>
    %26 = vector.extract_strided_slice %0 {offsets = [0, 0], sizes = [1, 32], strides = [1, 1]} : vector<4x32xf32> to vector<1x32xf32>
    %27 = vector.broadcast %25 : vector<8x1xf32> to vector<8x32xf32>
    %28 = vector.broadcast %26 : vector<1x32xf32> to vector<8x32xf32>
    %29 = arith.mulf %27, %28 : vector<8x32xf32>
    %30 = arith.addf %8, %29 : vector<8x32xf32>
    %31 = vector.extract_strided_slice %22 {offsets = [0, 1], sizes = [8, 1], strides = [1, 1]} : vector<8x4xf32> to vector<8x1xf32>
    %32 = vector.extract_strided_slice %0 {offsets = [1, 0], sizes = [1, 32], strides = [1, 1]} : vector<4x32xf32> to vector<1x32xf32>
    %33 = vector.broadcast %31 : vector<8x1xf32> to vector<8x32xf32>
    %34 = vector.broadcast %32 : vector<1x32xf32> to vector<8x32xf32>
    %35 = arith.mulf %33, %34 : vector<8x32xf32>
    %36 = arith.addf %30, %35 : vector<8x32xf32>
    %37 = vector.extract_strided_slice %22 {offsets = [0, 2], sizes = [8, 1], strides = [1, 1]} : vector<8x4xf32> to vector<8x1xf32>
    %38 = vector.extract_strided_slice %0 {offsets = [2, 0], sizes = [1, 32], strides = [1, 1]} : vector<4x32xf32> to vector<1x32xf32>
    %39 = vector.broadcast %37 : vector<8x1xf32> to vector<8x32xf32>
    %40 = vector.broadcast %38 : vector<1x32xf32> to vector<8x32xf32>
    %41 = arith.mulf %39, %40 : vector<8x32xf32>
    %42 = arith.addf %36, %41 : vector<8x32xf32>
    %43 = vector.extract_strided_slice %22 {offsets = [0, 3], sizes = [8, 1], strides = [1, 1]} : vector<8x4xf32> to vector<8x1xf32>
    %44 = vector.extract_strided_slice %0 {offsets = [3, 0], sizes = [1, 32], strides = [1, 1]} : vector<4x32xf32> to vector<1x32xf32>
    %45 = vector.broadcast %43 : vector<8x1xf32> to vector<8x32xf32>
    %46 = vector.broadcast %44 : vector<1x32xf32> to vector<8x32xf32>
    %47 = arith.mulf %45, %46 : vector<8x32xf32>
    %48 = arith.addf %42, %47 : vector<8x32xf32>
    %cst_27 = arith.constant 5.000000e-01 : f32
    %49 = vector.broadcast %cst_27 : f32 to vector<8x32xf32>
    %50 = arith.mulf %49, %48 : vector<8x32xf32>
    %cst_28 = arith.constant 0.707106769 : f32
    %51 = vector.broadcast %cst_28 : f32 to vector<8x32xf32>
    %52 = arith.mulf %48, %51 : vector<8x32xf32>
    %53 = math.erf %52 : vector<8x32xf32>
    %cst_29 = arith.constant 1.000000e+00 : f32
    %54 = vector.broadcast %cst_29 : f32 to vector<8x32xf32>
    %55 = arith.addf %54, %53 : vector<8x32xf32>
    %56 = arith.mulf %50, %55 : vector<8x32xf32>
    %57 = arith.truncf %56 : vector<8x32xf32> to vector<8x32xbf16>
    %cst_30 = arith.constant dense<0.000000e+00> : vector<8x16xf32>
    %58 = tpu.matmul %57, %1, %cst_30 {dimension_numbers = #tpu.dot_dimension_numbers<[1], [0], [0], [1], [0, 0, 1, 1], [], []>} : vector<8x32xbf16>, vector<32x16xbf16>, vector<8x16xf32> -> vector<8x16xf32>
    %59 = arith.addf %58, %11 : vector<8x16xf32>
    %cst_31 = arith.constant 5.000000e-01 : f32
    %60 = vector.broadcast %cst_31 : f32 to vector<8x16xf32>
    %61 = arith.mulf %60, %59 : vector<8x16xf32>
    %cst_32 = arith.constant 0.707106769 : f32
    %62 = vector.broadcast %cst_32 : f32 to vector<8x16xf32>
    %63 = arith.mulf %59, %62 : vector<8x16xf32>
    %64 = math.erf %63 : vector<8x16xf32>
    %cst_33 = arith.constant 1.000000e+00 : f32
    %65 = vector.broadcast %cst_33 : f32 to vector<8x16xf32>
    %66 = arith.addf %65, %64 : vector<8x16xf32>
    %67 = arith.mulf %61, %66 : vector<8x16xf32>
    %68 = arith.truncf %67 : vector<8x16xf32> to vector<8x16xbf16>
    %cst_34 = arith.constant dense<0.000000e+00> : vector<8x32xf32>
    %69 = tpu.matmul %68, %2, %cst_34 {dimension_numbers = #tpu.dot_dimension_numbers<[1], [0], [0], [1], [0, 0, 1, 1], [], []>} : vector<8x16xbf16>, vector<16x32xbf16>, vector<8x32xf32> -> vector<8x32xf32>
    %70 = vector.extract_strided_slice %5 {offsets = [0, 0], sizes = [1, 32], strides = [1, 1]} : vector<8x32xf32> to vector<1x32xf32>
    %71 = vector.broadcast %70 : vector<1x32xf32> to vector<8x32xf32>
    %72 = arith.addf %69, %71 : vector<8x32xf32>
    %cst_35 = arith.constant 5.000000e-01 : f32
    %73 = vector.broadcast %cst_35 : f32 to vector<8x32xf32>
    %74 = arith.mulf %73, %72 : vector<8x32xf32>
    %cst_36 = arith.constant 0.707106769 : f32
    %75 = vector.broadcast %cst_36 : f32 to vector<8x32xf32>
    %76 = arith.mulf %72, %75 : vector<8x32xf32>
    %77 = math.erf %76 : vector<8x32xf32>
    %cst_37 = arith.constant 1.000000e+00 : f32
    %78 = vector.broadcast %cst_37 : f32 to vector<8x32xf32>
    %79 = arith.addf %78, %77 : vector<8x32xf32>
    %80 = arith.mulf %74, %79 : vector<8x32xf32>
    %81 = arith.truncf %80 : vector<8x32xf32> to vector<8x32xbf16>
    %cst_38 = arith.constant dense<0.000000e+00> : vector<8x32xf32>
    %82 = tpu.matmul %81, %3, %cst_38 {dimension_numbers = #tpu.dot_dimension_numbers<[1], [0], [0], [1], [0, 0, 1, 1], [], []>} : vector<8x32xbf16>, vector<32x32xbf16>, vector<8x32xf32> -> vector<8x32xf32>
    %83 = arith.addf %82, %14 : vector<8x32xf32>
    %cst_39 = arith.constant 5.000000e-01 : f32
    %84 = vector.broadcast %cst_39 : f32 to vector<8x32xf32>
    %85 = arith.mulf %84, %83 : vector<8x32xf32>
    %cst_40 = arith.constant 0.707106769 : f32
    %86 = vector.broadcast %cst_40 : f32 to vector<8x32xf32>
    %87 = arith.mulf %83, %86 : vector<8x32xf32>
    %88 = math.erf %87 : vector<8x32xf32>
    %cst_41 = arith.constant 1.000000e+00 : f32
    %89 = vector.broadcast %cst_41 : f32 to vector<8x32xf32>
    %90 = arith.addf %89, %88 : vector<8x32xf32>
    %91 = arith.mulf %85, %90 : vector<8x32xf32>
    %92 = arith.truncf %91 : vector<8x32xf32> to vector<8x32xbf16>
    %cst_42 = arith.constant dense<0.000000e+00> : vector<8x256xf32>
    %93 = tpu.matmul %92, %4, %cst_42 {dimension_numbers = #tpu.dot_dimension_numbers<[1], [0], [0], [1], [0, 0, 1, 1], [], []>} : vector<8x32xbf16>, vector<32x256xbf16>, vector<8x256xf32> -> vector<8x256xf32>
    %94 = vector.extract_strided_slice %93 {offsets = [0, 0], sizes = [8, 4], strides = [1, 1]} : vector<8x256xf32> to vector<8x4xf32>
    %95 = arith.addf %94, %17 : vector<8x4xf32>
    %96 = vector.extract_strided_slice %93 {offsets = [0, 128], sizes = [8, 4], strides = [1, 1]} : vector<8x256xf32> to vector<8x4xf32>
    %97 = arith.addf %96, %20 : vector<8x4xf32>
    %98 = math.tanh %97 : vector<8x4xf32>
    %cst_43 = arith.constant 4.000000e+00 : f32
    %99 = vector.broadcast %cst_43 : f32 to vector<8x4xf32>
    %100 = arith.mulf %98, %99 : vector<8x4xf32>
    %cst_44 = arith.constant 0.000000e+00 : f32
    %101 = vector.broadcast %cst_44 : f32 to vector<8x4xf32>
    %102 = arith.addf %100, %101 : vector<8x4xf32>
    %103 = vector.extract_strided_slice %21 {offsets = [0, 0, 0], sizes = [1, 8, 4], strides = [1, 1, 1]} : vector<8x8x4xf32> to vector<1x8x4xf32>
    %104 = vector.shape_cast %103 : vector<1x8x4xf32> to vector<8x4xf32>
    %cst_45 = arith.constant 5.000000e-01 : f32
    %105 = vector.broadcast %cst_45 : f32 to vector<8x4xf32>
    %106 = arith.mulf %105, %102 : vector<8x4xf32>
    %107 = math.exp %106 : vector<8x4xf32>
    %cst_46 = arith.constant 0.353553385 : f32
    %108 = vector.broadcast %cst_46 : f32 to vector<8x4xf32>
    %109 = arith.mulf %108, %107 : vector<8x4xf32>
    %cst_47 = arith.constant 1.250000e-01 : f32
    %110 = vector.broadcast %cst_47 : f32 to vector<8x4xf32>
    %111 = arith.mulf %110, %95 : vector<8x4xf32>
    %112 = arith.addf %22, %111 : vector<8x4xf32>
    %113 = arith.mulf %109, %104 : vector<8x4xf32>
    %114 = arith.addf %112, %113 : vector<8x4xf32>
    %115 = arith.mulf %104, %104 : vector<8x4xf32>
    %116 = arith.addf %115, %102 : vector<8x4xf32>
    %cst_48 = arith.constant dense<0.000000e+00> : vector<8xf32>
    %117 = vector.multi_reduction <add>, %116, %cst_48 [1] : vector<8x4xf32> to vector<8xf32>
    %118 = vector.shape_cast %117 : vector<8xf32> to vector<8x1xf32>
    %cst_49 = arith.constant -0.966257929 : f32
    %119 = vector.broadcast %cst_49 : f32 to vector<8x1xf32>
    %120 = arith.addf %118, %119 : vector<8x1xf32>
    %cst_50 = arith.constant -5.000000e-01 : f32
    %121 = vector.broadcast %cst_50 : f32 to vector<8x1xf32>
    %122 = arith.mulf %121, %120 : vector<8x1xf32>
    %123 = vector.extract_strided_slice %114 {offsets = [0, 0], sizes = [8, 1], strides = [1, 1]} : vector<8x4xf32> to vector<8x1xf32>
    %124 = vector.extract_strided_slice %0 {offsets = [0, 0], sizes = [1, 32], strides = [1, 1]} : vector<4x32xf32> to vector<1x32xf32>
    %125 = vector.broadcast %123 : vector<8x1xf32> to vector<8x32xf32>
    %126 = vector.broadcast %124 : vector<1x32xf32> to vector<8x32xf32>
    %127 = arith.mulf %125, %126 : vector<8x32xf32>
    %128 = arith.addf %8, %127 : vector<8x32xf32>
    %129 = vector.extract_strided_slice %114 {offsets = [0, 1], sizes = [8, 1], strides = [1, 1]} : vector<8x4xf32> to vector<8x1xf32>
    %130 = vector.extract_strided_slice %0 {offsets = [1, 0], sizes = [1, 32], strides = [1, 1]} : vector<4x32xf32> to vector<1x32xf32>
    %131 = vector.broadcast %129 : vector<8x1xf32> to vector<8x32xf32>
    %132 = vector.broadcast %130 : vector<1x32xf32> to vector<8x32xf32>
    %133 = arith.mulf %131, %132 : vector<8x32xf32>
    %134 = arith.addf %128, %133 : vector<8x32xf32>
    %135 = vector.extract_strided_slice %114 {offsets = [0, 2], sizes = [8, 1], strides = [1, 1]} : vector<8x4xf32> to vector<8x1xf32>
    %136 = vector.extract_strided_slice %0 {offsets = [2, 0], sizes = [1, 32], strides = [1, 1]} : vector<4x32xf32> to vector<1x32xf32>
    %137 = vector.broadcast %135 : vector<8x1xf32> to vector<8x32xf32>
    %138 = vector.broadcast %136 : vector<1x32xf32> to vector<8x32xf32>
    %139 = arith.mulf %137, %138 : vector<8x32xf32>
    %140 = arith.addf %134, %139 : vector<8x32xf32>
    %141 = vector.extract_strided_slice %114 {offsets = [0, 3], sizes = [8, 1], strides = [1, 1]} : vector<8x4xf32> to vector<8x1xf32>
    %142 = vector.extract_strided_slice %0 {offsets = [3, 0], sizes = [1, 32], strides = [1, 1]} : vector<4x32xf32> to vector<1x32xf32>
    %143 = vector.broadcast %141 : vector<8x1xf32> to vector<8x32xf32>
    %144 = vector.broadcast %142 : vector<1x32xf32> to vector<8x32xf32>
    %145 = arith.mulf %143, %144 : vector<8x32xf32>
    %146 = arith.addf %140, %145 : vector<8x32xf32>
    %cst_51 = arith.constant 5.000000e-01 : f32
    %147 = vector.broadcast %cst_51 : f32 to vector<8x32xf32>
    %148 = arith.mulf %147, %146 : vector<8x32xf32>
    %cst_52 = arith.constant 0.707106769 : f32
    %149 = vector.broadcast %cst_52 : f32 to vector<8x32xf32>
    %150 = arith.mulf %146, %149 : vector<8x32xf32>
    %151 = math.erf %150 : vector<8x32xf32>
    %cst_53 = arith.constant 1.000000e+00 : f32
    %152 = vector.broadcast %cst_53 : f32 to vector<8x32xf32>
    %153 = arith.addf %152, %151 : vector<8x32xf32>
    %154 = arith.mulf %148, %153 : vector<8x32xf32>
    %155 = arith.truncf %154 : vector<8x32xf32> to vector<8x32xbf16>
    %cst_54 = arith.constant dense<0.000000e+00> : vector<8x16xf32>
    %156 = tpu.matmul %155, %1, %cst_54 {dimension_numbers = #tpu.dot_dimension_numbers<[1], [0], [0], [1], [0, 0, 1, 1], [], []>} : vector<8x32xbf16>, vector<32x16xbf16>, vector<8x16xf32> -> vector<8x16xf32>
    %157 = arith.addf %156, %11 : vector<8x16xf32>
    %cst_55 = arith.constant 5.000000e-01 : f32
    %158 = vector.broadcast %cst_55 : f32 to vector<8x16xf32>
    %159 = arith.mulf %158, %157 : vector<8x16xf32>
    %cst_56 = arith.constant 0.707106769 : f32
    %160 = vector.broadcast %cst_56 : f32 to vector<8x16xf32>
    %161 = arith.mulf %157, %160 : vector<8x16xf32>
    %162 = math.erf %161 : vector<8x16xf32>
    %cst_57 = arith.constant 1.000000e+00 : f32
    %163 = vector.broadcast %cst_57 : f32 to vector<8x16xf32>
    %164 = arith.addf %163, %162 : vector<8x16xf32>
    %165 = arith.mulf %159, %164 : vector<8x16xf32>
    %166 = arith.truncf %165 : vector<8x16xf32> to vector<8x16xbf16>
    %cst_58 = arith.constant dense<0.000000e+00> : vector<8x32xf32>
    %167 = tpu.matmul %166, %2, %cst_58 {dimension_numbers = #tpu.dot_dimension_numbers<[1], [0], [0], [1], [0, 0, 1, 1], [], []>} : vector<8x16xbf16>, vector<16x32xbf16>, vector<8x32xf32> -> vector<8x32xf32>
    %168 = vector.extract_strided_slice %5 {offsets = [1, 0], sizes = [1, 32], strides = [1, 1]} : vector<8x32xf32> to vector<1x32xf32>
    %169 = vector.broadcast %168 : vector<1x32xf32> to vector<8x32xf32>
    %170 = arith.addf %167, %169 : vector<8x32xf32>
    %cst_59 = arith.constant 5.000000e-01 : f32
    %171 = vector.broadcast %cst_59 : f32 to vector<8x32xf32>
    %172 = arith.mulf %171, %170 : vector<8x32xf32>
    %cst_60 = arith.constant 0.707106769 : f32
    %173 = vector.broadcast %cst_60 : f32 to vector<8x32xf32>
    %174 = arith.mulf %170, %173 : vector<8x32xf32>
    %175 = math.erf %174 : vector<8x32xf32>
    %cst_61 = arith.constant 1.000000e+00 : f32
    %176 = vector.broadcast %cst_61 : f32 to vector<8x32xf32>
    %177 = arith.addf %176, %175 : vector<8x32xf32>
    %178 = arith.mulf %172, %177 : vector<8x32xf32>
    %179 = arith.truncf %178 : vector<8x32xf32> to vector<8x32xbf16>
    %cst_62 = arith.constant dense<0.000000e+00> : vector<8x32xf32>
    %180 = tpu.matmul %179, %3, %cst_62 {dimension_numbers = #tpu.dot_dimension_numbers<[1], [0], [0], [1], [0, 0, 1, 1], [], []>} : vector<8x32xbf16>, vector<32x32xbf16>, vector<8x32xf32> -> vector<8x32xf32>
    %181 = arith.addf %180, %14 : vector<8x32xf32>
    %cst_63 = arith.constant 5.000000e-01 : f32
    %182 = vector.broadcast %cst_63 : f32 to vector<8x32xf32>
    %183 = arith.mulf %182, %181 : vector<8x32xf32>
    %cst_64 = arith.constant 0.707106769 : f32
    %184 = vector.broadcast %cst_64 : f32 to vector<8x32xf32>
    %185 = arith.mulf %181, %184 : vector<8x32xf32>
    %186 = math.erf %185 : vector<8x32xf32>
    %cst_65 = arith.constant 1.000000e+00 : f32
    %187 = vector.broadcast %cst_65 : f32 to vector<8x32xf32>
    %188 = arith.addf %187, %186 : vector<8x32xf32>
    %189 = arith.mulf %183, %188 : vector<8x32xf32>
    %190 = arith.truncf %189 : vector<8x32xf32> to vector<8x32xbf16>
    %cst_66 = arith.constant dense<0.000000e+00> : vector<8x256xf32>
    %191 = tpu.matmul %190, %4, %cst_66 {dimension_numbers = #tpu.dot_dimension_numbers<[1], [0], [0], [1], [0, 0, 1, 1], [], []>} : vector<8x32xbf16>, vector<32x256xbf16>, vector<8x256xf32> -> vector<8x256xf32>
    %192 = vector.extract_strided_slice %191 {offsets = [0, 0], sizes = [8, 4], strides = [1, 1]} : vector<8x256xf32> to vector<8x4xf32>
    %193 = arith.addf %192, %17 : vector<8x4xf32>
    %194 = vector.extract_strided_slice %191 {offsets = [0, 128], sizes = [8, 4], strides = [1, 1]} : vector<8x256xf32> to vector<8x4xf32>
    %195 = arith.addf %194, %20 : vector<8x4xf32>
    %196 = math.tanh %195 : vector<8x4xf32>
    %cst_67 = arith.constant 4.000000e+00 : f32
    %197 = vector.broadcast %cst_67 : f32 to vector<8x4xf32>
    %198 = arith.mulf %196, %197 : vector<8x4xf32>
    %cst_68 = arith.constant 0.000000e+00 : f32
    %199 = vector.broadcast %cst_68 : f32 to vector<8x4xf32>
    %200 = arith.addf %198, %199 : vector<8x4xf32>
    %201 = vector.extract_strided_slice %21 {offsets = [1, 0, 0], sizes = [1, 8, 4], strides = [1, 1, 1]} : vector<8x8x4xf32> to vector<1x8x4xf32>
    %202 = vector.shape_cast %201 : vector<1x8x4xf32> to vector<8x4xf32>
    %cst_69 = arith.constant 5.000000e-01 : f32
    %203 = vector.broadcast %cst_69 : f32 to vector<8x4xf32>
    %204 = arith.mulf %203, %200 : vector<8x4xf32>
    %205 = math.exp %204 : vector<8x4xf32>
    %cst_70 = arith.constant 0.353553385 : f32
    %206 = vector.broadcast %cst_70 : f32 to vector<8x4xf32>
    %207 = arith.mulf %206, %205 : vector<8x4xf32>
    %cst_71 = arith.constant 1.250000e-01 : f32
    %208 = vector.broadcast %cst_71 : f32 to vector<8x4xf32>
    %209 = arith.mulf %208, %193 : vector<8x4xf32>
    %210 = arith.addf %114, %209 : vector<8x4xf32>
    %211 = arith.mulf %207, %202 : vector<8x4xf32>
    %212 = arith.addf %210, %211 : vector<8x4xf32>
    %213 = arith.mulf %202, %202 : vector<8x4xf32>
    %214 = arith.addf %213, %200 : vector<8x4xf32>
    %cst_72 = arith.constant dense<0.000000e+00> : vector<8xf32>
    %215 = vector.multi_reduction <add>, %214, %cst_72 [1] : vector<8x4xf32> to vector<8xf32>
    %216 = vector.shape_cast %215 : vector<8xf32> to vector<8x1xf32>
    %cst_73 = arith.constant -0.966257929 : f32
    %217 = vector.broadcast %cst_73 : f32 to vector<8x1xf32>
    %218 = arith.addf %216, %217 : vector<8x1xf32>
    %cst_74 = arith.constant -5.000000e-01 : f32
    %219 = vector.broadcast %cst_74 : f32 to vector<8x1xf32>
    %220 = arith.mulf %219, %218 : vector<8x1xf32>
    %cst_75 = arith.constant 5.000000e-01 : f32
    %221 = vector.broadcast %cst_75 : f32 to vector<8x4xf32>
    %222 = arith.mulf %212, %221 : vector<8x4xf32>
    %223 = arith.subf %114, %222 : vector<8x4xf32>
    %cst_76 = arith.constant 4.000000e+00 : f32
    %224 = vector.broadcast %cst_76 : f32 to vector<8x4xf32>
    %225 = arith.mulf %223, %224 : vector<8x4xf32>
    %226 = arith.mulf %225, %225 : vector<8x4xf32>
    %cst_77 = arith.constant dense<0.000000e+00> : vector<8xf32>
    %227 = vector.multi_reduction <add>, %226, %cst_77 [1] : vector<8x4xf32> to vector<8xf32>
    %228 = vector.shape_cast %227 : vector<8xf32> to vector<8x1xf32>
    %cst_78 = arith.constant -3.73884654 : f32
    %229 = vector.broadcast %cst_78 : f32 to vector<8x1xf32>
    %230 = arith.addf %228, %229 : vector<8x1xf32>
    %cst_79 = arith.constant -5.000000e-01 : f32
    %231 = vector.broadcast %cst_79 : f32 to vector<8x1xf32>
    %232 = arith.mulf %231, %230 : vector<8x1xf32>
    %233 = vector.extract_strided_slice %212 {offsets = [0, 0], sizes = [8, 1], strides = [1, 1]} : vector<8x4xf32> to vector<8x1xf32>
    %234 = vector.extract_strided_slice %0 {offsets = [0, 0], sizes = [1, 32], strides = [1, 1]} : vector<4x32xf32> to vector<1x32xf32>
    %235 = vector.broadcast %233 : vector<8x1xf32> to vector<8x32xf32>
    %236 = vector.broadcast %234 : vector<1x32xf32> to vector<8x32xf32>
    %237 = arith.mulf %235, %236 : vector<8x32xf32>
    %238 = arith.addf %8, %237 : vector<8x32xf32>
    %239 = vector.extract_strided_slice %212 {offsets = [0, 1], sizes = [8, 1], strides = [1, 1]} : vector<8x4xf32> to vector<8x1xf32>
    %240 = vector.extract_strided_slice %0 {offsets = [1, 0], sizes = [1, 32], strides = [1, 1]} : vector<4x32xf32> to vector<1x32xf32>
    %241 = vector.broadcast %239 : vector<8x1xf32> to vector<8x32xf32>
    %242 = vector.broadcast %240 : vector<1x32xf32> to vector<8x32xf32>
    %243 = arith.mulf %241, %242 : vector<8x32xf32>
    %244 = arith.addf %238, %243 : vector<8x32xf32>
    %245 = vector.extract_strided_slice %212 {offsets = [0, 2], sizes = [8, 1], strides = [1, 1]} : vector<8x4xf32> to vector<8x1xf32>
    %246 = vector.extract_strided_slice %0 {offsets = [2, 0], sizes = [1, 32], strides = [1, 1]} : vector<4x32xf32> to vector<1x32xf32>
    %247 = vector.broadcast %245 : vector<8x1xf32> to vector<8x32xf32>
    %248 = vector.broadcast %246 : vector<1x32xf32> to vector<8x32xf32>
    %249 = arith.mulf %247, %248 : vector<8x32xf32>
    %250 = arith.addf %244, %249 : vector<8x32xf32>
    %251 = vector.extract_strided_slice %212 {offsets = [0, 3], sizes = [8, 1], strides = [1, 1]} : vector<8x4xf32> to vector<8x1xf32>
    %252 = vector.extract_strided_slice %0 {offsets = [3, 0], sizes = [1, 32], strides = [1, 1]} : vector<4x32xf32> to vector<1x32xf32>
    %253 = vector.broadcast %251 : vector<8x1xf32> to vector<8x32xf32>
    %254 = vector.broadcast %252 : vector<1x32xf32> to vector<8x32xf32>
    %255 = arith.mulf %253, %254 : vector<8x32xf32>
    %256 = arith.addf %250, %255 : vector<8x32xf32>
    %cst_80 = arith.constant 5.000000e-01 : f32
    %257 = vector.broadcast %cst_80 : f32 to vector<8x32xf32>
    %258 = arith.mulf %257, %256 : vector<8x32xf32>
    %cst_81 = arith.constant 0.707106769 : f32
    %259 = vector.broadcast %cst_81 : f32 to vector<8x32xf32>
    %260 = arith.mulf %256, %259 : vector<8x32xf32>
    %261 = math.erf %260 : vector<8x32xf32>
    %cst_82 = arith.constant 1.000000e+00 : f32
    %262 = vector.broadcast %cst_82 : f32 to vector<8x32xf32>
    %263 = arith.addf %262, %261 : vector<8x32xf32>
    %264 = arith.mulf %258, %263 : vector<8x32xf32>
    %265 = arith.truncf %264 : vector<8x32xf32> to vector<8x32xbf16>
    %cst_83 = arith.constant dense<0.000000e+00> : vector<8x16xf32>
    %266 = tpu.matmul %265, %1, %cst_83 {dimension_numbers = #tpu.dot_dimension_numbers<[1], [0], [0], [1], [0, 0, 1, 1], [], []>} : vector<8x32xbf16>, vector<32x16xbf16>, vector<8x16xf32> -> vector<8x16xf32>
    %267 = arith.addf %266, %11 : vector<8x16xf32>
    %cst_84 = arith.constant 5.000000e-01 : f32
    %268 = vector.broadcast %cst_84 : f32 to vector<8x16xf32>
    %269 = arith.mulf %268, %267 : vector<8x16xf32>
    %cst_85 = arith.constant 0.707106769 : f32
    %270 = vector.broadcast %cst_85 : f32 to vector<8x16xf32>
    %271 = arith.mulf %267, %270 : vector<8x16xf32>
    %272 = math.erf %271 : vector<8x16xf32>
    %cst_86 = arith.constant 1.000000e+00 : f32
    %273 = vector.broadcast %cst_86 : f32 to vector<8x16xf32>
    %274 = arith.addf %273, %272 : vector<8x16xf32>
    %275 = arith.mulf %269, %274 : vector<8x16xf32>
    %276 = arith.truncf %275 : vector<8x16xf32> to vector<8x16xbf16>
    %cst_87 = arith.constant dense<0.000000e+00> : vector<8x32xf32>
    %277 = tpu.matmul %276, %2, %cst_87 {dimension_numbers = #tpu.dot_dimension_numbers<[1], [0], [0], [1], [0, 0, 1, 1], [], []>} : vector<8x16xbf16>, vector<16x32xbf16>, vector<8x32xf32> -> vector<8x32xf32>
    %278 = vector.extract_strided_slice %5 {offsets = [2, 0], sizes = [1, 32], strides = [1, 1]} : vector<8x32xf32> to vector<1x32xf32>
    %279 = vector.broadcast %278 : vector<1x32xf32> to vector<8x32xf32>
    %280 = arith.addf %277, %279 : vector<8x32xf32>
    %cst_88 = arith.constant 5.000000e-01 : f32
    %281 = vector.broadcast %cst_88 : f32 to vector<8x32xf32>
    %282 = arith.mulf %281, %280 : vector<8x32xf32>
    %cst_89 = arith.constant 0.707106769 : f32
    %283 = vector.broadcast %cst_89 : f32 to vector<8x32xf32>
    %284 = arith.mulf %280, %283 : vector<8x32xf32>
    %285 = math.erf %284 : vector<8x32xf32>
    %cst_90 = arith.constant 1.000000e+00 : f32
    %286 = vector.broadcast %cst_90 : f32 to vector<8x32xf32>
    %287 = arith.addf %286, %285 : vector<8x32xf32>
    %288 = arith.mulf %282, %287 : vector<8x32xf32>
    %289 = arith.truncf %288 : vector<8x32xf32> to vector<8x32xbf16>
    %cst_91 = arith.constant dense<0.000000e+00> : vector<8x32xf32>
    %290 = tpu.matmul %289, %3, %cst_91 {dimension_numbers = #tpu.dot_dimension_numbers<[1], [0], [0], [1], [0, 0, 1, 1], [], []>} : vector<8x32xbf16>, vector<32x32xbf16>, vector<8x32xf32> -> vector<8x32xf32>
    %291 = arith.addf %290, %14 : vector<8x32xf32>
    %cst_92 = arith.constant 5.000000e-01 : f32
    %292 = vector.broadcast %cst_92 : f32 to vector<8x32xf32>
    %293 = arith.mulf %292, %291 : vector<8x32xf32>
    %cst_93 = arith.constant 0.707106769 : f32
    %294 = vector.broadcast %cst_93 : f32 to vector<8x32xf32>
    %295 = arith.mulf %291, %294 : vector<8x32xf32>
    %296 = math.erf %295 : vector<8x32xf32>
    %cst_94 = arith.constant 1.000000e+00 : f32
    %297 = vector.broadcast %cst_94 : f32 to vector<8x32xf32>
    %298 = arith.addf %297, %296 : vector<8x32xf32>
    %299 = arith.mulf %293, %298 : vector<8x32xf32>
    %300 = arith.truncf %299 : vector<8x32xf32> to vector<8x32xbf16>
    %cst_95 = arith.constant dense<0.000000e+00> : vector<8x256xf32>
    %301 = tpu.matmul %300, %4, %cst_95 {dimension_numbers = #tpu.dot_dimension_numbers<[1], [0], [0], [1], [0, 0, 1, 1], [], []>} : vector<8x32xbf16>, vector<32x256xbf16>, vector<8x256xf32> -> vector<8x256xf32>
    %302 = vector.extract_strided_slice %301 {offsets = [0, 0], sizes = [8, 4], strides = [1, 1]} : vector<8x256xf32> to vector<8x4xf32>
    %303 = arith.addf %302, %17 : vector<8x4xf32>
    %304 = vector.extract_strided_slice %301 {offsets = [0, 128], sizes = [8, 4], strides = [1, 1]} : vector<8x256xf32> to vector<8x4xf32>
    %305 = arith.addf %304, %20 : vector<8x4xf32>
    %306 = math.tanh %305 : vector<8x4xf32>
    %cst_96 = arith.constant 4.000000e+00 : f32
    %307 = vector.broadcast %cst_96 : f32 to vector<8x4xf32>
    %308 = arith.mulf %306, %307 : vector<8x4xf32>
    %cst_97 = arith.constant 0.000000e+00 : f32
    %309 = vector.broadcast %cst_97 : f32 to vector<8x4xf32>
    %310 = arith.addf %308, %309 : vector<8x4xf32>
    %311 = vector.extract_strided_slice %21 {offsets = [2, 0, 0], sizes = [1, 8, 4], strides = [1, 1, 1]} : vector<8x8x4xf32> to vector<1x8x4xf32>
    %312 = vector.shape_cast %311 : vector<1x8x4xf32> to vector<8x4xf32>
    %cst_98 = arith.constant 5.000000e-01 : f32
    %313 = vector.broadcast %cst_98 : f32 to vector<8x4xf32>
    %314 = arith.mulf %313, %310 : vector<8x4xf32>
    %315 = math.exp %314 : vector<8x4xf32>
    %cst_99 = arith.constant 0.353553385 : f32
    %316 = vector.broadcast %cst_99 : f32 to vector<8x4xf32>
    %317 = arith.mulf %316, %315 : vector<8x4xf32>
    %cst_100 = arith.constant 1.250000e-01 : f32
    %318 = vector.broadcast %cst_100 : f32 to vector<8x4xf32>
    %319 = arith.mulf %318, %303 : vector<8x4xf32>
    %320 = arith.addf %212, %319 : vector<8x4xf32>
    %321 = arith.mulf %317, %312 : vector<8x4xf32>
    %322 = arith.addf %320, %321 : vector<8x4xf32>
    %323 = arith.mulf %312, %312 : vector<8x4xf32>
    %324 = arith.addf %323, %310 : vector<8x4xf32>
    %cst_101 = arith.constant dense<0.000000e+00> : vector<8xf32>
    %325 = vector.multi_reduction <add>, %324, %cst_101 [1] : vector<8x4xf32> to vector<8xf32>
    %326 = vector.shape_cast %325 : vector<8xf32> to vector<8x1xf32>
    %cst_102 = arith.constant -0.966257929 : f32
    %327 = vector.broadcast %cst_102 : f32 to vector<8x1xf32>
    %328 = arith.addf %326, %327 : vector<8x1xf32>
    %cst_103 = arith.constant -5.000000e-01 : f32
    %329 = vector.broadcast %cst_103 : f32 to vector<8x1xf32>
    %330 = arith.mulf %329, %328 : vector<8x1xf32>
    %cst_104 = arith.constant 0.666666686 : f32
    %331 = vector.broadcast %cst_104 : f32 to vector<8x4xf32>
    %332 = arith.mulf %322, %331 : vector<8x4xf32>
    %333 = arith.subf %212, %332 : vector<8x4xf32>
    %cst_105 = arith.constant 3.46410155 : f32
    %334 = vector.broadcast %cst_105 : f32 to vector<8x4xf32>
    %335 = arith.mulf %333, %334 : vector<8x4xf32>
    %336 = arith.mulf %335, %335 : vector<8x4xf32>
    %cst_106 = arith.constant dense<0.000000e+00> : vector<8xf32>
    %337 = vector.multi_reduction <add>, %336, %cst_106 [1] : vector<8x4xf32> to vector<8xf32>
    %338 = vector.shape_cast %337 : vector<8xf32> to vector<8x1xf32>
    %cst_107 = arith.constant -2.58811831 : f32
    %339 = vector.broadcast %cst_107 : f32 to vector<8x1xf32>
    %340 = arith.addf %338, %339 : vector<8x1xf32>
    %cst_108 = arith.constant -5.000000e-01 : f32
    %341 = vector.broadcast %cst_108 : f32 to vector<8x1xf32>
    %342 = arith.mulf %341, %340 : vector<8x1xf32>
    %343 = vector.extract_strided_slice %322 {offsets = [0, 0], sizes = [8, 1], strides = [1, 1]} : vector<8x4xf32> to vector<8x1xf32>
    %344 = vector.extract_strided_slice %0 {offsets = [0, 0], sizes = [1, 32], strides = [1, 1]} : vector<4x32xf32> to vector<1x32xf32>
    %345 = vector.broadcast %343 : vector<8x1xf32> to vector<8x32xf32>
    %346 = vector.broadcast %344 : vector<1x32xf32> to vector<8x32xf32>
    %347 = arith.mulf %345, %346 : vector<8x32xf32>
    %348 = arith.addf %8, %347 : vector<8x32xf32>
    %349 = vector.extract_strided_slice %322 {offsets = [0, 1], sizes = [8, 1], strides = [1, 1]} : vector<8x4xf32> to vector<8x1xf32>
    %350 = vector.extract_strided_slice %0 {offsets = [1, 0], sizes = [1, 32], strides = [1, 1]} : vector<4x32xf32> to vector<1x32xf32>
    %351 = vector.broadcast %349 : vector<8x1xf32> to vector<8x32xf32>
    %352 = vector.broadcast %350 : vector<1x32xf32> to vector<8x32xf32>
    %353 = arith.mulf %351, %352 : vector<8x32xf32>
    %354 = arith.addf %348, %353 : vector<8x32xf32>
    %355 = vector.extract_strided_slice %322 {offsets = [0, 2], sizes = [8, 1], strides = [1, 1]} : vector<8x4xf32> to vector<8x1xf32>
    %356 = vector.extract_strided_slice %0 {offsets = [2, 0], sizes = [1, 32], strides = [1, 1]} : vector<4x32xf32> to vector<1x32xf32>
    %357 = vector.broadcast %355 : vector<8x1xf32> to vector<8x32xf32>
    %358 = vector.broadcast %356 : vector<1x32xf32> to vector<8x32xf32>
    %359 = arith.mulf %357, %358 : vector<8x32xf32>
    %360 = arith.addf %354, %359 : vector<8x32xf32>
    %361 = vector.extract_strided_slice %322 {offsets = [0, 3], sizes = [8, 1], strides = [1, 1]} : vector<8x4xf32> to vector<8x1xf32>
    %362 = vector.extract_strided_slice %0 {offsets = [3, 0], sizes = [1, 32], strides = [1, 1]} : vector<4x32xf32> to vector<1x32xf32>
    %363 = vector.broadcast %361 : vector<8x1xf32> to vector<8x32xf32>
    %364 = vector.broadcast %362 : vector<1x32xf32> to vector<8x32xf32>
    %365 = arith.mulf %363, %364 : vector<8x32xf32>
    %366 = arith.addf %360, %365 : vector<8x32xf32>
    %cst_109 = arith.constant 5.000000e-01 : f32
    %367 = vector.broadcast %cst_109 : f32 to vector<8x32xf32>
    %368 = arith.mulf %367, %366 : vector<8x32xf32>
    %cst_110 = arith.constant 0.707106769 : f32
    %369 = vector.broadcast %cst_110 : f32 to vector<8x32xf32>
    %370 = arith.mulf %366, %369 : vector<8x32xf32>
    %371 = math.erf %370 : vector<8x32xf32>
    %cst_111 = arith.constant 1.000000e+00 : f32
    %372 = vector.broadcast %cst_111 : f32 to vector<8x32xf32>
    %373 = arith.addf %372, %371 : vector<8x32xf32>
    %374 = arith.mulf %368, %373 : vector<8x32xf32>
    %375 = arith.truncf %374 : vector<8x32xf32> to vector<8x32xbf16>
    %cst_112 = arith.constant dense<0.000000e+00> : vector<8x16xf32>
    %376 = tpu.matmul %375, %1, %cst_112 {dimension_numbers = #tpu.dot_dimension_numbers<[1], [0], [0], [1], [0, 0, 1, 1], [], []>} : vector<8x32xbf16>, vector<32x16xbf16>, vector<8x16xf32> -> vector<8x16xf32>
    %377 = arith.addf %376, %11 : vector<8x16xf32>
    %cst_113 = arith.constant 5.000000e-01 : f32
    %378 = vector.broadcast %cst_113 : f32 to vector<8x16xf32>
    %379 = arith.mulf %378, %377 : vector<8x16xf32>
    %cst_114 = arith.constant 0.707106769 : f32
    %380 = vector.broadcast %cst_114 : f32 to vector<8x16xf32>
    %381 = arith.mulf %377, %380 : vector<8x16xf32>
    %382 = math.erf %381 : vector<8x16xf32>
    %cst_115 = arith.constant 1.000000e+00 : f32
    %383 = vector.broadcast %cst_115 : f32 to vector<8x16xf32>
    %384 = arith.addf %383, %382 : vector<8x16xf32>
    %385 = arith.mulf %379, %384 : vector<8x16xf32>
    %386 = arith.truncf %385 : vector<8x16xf32> to vector<8x16xbf16>
    %cst_116 = arith.constant dense<0.000000e+00> : vector<8x32xf32>
    %387 = tpu.matmul %386, %2, %cst_116 {dimension_numbers = #tpu.dot_dimension_numbers<[1], [0], [0], [1], [0, 0, 1, 1], [], []>} : vector<8x16xbf16>, vector<16x32xbf16>, vector<8x32xf32> -> vector<8x32xf32>
    %388 = vector.extract_strided_slice %5 {offsets = [3, 0], sizes = [1, 32], strides = [1, 1]} : vector<8x32xf32> to vector<1x32xf32>
    %389 = vector.broadcast %388 : vector<1x32xf32> to vector<8x32xf32>
    %390 = arith.addf %387, %389 : vector<8x32xf32>
    %cst_117 = arith.constant 5.000000e-01 : f32
    %391 = vector.broadcast %cst_117 : f32 to vector<8x32xf32>
    %392 = arith.mulf %391, %390 : vector<8x32xf32>
    %cst_118 = arith.constant 0.707106769 : f32
    %393 = vector.broadcast %cst_118 : f32 to vector<8x32xf32>
    %394 = arith.mulf %390, %393 : vector<8x32xf32>
    %395 = math.erf %394 : vector<8x32xf32>
    %cst_119 = arith.constant 1.000000e+00 : f32
    %396 = vector.broadcast %cst_119 : f32 to vector<8x32xf32>
    %397 = arith.addf %396, %395 : vector<8x32xf32>
    %398 = arith.mulf %392, %397 : vector<8x32xf32>
    %399 = arith.truncf %398 : vector<8x32xf32> to vector<8x32xbf16>
    %cst_120 = arith.constant dense<0.000000e+00> : vector<8x32xf32>
    %400 = tpu.matmul %399, %3, %cst_120 {dimension_numbers = #tpu.dot_dimension_numbers<[1], [0], [0], [1], [0, 0, 1, 1], [], []>} : vector<8x32xbf16>, vector<32x32xbf16>, vector<8x32xf32> -> vector<8x32xf32>
    %401 = arith.addf %400, %14 : vector<8x32xf32>
    %cst_121 = arith.constant 5.000000e-01 : f32
    %402 = vector.broadcast %cst_121 : f32 to vector<8x32xf32>
    %403 = arith.mulf %402, %401 : vector<8x32xf32>
    %cst_122 = arith.constant 0.707106769 : f32
    %404 = vector.broadcast %cst_122 : f32 to vector<8x32xf32>
    %405 = arith.mulf %401, %404 : vector<8x32xf32>
    %406 = math.erf %405 : vector<8x32xf32>
    %cst_123 = arith.constant 1.000000e+00 : f32
    %407 = vector.broadcast %cst_123 : f32 to vector<8x32xf32>
    %408 = arith.addf %407, %406 : vector<8x32xf32>
    %409 = arith.mulf %403, %408 : vector<8x32xf32>
    %410 = arith.truncf %409 : vector<8x32xf32> to vector<8x32xbf16>
    %cst_124 = arith.constant dense<0.000000e+00> : vector<8x256xf32>
    %411 = tpu.matmul %410, %4, %cst_124 {dimension_numbers = #tpu.dot_dimension_numbers<[1], [0], [0], [1], [0, 0, 1, 1], [], []>} : vector<8x32xbf16>, vector<32x256xbf16>, vector<8x256xf32> -> vector<8x256xf32>
    %412 = vector.extract_strided_slice %411 {offsets = [0, 0], sizes = [8, 4], strides = [1, 1]} : vector<8x256xf32> to vector<8x4xf32>
    %413 = arith.addf %412, %17 : vector<8x4xf32>
    %414 = vector.extract_strided_slice %411 {offsets = [0, 128], sizes = [8, 4], strides = [1, 1]} : vector<8x256xf32> to vector<8x4xf32>
    %415 = arith.addf %414, %20 : vector<8x4xf32>
    %416 = math.tanh %415 : vector<8x4xf32>
    %cst_125 = arith.constant 4.000000e+00 : f32
    %417 = vector.broadcast %cst_125 : f32 to vector<8x4xf32>
    %418 = arith.mulf %416, %417 : vector<8x4xf32>
    %cst_126 = arith.constant 0.000000e+00 : f32
    %419 = vector.broadcast %cst_126 : f32 to vector<8x4xf32>
    %420 = arith.addf %418, %419 : vector<8x4xf32>
    %421 = vector.extract_strided_slice %21 {offsets = [3, 0, 0], sizes = [1, 8, 4], strides = [1, 1, 1]} : vector<8x8x4xf32> to vector<1x8x4xf32>
    %422 = vector.shape_cast %421 : vector<1x8x4xf32> to vector<8x4xf32>
    %cst_127 = arith.constant 5.000000e-01 : f32
    %423 = vector.broadcast %cst_127 : f32 to vector<8x4xf32>
    %424 = arith.mulf %423, %420 : vector<8x4xf32>
    %425 = math.exp %424 : vector<8x4xf32>
    %cst_128 = arith.constant 0.353553385 : f32
    %426 = vector.broadcast %cst_128 : f32 to vector<8x4xf32>
    %427 = arith.mulf %426, %425 : vector<8x4xf32>
    %cst_129 = arith.constant 1.250000e-01 : f32
    %428 = vector.broadcast %cst_129 : f32 to vector<8x4xf32>
    %429 = arith.mulf %428, %413 : vector<8x4xf32>
    %430 = arith.addf %322, %429 : vector<8x4xf32>
    %431 = arith.mulf %427, %422 : vector<8x4xf32>
    %432 = arith.addf %430, %431 : vector<8x4xf32>
    %433 = arith.mulf %422, %422 : vector<8x4xf32>
    %434 = arith.addf %433, %420 : vector<8x4xf32>
    %cst_130 = arith.constant dense<0.000000e+00> : vector<8xf32>
    %435 = vector.multi_reduction <add>, %434, %cst_130 [1] : vector<8x4xf32> to vector<8xf32>
    %436 = vector.shape_cast %435 : vector<8xf32> to vector<8x1xf32>
    %cst_131 = arith.constant -0.966257929 : f32
    %437 = vector.broadcast %cst_131 : f32 to vector<8x1xf32>
    %438 = arith.addf %436, %437 : vector<8x1xf32>
    %cst_132 = arith.constant -5.000000e-01 : f32
    %439 = vector.broadcast %cst_132 : f32 to vector<8x1xf32>
    %440 = arith.mulf %439, %438 : vector<8x1xf32>
    %cst_133 = arith.constant 7.500000e-01 : f32
    %441 = vector.broadcast %cst_133 : f32 to vector<8x4xf32>
    %442 = arith.mulf %432, %441 : vector<8x4xf32>
    %443 = arith.subf %322, %442 : vector<8x4xf32>
    %cst_134 = arith.constant 3.26598644 : f32
    %444 = vector.broadcast %cst_134 : f32 to vector<8x4xf32>
    %445 = arith.mulf %443, %444 : vector<8x4xf32>
    %446 = arith.mulf %445, %445 : vector<8x4xf32>
    %cst_135 = arith.constant dense<0.000000e+00> : vector<8xf32>
    %447 = vector.multi_reduction <add>, %446, %cst_135 [1] : vector<8x4xf32> to vector<8xf32>
    %448 = vector.shape_cast %447 : vector<8xf32> to vector<8x1xf32>
    %cst_136 = arith.constant -2.11698627 : f32
    %449 = vector.broadcast %cst_136 : f32 to vector<8x1xf32>
    %450 = arith.addf %448, %449 : vector<8x1xf32>
    %cst_137 = arith.constant -5.000000e-01 : f32
    %451 = vector.broadcast %cst_137 : f32 to vector<8x1xf32>
    %452 = arith.mulf %451, %450 : vector<8x1xf32>
    %453 = vector.extract_strided_slice %432 {offsets = [0, 0], sizes = [8, 1], strides = [1, 1]} : vector<8x4xf32> to vector<8x1xf32>
    %454 = vector.extract_strided_slice %0 {offsets = [0, 0], sizes = [1, 32], strides = [1, 1]} : vector<4x32xf32> to vector<1x32xf32>
    %455 = vector.broadcast %453 : vector<8x1xf32> to vector<8x32xf32>
    %456 = vector.broadcast %454 : vector<1x32xf32> to vector<8x32xf32>
    %457 = arith.mulf %455, %456 : vector<8x32xf32>
    %458 = arith.addf %8, %457 : vector<8x32xf32>
    %459 = vector.extract_strided_slice %432 {offsets = [0, 1], sizes = [8, 1], strides = [1, 1]} : vector<8x4xf32> to vector<8x1xf32>
    %460 = vector.extract_strided_slice %0 {offsets = [1, 0], sizes = [1, 32], strides = [1, 1]} : vector<4x32xf32> to vector<1x32xf32>
    %461 = vector.broadcast %459 : vector<8x1xf32> to vector<8x32xf32>
    %462 = vector.broadcast %460 : vector<1x32xf32> to vector<8x32xf32>
    %463 = arith.mulf %461, %462 : vector<8x32xf32>
    %464 = arith.addf %458, %463 : vector<8x32xf32>
    %465 = vector.extract_strided_slice %432 {offsets = [0, 2], sizes = [8, 1], strides = [1, 1]} : vector<8x4xf32> to vector<8x1xf32>
    %466 = vector.extract_strided_slice %0 {offsets = [2, 0], sizes = [1, 32], strides = [1, 1]} : vector<4x32xf32> to vector<1x32xf32>
    %467 = vector.broadcast %465 : vector<8x1xf32> to vector<8x32xf32>
    %468 = vector.broadcast %466 : vector<1x32xf32> to vector<8x32xf32>
    %469 = arith.mulf %467, %468 : vector<8x32xf32>
    %470 = arith.addf %464, %469 : vector<8x32xf32>
    %471 = vector.extract_strided_slice %432 {offsets = [0, 3], sizes = [8, 1], strides = [1, 1]} : vector<8x4xf32> to vector<8x1xf32>
    %472 = vector.extract_strided_slice %0 {offsets = [3, 0], sizes = [1, 32], strides = [1, 1]} : vector<4x32xf32> to vector<1x32xf32>
    %473 = vector.broadcast %471 : vector<8x1xf32> to vector<8x32xf32>
    %474 = vector.broadcast %472 : vector<1x32xf32> to vector<8x32xf32>
    %475 = arith.mulf %473, %474 : vector<8x32xf32>
    %476 = arith.addf %470, %475 : vector<8x32xf32>
    %cst_138 = arith.constant 5.000000e-01 : f32
    %477 = vector.broadcast %cst_138 : f32 to vector<8x32xf32>
    %478 = arith.mulf %477, %476 : vector<8x32xf32>
    %cst_139 = arith.constant 0.707106769 : f32
    %479 = vector.broadcast %cst_139 : f32 to vector<8x32xf32>
    %480 = arith.mulf %476, %479 : vector<8x32xf32>
    %481 = math.erf %480 : vector<8x32xf32>
    %cst_140 = arith.constant 1.000000e+00 : f32
    %482 = vector.broadcast %cst_140 : f32 to vector<8x32xf32>
    %483 = arith.addf %482, %481 : vector<8x32xf32>
    %484 = arith.mulf %478, %483 : vector<8x32xf32>
    %485 = arith.truncf %484 : vector<8x32xf32> to vector<8x32xbf16>
    %cst_141 = arith.constant dense<0.000000e+00> : vector<8x16xf32>
    %486 = tpu.matmul %485, %1, %cst_141 {dimension_numbers = #tpu.dot_dimension_numbers<[1], [0], [0], [1], [0, 0, 1, 1], [], []>} : vector<8x32xbf16>, vector<32x16xbf16>, vector<8x16xf32> -> vector<8x16xf32>
    %487 = arith.addf %486, %11 : vector<8x16xf32>
    %cst_142 = arith.constant 5.000000e-01 : f32
    %488 = vector.broadcast %cst_142 : f32 to vector<8x16xf32>
    %489 = arith.mulf %488, %487 : vector<8x16xf32>
    %cst_143 = arith.constant 0.707106769 : f32
    %490 = vector.broadcast %cst_143 : f32 to vector<8x16xf32>
    %491 = arith.mulf %487, %490 : vector<8x16xf32>
    %492 = math.erf %491 : vector<8x16xf32>
    %cst_144 = arith.constant 1.000000e+00 : f32
    %493 = vector.broadcast %cst_144 : f32 to vector<8x16xf32>
    %494 = arith.addf %493, %492 : vector<8x16xf32>
    %495 = arith.mulf %489, %494 : vector<8x16xf32>
    %496 = arith.truncf %495 : vector<8x16xf32> to vector<8x16xbf16>
    %cst_145 = arith.constant dense<0.000000e+00> : vector<8x32xf32>
    %497 = tpu.matmul %496, %2, %cst_145 {dimension_numbers = #tpu.dot_dimension_numbers<[1], [0], [0], [1], [0, 0, 1, 1], [], []>} : vector<8x16xbf16>, vector<16x32xbf16>, vector<8x32xf32> -> vector<8x32xf32>
    %498 = vector.extract_strided_slice %5 {offsets = [4, 0], sizes = [1, 32], strides = [1, 1]} : vector<8x32xf32> to vector<1x32xf32>
    %499 = vector.broadcast %498 : vector<1x32xf32> to vector<8x32xf32>
    %500 = arith.addf %497, %499 : vector<8x32xf32>
    %cst_146 = arith.constant 5.000000e-01 : f32
    %501 = vector.broadcast %cst_146 : f32 to vector<8x32xf32>
    %502 = arith.mulf %501, %500 : vector<8x32xf32>
    %cst_147 = arith.constant 0.707106769 : f32
    %503 = vector.broadcast %cst_147 : f32 to vector<8x32xf32>
    %504 = arith.mulf %500, %503 : vector<8x32xf32>
    %505 = math.erf %504 : vector<8x32xf32>
    %cst_148 = arith.constant 1.000000e+00 : f32
    %506 = vector.broadcast %cst_148 : f32 to vector<8x32xf32>
    %507 = arith.addf %506, %505 : vector<8x32xf32>
    %508 = arith.mulf %502, %507 : vector<8x32xf32>
    %509 = arith.truncf %508 : vector<8x32xf32> to vector<8x32xbf16>
    %cst_149 = arith.constant dense<0.000000e+00> : vector<8x32xf32>
    %510 = tpu.matmul %509, %3, %cst_149 {dimension_numbers = #tpu.dot_dimension_numbers<[1], [0], [0], [1], [0, 0, 1, 1], [], []>} : vector<8x32xbf16>, vector<32x32xbf16>, vector<8x32xf32> -> vector<8x32xf32>
    %511 = arith.addf %510, %14 : vector<8x32xf32>
    %cst_150 = arith.constant 5.000000e-01 : f32
    %512 = vector.broadcast %cst_150 : f32 to vector<8x32xf32>
    %513 = arith.mulf %512, %511 : vector<8x32xf32>
    %cst_151 = arith.constant 0.707106769 : f32
    %514 = vector.broadcast %cst_151 : f32 to vector<8x32xf32>
    %515 = arith.mulf %511, %514 : vector<8x32xf32>
    %516 = math.erf %515 : vector<8x32xf32>
    %cst_152 = arith.constant 1.000000e+00 : f32
    %517 = vector.broadcast %cst_152 : f32 to vector<8x32xf32>
    %518 = arith.addf %517, %516 : vector<8x32xf32>
    %519 = arith.mulf %513, %518 : vector<8x32xf32>
    %520 = arith.truncf %519 : vector<8x32xf32> to vector<8x32xbf16>
    %cst_153 = arith.constant dense<0.000000e+00> : vector<8x256xf32>
    %521 = tpu.matmul %520, %4, %cst_153 {dimension_numbers = #tpu.dot_dimension_numbers<[1], [0], [0], [1], [0, 0, 1, 1], [], []>} : vector<8x32xbf16>, vector<32x256xbf16>, vector<8x256xf32> -> vector<8x256xf32>
    %522 = vector.extract_strided_slice %521 {offsets = [0, 0], sizes = [8, 4], strides = [1, 1]} : vector<8x256xf32> to vector<8x4xf32>
    %523 = arith.addf %522, %17 : vector<8x4xf32>
    %524 = vector.extract_strided_slice %521 {offsets = [0, 128], sizes = [8, 4], strides = [1, 1]} : vector<8x256xf32> to vector<8x4xf32>
    %525 = arith.addf %524, %20 : vector<8x4xf32>
    %526 = math.tanh %525 : vector<8x4xf32>
    %cst_154 = arith.constant 4.000000e+00 : f32
    %527 = vector.broadcast %cst_154 : f32 to vector<8x4xf32>
    %528 = arith.mulf %526, %527 : vector<8x4xf32>
    %cst_155 = arith.constant 0.000000e+00 : f32
    %529 = vector.broadcast %cst_155 : f32 to vector<8x4xf32>
    %530 = arith.addf %528, %529 : vector<8x4xf32>
    %531 = vector.extract_strided_slice %21 {offsets = [4, 0, 0], sizes = [1, 8, 4], strides = [1, 1, 1]} : vector<8x8x4xf32> to vector<1x8x4xf32>
    %532 = vector.shape_cast %531 : vector<1x8x4xf32> to vector<8x4xf32>
    %cst_156 = arith.constant 5.000000e-01 : f32
    %533 = vector.broadcast %cst_156 : f32 to vector<8x4xf32>
    %534 = arith.mulf %533, %530 : vector<8x4xf32>
    %535 = math.exp %534 : vector<8x4xf32>
    %cst_157 = arith.constant 0.353553385 : f32
    %536 = vector.broadcast %cst_157 : f32 to vector<8x4xf32>
    %537 = arith.mulf %536, %535 : vector<8x4xf32>
    %cst_158 = arith.constant 1.250000e-01 : f32
    %538 = vector.broadcast %cst_158 : f32 to vector<8x4xf32>
    %539 = arith.mulf %538, %523 : vector<8x4xf32>
    %540 = arith.addf %432, %539 : vector<8x4xf32>
    %541 = arith.mulf %537, %532 : vector<8x4xf32>
    %542 = arith.addf %540, %541 : vector<8x4xf32>
    %543 = arith.mulf %532, %532 : vector<8x4xf32>
    %544 = arith.addf %543, %530 : vector<8x4xf32>
    %cst_159 = arith.constant dense<0.000000e+00> : vector<8xf32>
    %545 = vector.multi_reduction <add>, %544, %cst_159 [1] : vector<8x4xf32> to vector<8xf32>
    %546 = vector.shape_cast %545 : vector<8xf32> to vector<8x1xf32>
    %cst_160 = arith.constant -0.966257929 : f32
    %547 = vector.broadcast %cst_160 : f32 to vector<8x1xf32>
    %548 = arith.addf %546, %547 : vector<8x1xf32>
    %cst_161 = arith.constant -5.000000e-01 : f32
    %549 = vector.broadcast %cst_161 : f32 to vector<8x1xf32>
    %550 = arith.mulf %549, %548 : vector<8x1xf32>
    %cst_162 = arith.constant 8.000000e-01 : f32
    %551 = vector.broadcast %cst_162 : f32 to vector<8x4xf32>
    %552 = arith.mulf %542, %551 : vector<8x4xf32>
    %553 = arith.subf %432, %552 : vector<8x4xf32>
    %cst_163 = arith.constant 3.1622777 : f32
    %554 = vector.broadcast %cst_163 : f32 to vector<8x4xf32>
    %555 = arith.mulf %553, %554 : vector<8x4xf32>
    %556 = arith.mulf %555, %555 : vector<8x4xf32>
    %cst_164 = arith.constant dense<0.000000e+00> : vector<8xf32>
    %557 = vector.multi_reduction <add>, %556, %cst_164 [1] : vector<8x4xf32> to vector<8xf32>
    %558 = vector.shape_cast %557 : vector<8xf32> to vector<8x1xf32>
    %cst_165 = arith.constant -1.85883212 : f32
    %559 = vector.broadcast %cst_165 : f32 to vector<8x1xf32>
    %560 = arith.addf %558, %559 : vector<8x1xf32>
    %cst_166 = arith.constant -5.000000e-01 : f32
    %561 = vector.broadcast %cst_166 : f32 to vector<8x1xf32>
    %562 = arith.mulf %561, %560 : vector<8x1xf32>
    %563 = vector.extract_strided_slice %542 {offsets = [0, 0], sizes = [8, 1], strides = [1, 1]} : vector<8x4xf32> to vector<8x1xf32>
    %564 = vector.extract_strided_slice %0 {offsets = [0, 0], sizes = [1, 32], strides = [1, 1]} : vector<4x32xf32> to vector<1x32xf32>
    %565 = vector.broadcast %563 : vector<8x1xf32> to vector<8x32xf32>
    %566 = vector.broadcast %564 : vector<1x32xf32> to vector<8x32xf32>
    %567 = arith.mulf %565, %566 : vector<8x32xf32>
    %568 = arith.addf %8, %567 : vector<8x32xf32>
    %569 = vector.extract_strided_slice %542 {offsets = [0, 1], sizes = [8, 1], strides = [1, 1]} : vector<8x4xf32> to vector<8x1xf32>
    %570 = vector.extract_strided_slice %0 {offsets = [1, 0], sizes = [1, 32], strides = [1, 1]} : vector<4x32xf32> to vector<1x32xf32>
    %571 = vector.broadcast %569 : vector<8x1xf32> to vector<8x32xf32>
    %572 = vector.broadcast %570 : vector<1x32xf32> to vector<8x32xf32>
    %573 = arith.mulf %571, %572 : vector<8x32xf32>
    %574 = arith.addf %568, %573 : vector<8x32xf32>
    %575 = vector.extract_strided_slice %542 {offsets = [0, 2], sizes = [8, 1], strides = [1, 1]} : vector<8x4xf32> to vector<8x1xf32>
    %576 = vector.extract_strided_slice %0 {offsets = [2, 0], sizes = [1, 32], strides = [1, 1]} : vector<4x32xf32> to vector<1x32xf32>
    %577 = vector.broadcast %575 : vector<8x1xf32> to vector<8x32xf32>
    %578 = vector.broadcast %576 : vector<1x32xf32> to vector<8x32xf32>
    %579 = arith.mulf %577, %578 : vector<8x32xf32>
    %580 = arith.addf %574, %579 : vector<8x32xf32>
    %581 = vector.extract_strided_slice %542 {offsets = [0, 3], sizes = [8, 1], strides = [1, 1]} : vector<8x4xf32> to vector<8x1xf32>
    %582 = vector.extract_strided_slice %0 {offsets = [3, 0], sizes = [1, 32], strides = [1, 1]} : vector<4x32xf32> to vector<1x32xf32>
    %583 = vector.broadcast %581 : vector<8x1xf32> to vector<8x32xf32>
    %584 = vector.broadcast %582 : vector<1x32xf32> to vector<8x32xf32>
    %585 = arith.mulf %583, %584 : vector<8x32xf32>
    %586 = arith.addf %580, %585 : vector<8x32xf32>
    %cst_167 = arith.constant 5.000000e-01 : f32
    %587 = vector.broadcast %cst_167 : f32 to vector<8x32xf32>
    %588 = arith.mulf %587, %586 : vector<8x32xf32>
    %cst_168 = arith.constant 0.707106769 : f32
    %589 = vector.broadcast %cst_168 : f32 to vector<8x32xf32>
    %590 = arith.mulf %586, %589 : vector<8x32xf32>
    %591 = math.erf %590 : vector<8x32xf32>
    %cst_169 = arith.constant 1.000000e+00 : f32
    %592 = vector.broadcast %cst_169 : f32 to vector<8x32xf32>
    %593 = arith.addf %592, %591 : vector<8x32xf32>
    %594 = arith.mulf %588, %593 : vector<8x32xf32>
    %595 = arith.truncf %594 : vector<8x32xf32> to vector<8x32xbf16>
    %cst_170 = arith.constant dense<0.000000e+00> : vector<8x16xf32>
    %596 = tpu.matmul %595, %1, %cst_170 {dimension_numbers = #tpu.dot_dimension_numbers<[1], [0], [0], [1], [0, 0, 1, 1], [], []>} : vector<8x32xbf16>, vector<32x16xbf16>, vector<8x16xf32> -> vector<8x16xf32>
    %597 = arith.addf %596, %11 : vector<8x16xf32>
    %cst_171 = arith.constant 5.000000e-01 : f32
    %598 = vector.broadcast %cst_171 : f32 to vector<8x16xf32>
    %599 = arith.mulf %598, %597 : vector<8x16xf32>
    %cst_172 = arith.constant 0.707106769 : f32
    %600 = vector.broadcast %cst_172 : f32 to vector<8x16xf32>
    %601 = arith.mulf %597, %600 : vector<8x16xf32>
    %602 = math.erf %601 : vector<8x16xf32>
    %cst_173 = arith.constant 1.000000e+00 : f32
    %603 = vector.broadcast %cst_173 : f32 to vector<8x16xf32>
    %604 = arith.addf %603, %602 : vector<8x16xf32>
    %605 = arith.mulf %599, %604 : vector<8x16xf32>
    %606 = arith.truncf %605 : vector<8x16xf32> to vector<8x16xbf16>
    %cst_174 = arith.constant dense<0.000000e+00> : vector<8x32xf32>
    %607 = tpu.matmul %606, %2, %cst_174 {dimension_numbers = #tpu.dot_dimension_numbers<[1], [0], [0], [1], [0, 0, 1, 1], [], []>} : vector<8x16xbf16>, vector<16x32xbf16>, vector<8x32xf32> -> vector<8x32xf32>
    %608 = vector.extract_strided_slice %5 {offsets = [5, 0], sizes = [1, 32], strides = [1, 1]} : vector<8x32xf32> to vector<1x32xf32>
    %609 = vector.broadcast %608 : vector<1x32xf32> to vector<8x32xf32>
    %610 = arith.addf %607, %609 : vector<8x32xf32>
    %cst_175 = arith.constant 5.000000e-01 : f32
    %611 = vector.broadcast %cst_175 : f32 to vector<8x32xf32>
    %612 = arith.mulf %611, %610 : vector<8x32xf32>
    %cst_176 = arith.constant 0.707106769 : f32
    %613 = vector.broadcast %cst_176 : f32 to vector<8x32xf32>
    %614 = arith.mulf %610, %613 : vector<8x32xf32>
    %615 = math.erf %614 : vector<8x32xf32>
    %cst_177 = arith.constant 1.000000e+00 : f32
    %616 = vector.broadcast %cst_177 : f32 to vector<8x32xf32>
    %617 = arith.addf %616, %615 : vector<8x32xf32>
    %618 = arith.mulf %612, %617 : vector<8x32xf32>
    %619 = arith.truncf %618 : vector<8x32xf32> to vector<8x32xbf16>
    %cst_178 = arith.constant dense<0.000000e+00> : vector<8x32xf32>
    %620 = tpu.matmul %619, %3, %cst_178 {dimension_numbers = #tpu.dot_dimension_numbers<[1], [0], [0], [1], [0, 0, 1, 1], [], []>} : vector<8x32xbf16>, vector<32x32xbf16>, vector<8x32xf32> -> vector<8x32xf32>
    %621 = arith.addf %620, %14 : vector<8x32xf32>
    %cst_179 = arith.constant 5.000000e-01 : f32
    %622 = vector.broadcast %cst_179 : f32 to vector<8x32xf32>
    %623 = arith.mulf %622, %621 : vector<8x32xf32>
    %cst_180 = arith.constant 0.707106769 : f32
    %624 = vector.broadcast %cst_180 : f32 to vector<8x32xf32>
    %625 = arith.mulf %621, %624 : vector<8x32xf32>
    %626 = math.erf %625 : vector<8x32xf32>
    %cst_181 = arith.constant 1.000000e+00 : f32
    %627 = vector.broadcast %cst_181 : f32 to vector<8x32xf32>
    %628 = arith.addf %627, %626 : vector<8x32xf32>
    %629 = arith.mulf %623, %628 : vector<8x32xf32>
    %630 = arith.truncf %629 : vector<8x32xf32> to vector<8x32xbf16>
    %cst_182 = arith.constant dense<0.000000e+00> : vector<8x256xf32>
    %631 = tpu.matmul %630, %4, %cst_182 {dimension_numbers = #tpu.dot_dimension_numbers<[1], [0], [0], [1], [0, 0, 1, 1], [], []>} : vector<8x32xbf16>, vector<32x256xbf16>, vector<8x256xf32> -> vector<8x256xf32>
    %632 = vector.extract_strided_slice %631 {offsets = [0, 0], sizes = [8, 4], strides = [1, 1]} : vector<8x256xf32> to vector<8x4xf32>
    %633 = arith.addf %632, %17 : vector<8x4xf32>
    %634 = vector.extract_strided_slice %631 {offsets = [0, 128], sizes = [8, 4], strides = [1, 1]} : vector<8x256xf32> to vector<8x4xf32>
    %635 = arith.addf %634, %20 : vector<8x4xf32>
    %636 = math.tanh %635 : vector<8x4xf32>
    %cst_183 = arith.constant 4.000000e+00 : f32
    %637 = vector.broadcast %cst_183 : f32 to vector<8x4xf32>
    %638 = arith.mulf %636, %637 : vector<8x4xf32>
    %cst_184 = arith.constant 0.000000e+00 : f32
    %639 = vector.broadcast %cst_184 : f32 to vector<8x4xf32>
    %640 = arith.addf %638, %639 : vector<8x4xf32>
    %641 = vector.extract_strided_slice %21 {offsets = [5, 0, 0], sizes = [1, 8, 4], strides = [1, 1, 1]} : vector<8x8x4xf32> to vector<1x8x4xf32>
    %642 = vector.shape_cast %641 : vector<1x8x4xf32> to vector<8x4xf32>
    %cst_185 = arith.constant 5.000000e-01 : f32
    %643 = vector.broadcast %cst_185 : f32 to vector<8x4xf32>
    %644 = arith.mulf %643, %640 : vector<8x4xf32>
    %645 = math.exp %644 : vector<8x4xf32>
    %cst_186 = arith.constant 0.353553385 : f32
    %646 = vector.broadcast %cst_186 : f32 to vector<8x4xf32>
    %647 = arith.mulf %646, %645 : vector<8x4xf32>
    %cst_187 = arith.constant 1.250000e-01 : f32
    %648 = vector.broadcast %cst_187 : f32 to vector<8x4xf32>
    %649 = arith.mulf %648, %633 : vector<8x4xf32>
    %650 = arith.addf %542, %649 : vector<8x4xf32>
    %651 = arith.mulf %647, %642 : vector<8x4xf32>
    %652 = arith.addf %650, %651 : vector<8x4xf32>
    %653 = arith.mulf %642, %642 : vector<8x4xf32>
    %654 = arith.addf %653, %640 : vector<8x4xf32>
    %cst_188 = arith.constant dense<0.000000e+00> : vector<8xf32>
    %655 = vector.multi_reduction <add>, %654, %cst_188 [1] : vector<8x4xf32> to vector<8xf32>
    %656 = vector.shape_cast %655 : vector<8xf32> to vector<8x1xf32>
    %cst_189 = arith.constant -0.966257929 : f32
    %657 = vector.broadcast %cst_189 : f32 to vector<8x1xf32>
    %658 = arith.addf %656, %657 : vector<8x1xf32>
    %cst_190 = arith.constant -5.000000e-01 : f32
    %659 = vector.broadcast %cst_190 : f32 to vector<8x1xf32>
    %660 = arith.mulf %659, %658 : vector<8x1xf32>
    %cst_191 = arith.constant 0.833333313 : f32
    %661 = vector.broadcast %cst_191 : f32 to vector<8x4xf32>
    %662 = arith.mulf %652, %661 : vector<8x4xf32>
    %663 = arith.subf %542, %662 : vector<8x4xf32>
    %cst_192 = arith.constant 3.09838676 : f32
    %664 = vector.broadcast %cst_192 : f32 to vector<8x4xf32>
    %665 = arith.mulf %663, %664 : vector<8x4xf32>
    %666 = arith.mulf %665, %665 : vector<8x4xf32>
    %cst_193 = arith.constant dense<0.000000e+00> : vector<8xf32>
    %667 = vector.multi_reduction <add>, %666, %cst_193 [1] : vector<8x4xf32> to vector<8xf32>
    %668 = vector.shape_cast %667 : vector<8xf32> to vector<8x1xf32>
    %cst_194 = arith.constant -1.69554412 : f32
    %669 = vector.broadcast %cst_194 : f32 to vector<8x1xf32>
    %670 = arith.addf %668, %669 : vector<8x1xf32>
    %cst_195 = arith.constant -5.000000e-01 : f32
    %671 = vector.broadcast %cst_195 : f32 to vector<8x1xf32>
    %672 = arith.mulf %671, %670 : vector<8x1xf32>
    %673 = vector.extract_strided_slice %652 {offsets = [0, 0], sizes = [8, 1], strides = [1, 1]} : vector<8x4xf32> to vector<8x1xf32>
    %674 = vector.extract_strided_slice %0 {offsets = [0, 0], sizes = [1, 32], strides = [1, 1]} : vector<4x32xf32> to vector<1x32xf32>
    %675 = vector.broadcast %673 : vector<8x1xf32> to vector<8x32xf32>
    %676 = vector.broadcast %674 : vector<1x32xf32> to vector<8x32xf32>
    %677 = arith.mulf %675, %676 : vector<8x32xf32>
    %678 = arith.addf %8, %677 : vector<8x32xf32>
    %679 = vector.extract_strided_slice %652 {offsets = [0, 1], sizes = [8, 1], strides = [1, 1]} : vector<8x4xf32> to vector<8x1xf32>
    %680 = vector.extract_strided_slice %0 {offsets = [1, 0], sizes = [1, 32], strides = [1, 1]} : vector<4x32xf32> to vector<1x32xf32>
    %681 = vector.broadcast %679 : vector<8x1xf32> to vector<8x32xf32>
    %682 = vector.broadcast %680 : vector<1x32xf32> to vector<8x32xf32>
    %683 = arith.mulf %681, %682 : vector<8x32xf32>
    %684 = arith.addf %678, %683 : vector<8x32xf32>
    %685 = vector.extract_strided_slice %652 {offsets = [0, 2], sizes = [8, 1], strides = [1, 1]} : vector<8x4xf32> to vector<8x1xf32>
    %686 = vector.extract_strided_slice %0 {offsets = [2, 0], sizes = [1, 32], strides = [1, 1]} : vector<4x32xf32> to vector<1x32xf32>
    %687 = vector.broadcast %685 : vector<8x1xf32> to vector<8x32xf32>
    %688 = vector.broadcast %686 : vector<1x32xf32> to vector<8x32xf32>
    %689 = arith.mulf %687, %688 : vector<8x32xf32>
    %690 = arith.addf %684, %689 : vector<8x32xf32>
    %691 = vector.extract_strided_slice %652 {offsets = [0, 3], sizes = [8, 1], strides = [1, 1]} : vector<8x4xf32> to vector<8x1xf32>
    %692 = vector.extract_strided_slice %0 {offsets = [3, 0], sizes = [1, 32], strides = [1, 1]} : vector<4x32xf32> to vector<1x32xf32>
    %693 = vector.broadcast %691 : vector<8x1xf32> to vector<8x32xf32>
    %694 = vector.broadcast %692 : vector<1x32xf32> to vector<8x32xf32>
    %695 = arith.mulf %693, %694 : vector<8x32xf32>
    %696 = arith.addf %690, %695 : vector<8x32xf32>
    %cst_196 = arith.constant 5.000000e-01 : f32
    %697 = vector.broadcast %cst_196 : f32 to vector<8x32xf32>
    %698 = arith.mulf %697, %696 : vector<8x32xf32>
    %cst_197 = arith.constant 0.707106769 : f32
    %699 = vector.broadcast %cst_197 : f32 to vector<8x32xf32>
    %700 = arith.mulf %696, %699 : vector<8x32xf32>
    %701 = math.erf %700 : vector<8x32xf32>
    %cst_198 = arith.constant 1.000000e+00 : f32
    %702 = vector.broadcast %cst_198 : f32 to vector<8x32xf32>
    %703 = arith.addf %702, %701 : vector<8x32xf32>
    %704 = arith.mulf %698, %703 : vector<8x32xf32>
    %705 = arith.truncf %704 : vector<8x32xf32> to vector<8x32xbf16>
    %cst_199 = arith.constant dense<0.000000e+00> : vector<8x16xf32>
    %706 = tpu.matmul %705, %1, %cst_199 {dimension_numbers = #tpu.dot_dimension_numbers<[1], [0], [0], [1], [0, 0, 1, 1], [], []>} : vector<8x32xbf16>, vector<32x16xbf16>, vector<8x16xf32> -> vector<8x16xf32>
    %707 = arith.addf %706, %11 : vector<8x16xf32>
    %cst_200 = arith.constant 5.000000e-01 : f32
    %708 = vector.broadcast %cst_200 : f32 to vector<8x16xf32>
    %709 = arith.mulf %708, %707 : vector<8x16xf32>
    %cst_201 = arith.constant 0.707106769 : f32
    %710 = vector.broadcast %cst_201 : f32 to vector<8x16xf32>
    %711 = arith.mulf %707, %710 : vector<8x16xf32>
    %712 = math.erf %711 : vector<8x16xf32>
    %cst_202 = arith.constant 1.000000e+00 : f32
    %713 = vector.broadcast %cst_202 : f32 to vector<8x16xf32>
    %714 = arith.addf %713, %712 : vector<8x16xf32>
    %715 = arith.mulf %709, %714 : vector<8x16xf32>
    %716 = arith.truncf %715 : vector<8x16xf32> to vector<8x16xbf16>
    %cst_203 = arith.constant dense<0.000000e+00> : vector<8x32xf32>
    %717 = tpu.matmul %716, %2, %cst_203 {dimension_numbers = #tpu.dot_dimension_numbers<[1], [0], [0], [1], [0, 0, 1, 1], [], []>} : vector<8x16xbf16>, vector<16x32xbf16>, vector<8x32xf32> -> vector<8x32xf32>
    %718 = vector.extract_strided_slice %5 {offsets = [6, 0], sizes = [1, 32], strides = [1, 1]} : vector<8x32xf32> to vector<1x32xf32>
    %719 = vector.broadcast %718 : vector<1x32xf32> to vector<8x32xf32>
    %720 = arith.addf %717, %719 : vector<8x32xf32>
    %cst_204 = arith.constant 5.000000e-01 : f32
    %721 = vector.broadcast %cst_204 : f32 to vector<8x32xf32>
    %722 = arith.mulf %721, %720 : vector<8x32xf32>
    %cst_205 = arith.constant 0.707106769 : f32
    %723 = vector.broadcast %cst_205 : f32 to vector<8x32xf32>
    %724 = arith.mulf %720, %723 : vector<8x32xf32>
    %725 = math.erf %724 : vector<8x32xf32>
    %cst_206 = arith.constant 1.000000e+00 : f32
    %726 = vector.broadcast %cst_206 : f32 to vector<8x32xf32>
    %727 = arith.addf %726, %725 : vector<8x32xf32>
    %728 = arith.mulf %722, %727 : vector<8x32xf32>
    %729 = arith.truncf %728 : vector<8x32xf32> to vector<8x32xbf16>
    %cst_207 = arith.constant dense<0.000000e+00> : vector<8x32xf32>
    %730 = tpu.matmul %729, %3, %cst_207 {dimension_numbers = #tpu.dot_dimension_numbers<[1], [0], [0], [1], [0, 0, 1, 1], [], []>} : vector<8x32xbf16>, vector<32x32xbf16>, vector<8x32xf32> -> vector<8x32xf32>
    %731 = arith.addf %730, %14 : vector<8x32xf32>
    %cst_208 = arith.constant 5.000000e-01 : f32
    %732 = vector.broadcast %cst_208 : f32 to vector<8x32xf32>
    %733 = arith.mulf %732, %731 : vector<8x32xf32>
    %cst_209 = arith.constant 0.707106769 : f32
    %734 = vector.broadcast %cst_209 : f32 to vector<8x32xf32>
    %735 = arith.mulf %731, %734 : vector<8x32xf32>
    %736 = math.erf %735 : vector<8x32xf32>
    %cst_210 = arith.constant 1.000000e+00 : f32
    %737 = vector.broadcast %cst_210 : f32 to vector<8x32xf32>
    %738 = arith.addf %737, %736 : vector<8x32xf32>
    %739 = arith.mulf %733, %738 : vector<8x32xf32>
    %740 = arith.truncf %739 : vector<8x32xf32> to vector<8x32xbf16>
    %cst_211 = arith.constant dense<0.000000e+00> : vector<8x256xf32>
    %741 = tpu.matmul %740, %4, %cst_211 {dimension_numbers = #tpu.dot_dimension_numbers<[1], [0], [0], [1], [0, 0, 1, 1], [], []>} : vector<8x32xbf16>, vector<32x256xbf16>, vector<8x256xf32> -> vector<8x256xf32>
    %742 = vector.extract_strided_slice %741 {offsets = [0, 0], sizes = [8, 4], strides = [1, 1]} : vector<8x256xf32> to vector<8x4xf32>
    %743 = arith.addf %742, %17 : vector<8x4xf32>
    %744 = vector.extract_strided_slice %741 {offsets = [0, 128], sizes = [8, 4], strides = [1, 1]} : vector<8x256xf32> to vector<8x4xf32>
    %745 = arith.addf %744, %20 : vector<8x4xf32>
    %746 = math.tanh %745 : vector<8x4xf32>
    %cst_212 = arith.constant 4.000000e+00 : f32
    %747 = vector.broadcast %cst_212 : f32 to vector<8x4xf32>
    %748 = arith.mulf %746, %747 : vector<8x4xf32>
    %cst_213 = arith.constant 0.000000e+00 : f32
    %749 = vector.broadcast %cst_213 : f32 to vector<8x4xf32>
    %750 = arith.addf %748, %749 : vector<8x4xf32>
    %751 = vector.extract_strided_slice %21 {offsets = [6, 0, 0], sizes = [1, 8, 4], strides = [1, 1, 1]} : vector<8x8x4xf32> to vector<1x8x4xf32>
    %752 = vector.shape_cast %751 : vector<1x8x4xf32> to vector<8x4xf32>
    %cst_214 = arith.constant 5.000000e-01 : f32
    %753 = vector.broadcast %cst_214 : f32 to vector<8x4xf32>
    %754 = arith.mulf %753, %750 : vector<8x4xf32>
    %755 = math.exp %754 : vector<8x4xf32>
    %cst_215 = arith.constant 0.353553385 : f32
    %756 = vector.broadcast %cst_215 : f32 to vector<8x4xf32>
    %757 = arith.mulf %756, %755 : vector<8x4xf32>
    %cst_216 = arith.constant 1.250000e-01 : f32
    %758 = vector.broadcast %cst_216 : f32 to vector<8x4xf32>
    %759 = arith.mulf %758, %743 : vector<8x4xf32>
    %760 = arith.addf %652, %759 : vector<8x4xf32>
    %761 = arith.mulf %757, %752 : vector<8x4xf32>
    %762 = arith.addf %760, %761 : vector<8x4xf32>
    %763 = arith.mulf %752, %752 : vector<8x4xf32>
    %764 = arith.addf %763, %750 : vector<8x4xf32>
    %cst_217 = arith.constant dense<0.000000e+00> : vector<8xf32>
    %765 = vector.multi_reduction <add>, %764, %cst_217 [1] : vector<8x4xf32> to vector<8xf32>
    %766 = vector.shape_cast %765 : vector<8xf32> to vector<8x1xf32>
    %cst_218 = arith.constant -0.966257929 : f32
    %767 = vector.broadcast %cst_218 : f32 to vector<8x1xf32>
    %768 = arith.addf %766, %767 : vector<8x1xf32>
    %cst_219 = arith.constant -5.000000e-01 : f32
    %769 = vector.broadcast %cst_219 : f32 to vector<8x1xf32>
    %770 = arith.mulf %769, %768 : vector<8x1xf32>
    %cst_220 = arith.constant 0.857142865 : f32
    %771 = vector.broadcast %cst_220 : f32 to vector<8x4xf32>
    %772 = arith.mulf %762, %771 : vector<8x4xf32>
    %773 = arith.subf %652, %772 : vector<8x4xf32>
    %cst_221 = arith.constant 3.05505037 : f32
    %774 = vector.broadcast %cst_221 : f32 to vector<8x4xf32>
    %775 = arith.mulf %773, %774 : vector<8x4xf32>
    %776 = arith.mulf %775, %775 : vector<8x4xf32>
    %cst_222 = arith.constant dense<0.000000e+00> : vector<8xf32>
    %777 = vector.multi_reduction <add>, %776, %cst_222 [1] : vector<8x4xf32> to vector<8xf32>
    %778 = vector.shape_cast %777 : vector<8xf32> to vector<8x1xf32>
    %cst_223 = arith.constant -1.58286059 : f32
    %779 = vector.broadcast %cst_223 : f32 to vector<8x1xf32>
    %780 = arith.addf %778, %779 : vector<8x1xf32>
    %cst_224 = arith.constant -5.000000e-01 : f32
    %781 = vector.broadcast %cst_224 : f32 to vector<8x1xf32>
    %782 = arith.mulf %781, %780 : vector<8x1xf32>
    %783 = vector.extract_strided_slice %762 {offsets = [0, 0], sizes = [8, 1], strides = [1, 1]} : vector<8x4xf32> to vector<8x1xf32>
    %784 = vector.extract_strided_slice %0 {offsets = [0, 0], sizes = [1, 32], strides = [1, 1]} : vector<4x32xf32> to vector<1x32xf32>
    %785 = vector.broadcast %783 : vector<8x1xf32> to vector<8x32xf32>
    %786 = vector.broadcast %784 : vector<1x32xf32> to vector<8x32xf32>
    %787 = arith.mulf %785, %786 : vector<8x32xf32>
    %788 = arith.addf %8, %787 : vector<8x32xf32>
    %789 = vector.extract_strided_slice %762 {offsets = [0, 1], sizes = [8, 1], strides = [1, 1]} : vector<8x4xf32> to vector<8x1xf32>
    %790 = vector.extract_strided_slice %0 {offsets = [1, 0], sizes = [1, 32], strides = [1, 1]} : vector<4x32xf32> to vector<1x32xf32>
    %791 = vector.broadcast %789 : vector<8x1xf32> to vector<8x32xf32>
    %792 = vector.broadcast %790 : vector<1x32xf32> to vector<8x32xf32>
    %793 = arith.mulf %791, %792 : vector<8x32xf32>
    %794 = arith.addf %788, %793 : vector<8x32xf32>
    %795 = vector.extract_strided_slice %762 {offsets = [0, 2], sizes = [8, 1], strides = [1, 1]} : vector<8x4xf32> to vector<8x1xf32>
    %796 = vector.extract_strided_slice %0 {offsets = [2, 0], sizes = [1, 32], strides = [1, 1]} : vector<4x32xf32> to vector<1x32xf32>
    %797 = vector.broadcast %795 : vector<8x1xf32> to vector<8x32xf32>
    %798 = vector.broadcast %796 : vector<1x32xf32> to vector<8x32xf32>
    %799 = arith.mulf %797, %798 : vector<8x32xf32>
    %800 = arith.addf %794, %799 : vector<8x32xf32>
    %801 = vector.extract_strided_slice %762 {offsets = [0, 3], sizes = [8, 1], strides = [1, 1]} : vector<8x4xf32> to vector<8x1xf32>
    %802 = vector.extract_strided_slice %0 {offsets = [3, 0], sizes = [1, 32], strides = [1, 1]} : vector<4x32xf32> to vector<1x32xf32>
    %803 = vector.broadcast %801 : vector<8x1xf32> to vector<8x32xf32>
    %804 = vector.broadcast %802 : vector<1x32xf32> to vector<8x32xf32>
    %805 = arith.mulf %803, %804 : vector<8x32xf32>
    %806 = arith.addf %800, %805 : vector<8x32xf32>
    %cst_225 = arith.constant 5.000000e-01 : f32
    %807 = vector.broadcast %cst_225 : f32 to vector<8x32xf32>
    %808 = arith.mulf %807, %806 : vector<8x32xf32>
    %cst_226 = arith.constant 0.707106769 : f32
    %809 = vector.broadcast %cst_226 : f32 to vector<8x32xf32>
    %810 = arith.mulf %806, %809 : vector<8x32xf32>
    %811 = math.erf %810 : vector<8x32xf32>
    %cst_227 = arith.constant 1.000000e+00 : f32
    %812 = vector.broadcast %cst_227 : f32 to vector<8x32xf32>
    %813 = arith.addf %812, %811 : vector<8x32xf32>
    %814 = arith.mulf %808, %813 : vector<8x32xf32>
    %815 = arith.truncf %814 : vector<8x32xf32> to vector<8x32xbf16>
    %cst_228 = arith.constant dense<0.000000e+00> : vector<8x16xf32>
    %816 = tpu.matmul %815, %1, %cst_228 {dimension_numbers = #tpu.dot_dimension_numbers<[1], [0], [0], [1], [0, 0, 1, 1], [], []>} : vector<8x32xbf16>, vector<32x16xbf16>, vector<8x16xf32> -> vector<8x16xf32>
    %817 = arith.addf %816, %11 : vector<8x16xf32>
    %cst_229 = arith.constant 5.000000e-01 : f32
    %818 = vector.broadcast %cst_229 : f32 to vector<8x16xf32>
    %819 = arith.mulf %818, %817 : vector<8x16xf32>
    %cst_230 = arith.constant 0.707106769 : f32
    %820 = vector.broadcast %cst_230 : f32 to vector<8x16xf32>
    %821 = arith.mulf %817, %820 : vector<8x16xf32>
    %822 = math.erf %821 : vector<8x16xf32>
    %cst_231 = arith.constant 1.000000e+00 : f32
    %823 = vector.broadcast %cst_231 : f32 to vector<8x16xf32>
    %824 = arith.addf %823, %822 : vector<8x16xf32>
    %825 = arith.mulf %819, %824 : vector<8x16xf32>
    %826 = arith.truncf %825 : vector<8x16xf32> to vector<8x16xbf16>
    %cst_232 = arith.constant dense<0.000000e+00> : vector<8x32xf32>
    %827 = tpu.matmul %826, %2, %cst_232 {dimension_numbers = #tpu.dot_dimension_numbers<[1], [0], [0], [1], [0, 0, 1, 1], [], []>} : vector<8x16xbf16>, vector<16x32xbf16>, vector<8x32xf32> -> vector<8x32xf32>
    %828 = vector.extract_strided_slice %5 {offsets = [7, 0], sizes = [1, 32], strides = [1, 1]} : vector<8x32xf32> to vector<1x32xf32>
    %829 = vector.broadcast %828 : vector<1x32xf32> to vector<8x32xf32>
    %830 = arith.addf %827, %829 : vector<8x32xf32>
    %cst_233 = arith.constant 5.000000e-01 : f32
    %831 = vector.broadcast %cst_233 : f32 to vector<8x32xf32>
    %832 = arith.mulf %831, %830 : vector<8x32xf32>
    %cst_234 = arith.constant 0.707106769 : f32
    %833 = vector.broadcast %cst_234 : f32 to vector<8x32xf32>
    %834 = arith.mulf %830, %833 : vector<8x32xf32>
    %835 = math.erf %834 : vector<8x32xf32>
    %cst_235 = arith.constant 1.000000e+00 : f32
    %836 = vector.broadcast %cst_235 : f32 to vector<8x32xf32>
    %837 = arith.addf %836, %835 : vector<8x32xf32>
    %838 = arith.mulf %832, %837 : vector<8x32xf32>
    %839 = arith.truncf %838 : vector<8x32xf32> to vector<8x32xbf16>
    %cst_236 = arith.constant dense<0.000000e+00> : vector<8x32xf32>
    %840 = tpu.matmul %839, %3, %cst_236 {dimension_numbers = #tpu.dot_dimension_numbers<[1], [0], [0], [1], [0, 0, 1, 1], [], []>} : vector<8x32xbf16>, vector<32x32xbf16>, vector<8x32xf32> -> vector<8x32xf32>
    %841 = arith.addf %840, %14 : vector<8x32xf32>
    %cst_237 = arith.constant 5.000000e-01 : f32
    %842 = vector.broadcast %cst_237 : f32 to vector<8x32xf32>
    %843 = arith.mulf %842, %841 : vector<8x32xf32>
    %cst_238 = arith.constant 0.707106769 : f32
    %844 = vector.broadcast %cst_238 : f32 to vector<8x32xf32>
    %845 = arith.mulf %841, %844 : vector<8x32xf32>
    %846 = math.erf %845 : vector<8x32xf32>
    %cst_239 = arith.constant 1.000000e+00 : f32
    %847 = vector.broadcast %cst_239 : f32 to vector<8x32xf32>
    %848 = arith.addf %847, %846 : vector<8x32xf32>
    %849 = arith.mulf %843, %848 : vector<8x32xf32>
    %850 = arith.truncf %849 : vector<8x32xf32> to vector<8x32xbf16>
    %cst_240 = arith.constant dense<0.000000e+00> : vector<8x256xf32>
    %851 = tpu.matmul %850, %4, %cst_240 {dimension_numbers = #tpu.dot_dimension_numbers<[1], [0], [0], [1], [0, 0, 1, 1], [], []>} : vector<8x32xbf16>, vector<32x256xbf16>, vector<8x256xf32> -> vector<8x256xf32>
    %852 = vector.extract_strided_slice %851 {offsets = [0, 0], sizes = [8, 4], strides = [1, 1]} : vector<8x256xf32> to vector<8x4xf32>
    %853 = arith.addf %852, %17 : vector<8x4xf32>
    %854 = vector.extract_strided_slice %851 {offsets = [0, 128], sizes = [8, 4], strides = [1, 1]} : vector<8x256xf32> to vector<8x4xf32>
    %855 = arith.addf %854, %20 : vector<8x4xf32>
    %856 = math.tanh %855 : vector<8x4xf32>
    %cst_241 = arith.constant 4.000000e+00 : f32
    %857 = vector.broadcast %cst_241 : f32 to vector<8x4xf32>
    %858 = arith.mulf %856, %857 : vector<8x4xf32>
    %cst_242 = arith.constant 0.000000e+00 : f32
    %859 = vector.broadcast %cst_242 : f32 to vector<8x4xf32>
    %860 = arith.addf %858, %859 : vector<8x4xf32>
    %861 = vector.extract_strided_slice %21 {offsets = [7, 0, 0], sizes = [1, 8, 4], strides = [1, 1, 1]} : vector<8x8x4xf32> to vector<1x8x4xf32>
    %862 = vector.shape_cast %861 : vector<1x8x4xf32> to vector<8x4xf32>
    %cst_243 = arith.constant 5.000000e-01 : f32
    %863 = vector.broadcast %cst_243 : f32 to vector<8x4xf32>
    %864 = arith.mulf %863, %860 : vector<8x4xf32>
    %865 = math.exp %864 : vector<8x4xf32>
    %cst_244 = arith.constant 0.353553385 : f32
    %866 = vector.broadcast %cst_244 : f32 to vector<8x4xf32>
    %867 = arith.mulf %866, %865 : vector<8x4xf32>
    %cst_245 = arith.constant 1.250000e-01 : f32
    %868 = vector.broadcast %cst_245 : f32 to vector<8x4xf32>
    %869 = arith.mulf %868, %853 : vector<8x4xf32>
    %870 = arith.addf %762, %869 : vector<8x4xf32>
    %871 = arith.mulf %867, %862 : vector<8x4xf32>
    %872 = arith.addf %870, %871 : vector<8x4xf32>
    %873 = arith.mulf %862, %862 : vector<8x4xf32>
    %874 = arith.addf %873, %860 : vector<8x4xf32>
    %cst_246 = arith.constant dense<0.000000e+00> : vector<8xf32>
    %875 = vector.multi_reduction <add>, %874, %cst_246 [1] : vector<8x4xf32> to vector<8xf32>
    %876 = vector.shape_cast %875 : vector<8xf32> to vector<8x1xf32>
    %cst_247 = arith.constant -0.966257929 : f32
    %877 = vector.broadcast %cst_247 : f32 to vector<8x1xf32>
    %878 = arith.addf %876, %877 : vector<8x1xf32>
    %cst_248 = arith.constant -5.000000e-01 : f32
    %879 = vector.broadcast %cst_248 : f32 to vector<8x1xf32>
    %880 = arith.mulf %879, %878 : vector<8x1xf32>
    %cst_249 = arith.constant 8.750000e-01 : f32
    %881 = vector.broadcast %cst_249 : f32 to vector<8x4xf32>
    %882 = arith.mulf %872, %881 : vector<8x4xf32>
    %883 = arith.subf %762, %882 : vector<8x4xf32>
    %cst_250 = arith.constant 3.02371573 : f32
    %884 = vector.broadcast %cst_250 : f32 to vector<8x4xf32>
    %885 = arith.mulf %883, %884 : vector<8x4xf32>
    %886 = arith.mulf %885, %885 : vector<8x4xf32>
    %cst_251 = arith.constant dense<0.000000e+00> : vector<8xf32>
    %887 = vector.multi_reduction <add>, %886, %cst_251 [1] : vector<8x4xf32> to vector<8xf32>
    %888 = vector.shape_cast %887 : vector<8xf32> to vector<8x1xf32>
    %cst_252 = arith.constant -1.5003835 : f32
    %889 = vector.broadcast %cst_252 : f32 to vector<8x1xf32>
    %890 = arith.addf %888, %889 : vector<8x1xf32>
    %cst_253 = arith.constant -5.000000e-01 : f32
    %891 = vector.broadcast %cst_253 : f32 to vector<8x1xf32>
    %892 = arith.mulf %891, %890 : vector<8x1xf32>
    %893 = vector.shape_cast %23 : vector<8x4xf32> to vector<1x8x4xf32>
    %894 = vector.shape_cast %114 : vector<8x4xf32> to vector<1x8x4xf32>
    %895 = vector.shape_cast %212 : vector<8x4xf32> to vector<1x8x4xf32>
    %896 = vector.shape_cast %322 : vector<8x4xf32> to vector<1x8x4xf32>
    %897 = vector.shape_cast %432 : vector<8x4xf32> to vector<1x8x4xf32>
    %898 = vector.shape_cast %542 : vector<8x4xf32> to vector<1x8x4xf32>
    %899 = vector.shape_cast %652 : vector<8x4xf32> to vector<1x8x4xf32>
    %900 = vector.shape_cast %762 : vector<8x4xf32> to vector<1x8x4xf32>
    %901 = vector.shape_cast %872 : vector<8x4xf32> to vector<1x8x4xf32>
    %902 = tpu.concatenate %893, %894, %895, %896, %897, %898, %899, %900, %901 in 0 : vector<1x8x4xf32>, vector<1x8x4xf32>, vector<1x8x4xf32>, vector<1x8x4xf32>, vector<1x8x4xf32>, vector<1x8x4xf32>, vector<1x8x4xf32>, vector<1x8x4xf32>, vector<1x8x4xf32> -> vector<9x8x4xf32>
    %cst_254 = arith.constant 0.000000e+00 : f32
    %903 = vector.broadcast %cst_254 : f32 to vector<9x8x124xf32>
    %904 = tpu.concatenate %902, %903 in 2 : vector<9x8x4xf32>, vector<9x8x124xf32> -> vector<9x8x128xf32>
    %c0_255 = arith.constant 0 : index
    %c0_256 = arith.constant 0 : index
    %c0_257 = arith.constant 0 : index
    %905 = vector.load %arg14[%c0_255, %c0_256, %c0_257] : memref<9x8x128xf32, #tpu.memory_space<vmem>>, vector<9x8x128xf32>
    tpu.vector_store %arg14[%c0_255, %c0_256, %c0_257], %904 {strides = array<i32>} : memref<9x8x128xf32, #tpu.memory_space<vmem>>, vector<9x8x128xf32>,
    %906 = tpu.concatenate %122, %220, %330, %440, %550, %660, %770, %880 in 1 : vector<8x1xf32>, vector<8x1xf32>, vector<8x1xf32>, vector<8x1xf32>, vector<8x1xf32>, vector<8x1xf32>, vector<8x1xf32>, vector<8x1xf32> -> vector<8x8xf32>
    %907 = tpu.concatenate %24, %232, %342, %452, %562, %672, %782, %892 in 1 : vector<8x1xf32>, vector<8x1xf32>, vector<8x1xf32>, vector<8x1xf32>, vector<8x1xf32>, vector<8x1xf32>, vector<8x1xf32>, vector<8x1xf32> -> vector<8x8xf32>
    %cst_258 = arith.constant 0.000000e+00 : f32
    %908 = vector.broadcast %cst_258 : f32 to vector<8x120xf32>
    %909 = tpu.concatenate %906, %908 in 1 : vector<8x8xf32>, vector<8x120xf32> -> vector<8x128xf32>
    %910 = tpu.concatenate %907, %908 in 1 : vector<8x8xf32>, vector<8x120xf32> -> vector<8x128xf32>
    %c0_259 = arith.constant 0 : index
    %c0_260 = arith.constant 0 : index
    %911 = vector.load %arg15[%c0_259, %c0_260] : memref<8x128xf32, #tpu.memory_space<vmem>>, vector<8x128xf32>
    tpu.vector_store %arg15[%c0_259, %c0_260], %909 {strides = array<i32>} : memref<8x128xf32, #tpu.memory_space<vmem>>, vector<8x128xf32>,
    %c0_261 = arith.constant 0 : index
    %c0_262 = arith.constant 0 : index
    %912 = vector.load %arg16[%c0_261, %c0_262] : memref<8x128xf32, #tpu.memory_space<vmem>>, vector<8x128xf32>
    tpu.vector_store %arg16[%c0_261, %c0_262], %910 {strides = array<i32>} : memref<8x128xf32, #tpu.memory_space<vmem>>, vector<8x128xf32>,
    return
  }
  func.func @transform_0(%arg0: i32) -> (i32, i32) {
    %c0_i32 = arith.constant 0 : i32
    %c0_i32_0 = arith.constant 0 : i32
    return %arg0, %c0_i32 : i32, i32
  }
  func.func @transform_1(%arg0: i32) -> (i32, i32, i32) {
    %c0_i32 = arith.constant 0 : i32
    %c0_i32_0 = arith.constant 0 : i32
    %c0_i32_1 = arith.constant 0 : i32
    return %c0_i32, %arg0, %c0_i32_0 : i32, i32, i32
  }
  func.func @transform_2(%arg0: i32) -> (i32, i32) {
    %c0_i32 = arith.constant 0 : i32
    %c0_i32_0 = arith.constant 0 : i32
    %c0_i32_1 = arith.constant 0 : i32
    return %c0_i32, %c0_i32_0 : i32, i32
  }
  func.func @transform_3(%arg0: i32) -> (i32, i32) {
    %c0_i32 = arith.constant 0 : i32
    %c0_i32_0 = arith.constant 0 : i32
    %c0_i32_1 = arith.constant 0 : i32
    return %c0_i32, %c0_i32_0 : i32, i32
  }
  func.func @transform_4(%arg0: i32) -> (i32, i32) {
    %c0_i32 = arith.constant 0 : i32
    %c0_i32_0 = arith.constant 0 : i32
    %c0_i32_1 = arith.constant 0 : i32
    return %c0_i32, %c0_i32_0 : i32, i32
  }
  func.func @transform_5(%arg0: i32) -> (i32, i32) {
    %c0_i32 = arith.constant 0 : i32
    %c0_i32_0 = arith.constant 0 : i32
    %c0_i32_1 = arith.constant 0 : i32
    return %c0_i32, %c0_i32_0 : i32, i32
  }
  func.func @transform_6(%arg0: i32) -> (i32, i32) {
    %c0_i32 = arith.constant 0 : i32
    %c0_i32_0 = arith.constant 0 : i32
    %c0_i32_1 = arith.constant 0 : i32
    return %c0_i32, %c0_i32_0 : i32, i32
  }
  func.func @transform_7(%arg0: i32) -> (i32, i32) {
    %c0_i32 = arith.constant 0 : i32
    %c0_i32_0 = arith.constant 0 : i32
    %c0_i32_1 = arith.constant 0 : i32
    return %c0_i32, %c0_i32_0 : i32, i32
  }
  func.func @transform_8(%arg0: i32) -> (i32, i32) {
    %c0_i32 = arith.constant 0 : i32
    %c0_i32_0 = arith.constant 0 : i32
    %c0_i32_1 = arith.constant 0 : i32
    return %c0_i32, %c0_i32_0 : i32, i32
  }
  func.func @transform_9(%arg0: i32) -> (i32, i32) {
    %c0_i32 = arith.constant 0 : i32
    %c0_i32_0 = arith.constant 0 : i32
    %c0_i32_1 = arith.constant 0 : i32
    return %c0_i32, %c0_i32_0 : i32, i32
  }
  func.func @transform_10(%arg0: i32) -> (i32, i32) {
    %c0_i32 = arith.constant 0 : i32
    %c0_i32_0 = arith.constant 0 : i32
    %c0_i32_1 = arith.constant 0 : i32
    return %c0_i32, %c0_i32_0 : i32, i32
  }
  func.func @transform_11(%arg0: i32) -> (i32, i32) {
    %c0_i32 = arith.constant 0 : i32
    %c0_i32_0 = arith.constant 0 : i32
    %c0_i32_1 = arith.constant 0 : i32
    return %c0_i32, %c0_i32_0 : i32, i32
  }
  func.func @transform_12(%arg0: i32) -> (i32, i32) {
    %c0_i32 = arith.constant 0 : i32
    %c0_i32_0 = arith.constant 0 : i32
    %c0_i32_1 = arith.constant 0 : i32
    return %c0_i32, %c0_i32_0 : i32, i32
  }
  func.func @transform_13(%arg0: i32) -> (i32, i32, i32) {
    %c0_i32 = arith.constant 0 : i32
    %c0_i32_0 = arith.constant 0 : i32
    %c0_i32_1 = arith.constant 0 : i32
    return %c0_i32, %arg0, %c0_i32_0 : i32, i32, i32
  }
  func.func @transform_14(%arg0: i32) -> (i32, i32) {
    %c0_i32 = arith.constant 0 : i32
    %c0_i32_0 = arith.constant 0 : i32
    return %arg0, %c0_i32 : i32, i32
  }
  func.func @transform_15(%arg0: i32) -> (i32, i32) {
    %c0_i32 = arith.constant 0 : i32
    %c0_i32_0 = arith.constant 0 : i32
    return %arg0, %c0_i32 : i32, i32
  }
}

</mosaic_0001>

<bundles_post_ra>
// kernel: gfn_forward.1
= control target key start
LH: loop header
LB: loop body
LE: loop exit
PB: predicated region body
PF: predicated region fallthrough
CT: control target
= control target key end

     0   :  { %21 = vsyncpa [#allocation3], 0  ;;  %v2782_v1 = vmov 0   ;;  %v2783_v2 = vmov 2   ;;  %v2784_v3 = vmov 1   ;;  %v2785_v4 = vmov 3   ;;  %s3617_s0 = inlined_call_operand.vmem [shape: f32[8,4], index: 0, kind: input, shape index: {}]   ;;  %s3618_s1 = inlined_call_operand.vmem [shape: f32[8,8,4], index: 1, kind: input, shape index: {}]   ;;  %s3619_s2 = inlined_call_operand.vmem [shape: f32[8,32], index: 2, kind: input, shape index: {}]   ;;  %s3620_s3 = inlined_call_operand.vmem [shape: f32[4,32], index: 3, kind: input, shape index: {}]   ;;  %s3621_s4 = inlined_call_operand.vmem [shape: f32[1,32], index: 4, kind: input, shape index: {}]   ;;  %s3622_s5 = inlined_call_operand.vmem [shape: bf16[32,16], index: 5, kind: input, shape index: {}]   ;;  %s3623_s6 = inlined_call_operand.vmem [shape: f32[1,16], index: 6, kind: input, shape index: {}]   ;;  %s3624_s7 = inlined_call_operand.vmem [shape: bf16[16,32], index: 7, kind: input, shape index: {}]   ;;  %s3625_s8 = inlined_call_operand.vmem [shape: bf16[32,32], index: 8, kind: input, shape index: {}]   ;;  %s3626_s9 = inlined_call_operand.vmem [shape: f32[1,32], index: 9, kind: input, shape index: {}]   ;;  %s3627_s10 = inlined_call_operand.vmem [shape: bf16[32,256], index: 10, kind: input, shape index: {}]   ;;  %s3628_s11 = inlined_call_operand.vmem [shape: f32[1,4], index: 11, kind: input, shape index: {}]   ;;  %s3629_s12 = inlined_call_operand.vmem [shape: f32[1,4], index: 12, kind: input, shape index: {}]   ;;  %s3630_s13 = inlined_call_operand.vmem [shape: f32[9,8,128], index: 13, kind: output, shape index: {0}]   ;;  %s3631_s14 = inlined_call_operand.hbm [shape: f32[8,128], index: 14, kind: output, shape index: {1}]   ;;  %s3632_s15 = inlined_call_operand.hbm [shape: f32[8,128], index: 15, kind: output, shape index: {2}]  }
   0x1   :  { %v2873_v0 = vld [vmem:[%s3617_s0] sm:$0xff]  ;;  %2578 = vset.pattern.permute.xlu0 %v2782_v1  ;;  %2580 = vset.pattern.permute.xlu1 %v2783_v2 }
   0x2   :  { %112 = vperm.xlu0 %2578, %v2873_v0   ;;  %132 = vperm.xlu1 %2580, %v2873_v0  }
   0x6   :  { %2579 = vset.pattern.permute.xlu0 %v2784_v3  ;;  %2581 = vset.pattern.permute.xlu1 %v2785_v4 }
   0x7   :  { %22 = vsyncpa [#allocation5], 0  ;;  %122 = vperm.xlu0 %2579, %v2873_v0   ;;  %142 = vperm.xlu1 %2581, %v2873_v0   ;;  %v2887_v5 = vld [vmem:[%s3622_s5] sm:$0xff]   ;;  %v2786_v6 = vmov 0.0   ;;  %v2900_v7 = vld [vmem:[%s3622_s5 + $0x8] sm:$0xff]   ;;  %vm2787_vm0 = vmmov 0   ;;  %v115_v8 = vlaneseq }
   0x8   :  { %2394 = vmatprep.subr.bf16.mxu0 %v2786_v6  ;;  %2218 = vst [vmem:[%s3630_s13] sm:$0xff] %v2786_v6  ;;  %2402 = vmatprep.subr.bf16.mxu1 %v2786_v6  ;;  %v50_v11 = vld [vmem:[%s3620_s3] sm:$0xf]  ;;  %vm169_vm1 = vcmask 261120   ;;  %vm229_vm2 = vcmask 130048   ;;  %v2968_v52 = vld [vmem:[%s3625_s8 + $0x8] sm:$0xff]   ;;  %vm419_vm3 = vcmask 31744  }
   0x9   :  { %2395 = vmatpush3.bf16.msra.mxu0 %v2887_v5  ;;  %2398 = vmatprep.mubr.msk.bf16.mxu0 %vm2787_vm0, %v2786_v6  ;;  %v2907_v9 = vshrl.u32 %v115_v8, 7  ;;  %v2926_v20 = vld [vmem:[%s3621_s4] ss:$0 sm:$0xff]  ;;  %vm2227_vm4 = vcmask 7168   ;;  %vm2229_vm5 = vcmask 15360   ;;  %vm2231_vm6 = vcmask 23552  }
   0xa   :  { %2396 = vmatprep.subr.bf16.mxu0 %v2786_v6  ;;  %2404 = vmatprep.mubr.msk.bf16.mxu1 %vm2787_vm0, %v2786_v6  ;;  %v2945_v38 = vld [vmem:[%s3624_s7] sm:$0xff]   ;;  %vm2234_vm7 = vcmask 39936   ;;  %vm2236_vm8 = vcmask 48128   ;;  %vm2238_vm9 = vcmask 56320   ;;  %vm2247_vm10 = vcmask 64512  }
   0xb   :  { %2582 = vset.pattern.permute.xlu1 %v2782_v1  ;;  %v117_v10 = vsub.s32 0, %v2907_v9  ;;  %v127_v13 = vsub.s32 1, %v2907_v9  ;;  %v137_v15 = vsub.s32 2, %v2907_v9  ;;  %v147_v17 = vsub.s32 3, %v2907_v9  ;;  %2403 = vmatpush3.bf16.msra.mxu1 %v2945_v38  ;;  %v2952_v39 = vld [vmem:[%s3623_s6] ss:$0 sm:$0xff] }
   0xc   :  { %2408 = vmatprep.subr.bf16.mxu1 %v2786_v6  ;;  %v2961_v51 = vld [vmem:[%s3625_s8] sm:$0xff]  }
   0xd   :  { %2397 = vmatpush3.bf16.msra.mxu0 %v2900_v7  ;;  %v2913_v12 = vrot.slane %v50_v11, %v117_v10  ;;  %v2921_v19 = vrot.slane %v50_v11, %v127_v13  ;;  %v2930_v21 = vrot.slane %v50_v11, %v137_v15  ;;  %v2934_v22 = vrot.slane %v50_v11, %v147_v17  ;;  %v2975_v53 = vld [vmem:[%s3619_s2] sm:$0xff] }
   0xe   :  { %v222_v54 = vrot.slane %v2975_v53, %v117_v10  ;;  %v2988_v10 = vld [vmem:[%s3627_s10 + $0x4] ss:$8 sps:$4 sm:$0xff]  }
   0xf   :  { %363 = vmatprep.subr.bf16.mxu0 %v2988_v10 }
  0x81   :  { %v113_v14 = vpop.permute.xlu0 %112  ;;  %v133_v16 = vpop.permute.xlu1 %132 }
  0x82   :  { %v119_v18 = vmul.f32 %v2913_v12, %v113_v14  ;;  %v139_v27 = vmul.f32 %v2930_v21, %v133_v16  ;;  %v2993_v14 = vld [vmem:[%s3627_s10] ss:$8 sps:$4 sm:$0xff]   ;;  %v3000_v16 = vld [vmem:[%s3627_s10 + $0x14] ss:$8 sps:$4 sm:$0xff]  }
  0x84   :  { %v120_v25 = vadd.f32 %v2926_v20, %v119_v18  ;;  %v3005_v18 = vld [vmem:[%s3627_s10 + $0x10] ss:$8 sps:$4 sm:$0xff]  }
  0x86   :  { %v123_v23 = vpop.permute.xlu0 %122  ;;  %v143_v24 = vpop.permute.xlu1 %142 }
  0x87   :  { %v129_v26 = vmul.f32 %v2921_v19, %v123_v23  ;;  %v149_v29 = vmul.f32 %v2934_v22, %v143_v24  ;;  %v3013_v23 = vld [vmem:[%s3626_s9] ss:$0 sm:$0xff] }
  0x89   :  { %v130_v28 = vadd.f32 %v129_v26, %v120_v25 }
  0x8b   :  { %v140_v30 = vadd.f32 %v139_v27, %v130_v28 }
  0x8d   :  { %v150_v31 = vadd.f32 %v149_v29, %v140_v30 }
  0x8f   :  { %v152_v32 = vmul.f32 0.70710677, %v150_v31  ;;  %v151_v34 = vmul.f32 0.5, %v150_v31 }
  0x91   :  { %2620 = verf.f32 %v152_v32 }
  0x9b   :  { %v2621_v33 = vpop.eup %2620 }
  0x9c   :  { %v154_v35 = vadd.f32 1.0, %v2621_v33 }
  0x9e   :  { %v155_v36 = vmul.f32 %v154_v35, %v151_v34  ;;  %v3024_v35 = vld [vmem:[%s3629_s12] ss:$0 sm:$0xff] }
  0xa0   :  { %v156_v37 = vpack.c.bf16 %v155_v36, %v155_v36 }
  0xa2   :  { %2399 = vmatmul.mubr.msk.bf16.vlgmr.msra.gmra.mrb[0].mxu0 %vm169_vm1, %v156_v37 }
  0xa3   :  { %395 = vmatprep.mubr.bf16.mxu0 %v2782_v1  ;;  %364 = vmatpush1.bf16.msra.mxu0 %v2993_v14 }
  0xa4   :  { %365 = vmatprep.subr.bf16.mxu0 %v3000_v16 }
  0xa7   :  { %366 = vmatpush1.bf16.msra.mxu0 %v3005_v18 }
  0xa8   :  { %2424 = vmatprep.subr.bf16.mxu0 %v2786_v6 }
 0x175   :  { %v207_v40 = vpop.f32.mrb[0].mxu0 }
 0x176   :  { %v208_v41 = vadd.f32 %v2952_v39, %v207_v40  ;;  %v2400_v42 = vpop.f32.mrb[1].mxu0 }
 0x177   :  { %v210_v43 = vpop.f32.mrb[2].mxu0 }
 0x178   :  { %v214_v44 = vmul.f32 0.70710677, %v208_v41  ;;  %v2401_v45 = vpop.f32.mrb[3].mxu0  ;;  %v213_v47 = vmul.f32 0.5, %v208_v41 }
 0x17a   :  { %2622 = verf.f32 %v214_v44 }
 0x184   :  { %v2623_v46 = vpop.eup %2622 }
 0x185   :  { %v216_v48 = vadd.f32 1.0, %v2623_v46 }
 0x187   :  { %v217_v49 = vmul.f32 %v216_v48, %v213_v47  ;;  %v3033_v47 = vld [vmem:[%s3628_s11] ss:$0 sm:$0xff] }
 0x189   :  { %v218_v50 = vpack.c.bf16 %v217_v49, %v217_v49 }
 0x18b   :  { %2405 = vmatmul.mubr.msk.bf16.vlgmr.msra.gmra.mrb[0].mxu1 %vm229_vm2, %v218_v50 }
 0x18c   :  { %2412 = vmatprep.mubr.msk.bf16.mxu1 %vm2787_vm0, %v2786_v6  ;;  %2409 = vmatpush3.bf16.msra.mxu1 %v2961_v51 }
 0x18d   :  { %2410 = vmatprep.subr.bf16.mxu1 %v2786_v6 }
 0x190   :  { %2411 = vmatpush3.bf16.msra.mxu1 %v2968_v52 }
 0x191   :  { %2416 = vmatprep.subr.bf16.mxu1 %v2786_v6 }
 0x25e   :  { %v267_v55 = vpop.f32.mrb[0].mxu1 }
 0x25f   :  { %v268_v56 = vadd.f32 %v267_v55, %v222_v54  ;;  %v2406_v57 = vpop.f32.mrb[1].mxu1  ;;  %v101_v55 = vld [vmem:[%s3618_s1] sm:$0xff] }
 0x260   :  { %v270_v58 = vpop.f32.mrb[2].mxu1 }
 0x261   :  { %v274_v59 = vmul.f32 0.70710677, %v268_v56  ;;  %v2407_v60 = vpop.f32.mrb[3].mxu1  ;;  %v273_v62 = vmul.f32 0.5, %v268_v56 }
 0x263   :  { %2624 = verf.f32 %v274_v59 }
 0x26d   :  { %v2625_v61 = vpop.eup %2624 }
 0x26e   :  { %v276_v63 = vadd.f32 1.0, %v2625_v61 }
 0x270   :  { %v277_v8 = vmul.f32 %v276_v63, %v273_v62 }
 0x272   :  { %v278_v11 = vpack.c.bf16 %v277_v8, %v277_v8 }
 0x274   :  { %2413 = vmatmul.mubr.msk.bf16.vlgmr.msra.gmra.mrb[4].mxu1 %vm169_vm1, %v278_v11 }
 0x275   :  { %2417 = vmatpush3.bf16.msra.mxu1 %v2887_v5  ;;  %2420 = vmatprep.mubr.msk.bf16.mxu1 %vm2787_vm0, %v2786_v6 }
 0x276   :  { %2418 = vmatprep.subr.bf16.mxu1 %v2786_v6 }
 0x279   :  { %2419 = vmatpush3.bf16.msra.mxu1 %v2900_v7 }
 0x27a   :  { %2430 = vmatprep.subr.bf16.mxu1 %v2786_v6 }
 0x347   :  { %v328_v24 = vpop.f32.mrb[4].mxu1 }
 0x348   :  { %v329_v25 = vadd.f32 %v3013_v23, %v328_v24  ;;  %v2414_v26 = vpop.f32.mrb[5].mxu1 }
 0x349   :  { %v331_v27 = vpop.f32.mrb[6].mxu1 }
 0x34a   :  { %v335_v28 = vmul.f32 0.70710677, %v329_v25  ;;  %v2415_v29 = vpop.f32.mrb[7].mxu1  ;;  %v334_v31 = vmul.f32 0.5, %v329_v25 }
 0x34c   :  { %2626 = verf.f32 %v335_v28 }
 0x356   :  { %v2627_v30 = vpop.eup %2626 }
 0x357   :  { %v337_v32 = vadd.f32 1.0, %v2627_v30 }
 0x359   :  { %v338_v33 = vmul.f32 %v337_v32, %v334_v31 }
 0x35b   :  { %v339_v34 = vpack.c.bf16 %v338_v33, %v338_v33 }
 0x35d   :  { %2301 = vmatmul.mubr.msk.bf16.vlgmr.msra.gmra.mrb[4].mxu0 %vm169_vm1, %v339_v34 }
 0x35e   :  { %2425 = vmatpush3.bf16.msra.mxu0 %v2945_v38  ;;  %2426 = vmatprep.mubr.msk.bf16.mxu0 %vm2787_vm0, %v2786_v6 }
 0x35f   :  { %610 = vmatprep.subr.bf16.mxu0 %v2988_v10 }
 0x430   :  { %v397_v36 = vpop.f32.mrb[4].mxu0 }
 0x431   :  { %v399_v37 = vpop.f32.mrb[5].mxu0  ;;  %v404_v48 = vadd.f32 %v3033_v47, %v397_v36 }
 0x432   :  { %v405_v40 = vadd.f32 %v3024_v35, %v399_v37  ;;  %v401_v41 = vpop.f32.mrb[6].mxu0 }
 0x433   :  { %v402_v42 = vpop.f32.mrb[7].mxu0  ;;  %v413_v49 = vmul.f32 0.125, %v404_v48 }
 0x434   :  { %2628 = vtanh.f32 %v405_v40 }
 0x435   :  { %v414_v56 = vadd.f32 %v413_v49, %v2873_v0 }
 0x43e   :  { %v2629_v43 = vpop.eup %2628 }
 0x43f   :  { %v3027_v44 = vmul.f32 4.0, %v2629_v43 }
 0x441   :  { %v409_v45 = vmul.f32 0.5, %v3027_v44 }
 0x443   :  { %v410_v46 = vmul.f32 1.442695, %v409_v45 }
 0x445   :  { %2630 = vpow2.f32 %v410_v46 }
 0x44f   :  { %v2631_v50 = vpop.eup %2630 }
 0x450   :  { %v412_v54 = vmul.f32 0.35355338, %v2631_v50 }
 0x452   :  { %v415_v57 = vmul.f32 %v412_v54, %v101_v55  ;;  %v508_v54 = vrot.slane %v2975_v53, %v127_v13 }
 0x454   :  { %v3040_v58 = vadd.f32 %v415_v57, %v414_v56 }
 0x456   :  { %v2210_v59 = vsel %vm419_vm3, %v3040_v58, 0.0  ;;  %433 = vperm.xlu0 %2579, %v3040_v58   ;;  %427 = vperm.xlu1 %2582, %v3040_v58  }
 0x457   :  { %2219 = vst [vmem:[%s3630_s13 + $0x8] sm:$0xff] %v2210_v59 }
 0x45a   :  { %2584 = vset.pattern.permute.xlu0 %v2785_v4  ;;  %2583 = vset.pattern.permute.xlu1 %v2783_v2 }
 0x45b   :  { %445 = vperm.xlu0 %2584, %v3040_v58   ;;  %439 = vperm.xlu1 %2583, %v3040_v58  }
 0x45f   :  { %2587 = vset.pattern.permute.xlu0 %v2783_v2  ;;  %2585 = vset.pattern.permute.xlu1 %v2782_v1 }
 0x4d5   :  { %v434_v0 = vpop.permute.xlu0 %433  ;;  %v428_v60 = vpop.permute.xlu1 %427 }
 0x4d6   :  { %v430_v61 = vmul.f32 %v428_v60, %v2913_v12  ;;  %v436_v62 = vmul.f32 %v434_v0, %v2921_v19 }
 0x4d8   :  { %v431_v63 = vadd.f32 %v2926_v20, %v430_v61 }
 0x4da   :  { %v446_v8 = vpop.permute.xlu0 %445  ;;  %v437_v11 = vadd.f32 %v436_v62, %v431_v63  ;;  %v440_v24 = vpop.permute.xlu1 %439 }
 0x4db   :  { %v442_v25 = vmul.f32 %v440_v24, %v2930_v21  ;;  %v448_v26 = vmul.f32 %v446_v8, %v2934_v22 }
 0x4dd   :  { %v443_v27 = vadd.f32 %v442_v25, %v437_v11 }
 0x4df   :  { %v449_v28 = vadd.f32 %v448_v26, %v443_v27 }
 0x4e1   :  { %v451_v29 = vmul.f32 0.70710677, %v449_v28  ;;  %v450_v31 = vmul.f32 0.5, %v449_v28 }
 0x4e3   :  { %2632 = verf.f32 %v451_v29 }
 0x4ed   :  { %v2633_v30 = vpop.eup %2632 }
 0x4ee   :  { %v453_v32 = vadd.f32 1.0, %v2633_v30 }
 0x4f0   :  { %v454_v33 = vmul.f32 %v453_v32, %v450_v31 }
 0x4f2   :  { %v455_v34 = vpack.c.bf16 %v454_v33, %v454_v33 }
 0x4f4   :  { %2421 = vmatmul.mubr.msk.bf16.vlgmr.msra.gmra.mrb[8].mxu1 %vm169_vm1, %v455_v34 }
 0x4f5   :  { %2431 = vmatpush3.bf16.msra.mxu1 %v2961_v51  ;;  %2434 = vmatprep.mubr.msk.bf16.mxu1 %vm2787_vm0, %v2786_v6 }
 0x4f6   :  { %2432 = vmatprep.subr.bf16.mxu1 %v2786_v6 }
 0x4f9   :  { %2433 = vmatpush3.bf16.msra.mxu1 %v2968_v52 }
 0x4fa   :  { %2438 = vmatprep.subr.bf16.mxu1 %v2786_v6 }
 0x5c7   :  { %v493_v36 = vpop.f32.mrb[8].mxu1 }
 0x5c8   :  { %v494_v37 = vadd.f32 %v2952_v39, %v493_v36  ;;  %v2422_v40 = vpop.f32.mrb[9].mxu1 }
 0x5c9   :  { %v496_v41 = vpop.f32.mrb[10].mxu1 }
 0x5ca   :  { %v500_v42 = vmul.f32 0.70710677, %v494_v37  ;;  %v2423_v43 = vpop.f32.mrb[11].mxu1  ;;  %v499_v46 = vmul.f32 0.5, %v494_v37 }
 0x5cc   :  { %2634 = verf.f32 %v500_v42 }
 0x5d6   :  { %v2635_v45 = vpop.eup %2634 }
 0x5d7   :  { %v502_v48 = vadd.f32 1.0, %v2635_v45 }
 0x5d9   :  { %v503_v49 = vmul.f32 %v502_v48, %v499_v46 }
 0x5db   :  { %v504_v50 = vpack.c.bf16 %v503_v49, %v503_v49 }
 0x5dd   :  { %2427 = vmatmul.mubr.msk.bf16.vlgmr.msra.gmra.mrb[8].mxu0 %vm229_vm2, %v504_v50 }
 0x5de   :  { %611 = vmatpush1.bf16.msra.mxu0 %v2993_v14  ;;  %642 = vmatprep.mubr.bf16.mxu0 %v2782_v1 }
 0x5df   :  { %612 = vmatprep.subr.bf16.mxu0 %v3000_v16 }
 0x5e2   :  { %613 = vmatpush1.bf16.msra.mxu0 %v3005_v18 }
 0x5e3   :  { %2446 = vmatprep.subr.bf16.mxu0 %v2786_v6 }
 0x6b0   :  { %v546_v55 = vpop.f32.mrb[8].mxu0 }
 0x6b1   :  { %v547_v56 = vadd.f32 %v546_v55, %v508_v54  ;;  %v2428_v57 = vpop.f32.mrb[9].mxu0  ;;  %v102_v55 = vld [vmem:[%s3618_s1 + $0x8] sm:$0xff] }
 0x6b2   :  { %v549_v59 = vpop.f32.mrb[10].mxu0 }
 0x6b3   :  { %v553_v0 = vmul.f32 0.70710677, %v547_v56  ;;  %v2429_v60 = vpop.f32.mrb[11].mxu0  ;;  %v552_v62 = vmul.f32 0.5, %v547_v56 }
 0x6b5   :  { %2636 = verf.f32 %v553_v0 }
 0x6bf   :  { %v2637_v61 = vpop.eup %2636 }
 0x6c0   :  { %v555_v63 = vadd.f32 1.0, %v2637_v61 }
 0x6c2   :  { %v556_v8 = vmul.f32 %v555_v63, %v552_v62 }
 0x6c4   :  { %v557_v11 = vpack.c.bf16 %v556_v8, %v556_v8 }
 0x6c6   :  { %2435 = vmatmul.mubr.msk.bf16.vlgmr.msra.gmra.mrb[12].mxu1 %vm169_vm1, %v557_v11 }
 0x6c7   :  { %2439 = vmatpush3.bf16.msra.mxu1 %v2887_v5  ;;  %2442 = vmatprep.mubr.msk.bf16.mxu1 %vm2787_vm0, %v2786_v6 }
 0x6c8   :  { %2440 = vmatprep.subr.bf16.mxu1 %v2786_v6 }
 0x6cb   :  { %2441 = vmatpush3.bf16.msra.mxu1 %v2900_v7 }
 0x6cc   :  { %2452 = vmatprep.subr.bf16.mxu1 %v2786_v6 }
 0x799   :  { %v595_v13 = vpop.f32.mrb[12].mxu1 }
 0x79a   :  { %v596_v24 = vadd.f32 %v3013_v23, %v595_v13  ;;  %v2436_v25 = vpop.f32.mrb[13].mxu1 }
 0x79b   :  { %v598_v26 = vpop.f32.mrb[14].mxu1 }
 0x79c   :  { %v602_v27 = vmul.f32 0.70710677, %v596_v24  ;;  %v2437_v28 = vpop.f32.mrb[15].mxu1  ;;  %v601_v30 = vmul.f32 0.5, %v596_v24 }
 0x79e   :  { %2638 = verf.f32 %v602_v27 }
 0x7a8   :  { %v2639_v29 = vpop.eup %2638 }
 0x7a9   :  { %v604_v31 = vadd.f32 1.0, %v2639_v29 }
 0x7ab   :  { %v605_v32 = vmul.f32 %v604_v31, %v601_v30 }
 0x7ad   :  { %v606_v33 = vpack.c.bf16 %v605_v32, %v605_v32 }
 0x7af   :  { %2305 = vmatmul.mubr.msk.bf16.vlgmr.msra.gmra.mrb[12].mxu0 %vm169_vm1, %v606_v33 }
 0x7b0   :  { %2447 = vmatpush3.bf16.msra.mxu0 %v2945_v38  ;;  %2448 = vmatprep.mubr.msk.bf16.mxu0 %vm2787_vm0, %v2786_v6 }
 0x7b1   :  { %865 = vmatprep.subr.bf16.mxu0 %v2988_v10 }
 0x882   :  { %v644_v34 = vpop.f32.mrb[12].mxu0 }
 0x883   :  { %v646_v36 = vpop.f32.mrb[13].mxu0  ;;  %v651_v48 = vadd.f32 %v3033_v47, %v644_v34 }
 0x884   :  { %v652_v37 = vadd.f32 %v3024_v35, %v646_v36  ;;  %v648_v40 = vpop.f32.mrb[14].mxu0 }
 0x885   :  { %v649_v41 = vpop.f32.mrb[15].mxu0  ;;  %v660_v49 = vmul.f32 0.125, %v651_v48 }
 0x886   :  { %2640 = vtanh.f32 %v652_v37 }
 0x887   :  { %v661_v56 = vadd.f32 %v660_v49, %v3040_v58 }
 0x890   :  { %v2641_v42 = vpop.eup %2640 }
 0x891   :  { %v3091_v43 = vmul.f32 4.0, %v2641_v42 }
 0x893   :  { %v656_v45 = vmul.f32 0.5, %v3091_v43 }
 0x895   :  { %v657_v46 = vmul.f32 1.442695, %v656_v45 }
 0x897   :  { %2642 = vpow2.f32 %v657_v46 }
 0x8a1   :  { %v2643_v50 = vpop.eup %2642 }
 0x8a2   :  { %v659_v54 = vmul.f32 0.35355338, %v2643_v50 }
 0x8a4   :  { %v662_v57 = vmul.f32 %v659_v54, %v102_v55  ;;  %v763_v55 = vrot.slane %v2975_v53, %v137_v15 }
 0x8a6   :  { %v3099_v59 = vadd.f32 %v662_v57, %v661_v56 }
 0x8a8   :  { %v2211_v0 = vsel %vm419_vm3, %v3099_v59, 0.0  ;;  %694 = vperm.xlu0 %2587, %v3099_v59   ;;  %682 = vperm.xlu1 %2585, %v3099_v59  }
 0x8a9   :  { %2220 = vst [vmem:[%s3630_s13 + $0x10] sm:$0xff] %v2211_v0 }
 0x8ac   :  { %2586 = vset.pattern.permute.xlu1 %v2784_v3  ;;  %2590 = vset.pattern.permute.xlu0 %v2784_v3 }
 0x8ad   :  { %688 = vperm.xlu1 %2586, %v3099_v59  }
 0x8b1   :  { %2588 = vset.pattern.permute.xlu1 %v2785_v4 }
 0x8b2   :  { %700 = vperm.xlu1 %2588, %v3099_v59  }
 0x8b6   :  { %2589 = vset.pattern.permute.xlu1 %v2782_v1 }
 0x927   :  { %v683_v60 = vpop.permute.xlu1 %682  ;;  %v695_v62 = vpop.permute.xlu0 %694 }
 0x928   :  { %v685_v61 = vmul.f32 %v683_v60, %v2913_v12  ;;  %v697_v13 = vmul.f32 %v695_v62, %v2930_v21 }
 0x92a   :  { %v686_v8 = vadd.f32 %v2926_v20, %v685_v61 }
 0x92c   :  { %v689_v63 = vpop.permute.xlu1 %688 }
 0x92d   :  { %v691_v11 = vmul.f32 %v689_v63, %v2921_v19 }
 0x92f   :  { %v692_v24 = vadd.f32 %v691_v11, %v686_v8 }
 0x931   :  { %v698_v25 = vadd.f32 %v697_v13, %v692_v24  ;;  %v701_v26 = vpop.permute.xlu1 %700 }
 0x932   :  { %v703_v27 = vmul.f32 %v701_v26, %v2934_v22 }
 0x934   :  { %v704_v28 = vadd.f32 %v703_v27, %v698_v25 }
 0x936   :  { %v706_v29 = vmul.f32 0.70710677, %v704_v28  ;;  %v705_v31 = vmul.f32 0.5, %v704_v28 }
 0x938   :  { %2644 = verf.f32 %v706_v29 }
 0x942   :  { %v2645_v30 = vpop.eup %2644 }
 0x943   :  { %v708_v32 = vadd.f32 1.0, %v2645_v30 }
 0x945   :  { %v709_v33 = vmul.f32 %v708_v32, %v705_v31 }
 0x947   :  { %v710_v34 = vpack.c.bf16 %v709_v33, %v709_v33 }
 0x949   :  { %2443 = vmatmul.mubr.msk.bf16.vlgmr.msra.gmra.mrb[16].mxu1 %vm169_vm1, %v710_v34 }
 0x94a   :  { %2453 = vmatpush3.bf16.msra.mxu1 %v2961_v51  ;;  %2456 = vmatprep.mubr.msk.bf16.mxu1 %vm2787_vm0, %v2786_v6 }
 0x94b   :  { %2454 = vmatprep.subr.bf16.mxu1 %v2786_v6 }
 0x94e   :  { %2455 = vmatpush3.bf16.msra.mxu1 %v2968_v52 }
 0x94f   :  { %2460 = vmatprep.subr.bf16.mxu1 %v2786_v6 }
 0xa1c   :  { %v748_v36 = vpop.f32.mrb[16].mxu1 }
 0xa1d   :  { %v749_v37 = vadd.f32 %v2952_v39, %v748_v36  ;;  %v2444_v40 = vpop.f32.mrb[17].mxu1 }
 0xa1e   :  { %v751_v41 = vpop.f32.mrb[18].mxu1 }
 0xa1f   :  { %v755_v42 = vmul.f32 0.70710677, %v749_v37  ;;  %v2445_v45 = vpop.f32.mrb[19].mxu1  ;;  %v754_v48 = vmul.f32 0.5, %v749_v37 }
 0xa21   :  { %2646 = verf.f32 %v755_v42 }
 0xa2b   :  { %v2647_v46 = vpop.eup %2646 }
 0xa2c   :  { %v757_v49 = vadd.f32 1.0, %v2647_v46 }
 0xa2e   :  { %v758_v50 = vmul.f32 %v757_v49, %v754_v48 }
 0xa30   :  { %v759_v54 = vpack.c.bf16 %v758_v50, %v758_v50 }
 0xa32   :  { %2449 = vmatmul.mubr.msk.bf16.vlgmr.msra.gmra.mrb[16].mxu0 %vm229_vm2, %v759_v54 }
 0xa33   :  { %866 = vmatpush1.bf16.msra.mxu0 %v2993_v14  ;;  %897 = vmatprep.mubr.bf16.mxu0 %v2782_v1 }
 0xa34   :  { %867 = vmatprep.subr.bf16.mxu0 %v3000_v16 }
 0xa37   :  { %868 = vmatpush1.bf16.msra.mxu0 %v3005_v18 }
 0xa38   :  { %2468 = vmatprep.subr.bf16.mxu0 %v2786_v6 }
 0xb05   :  { %v801_v56 = vpop.f32.mrb[16].mxu0 }
 0xb06   :  { %v802_v57 = vadd.f32 %v801_v56, %v763_v55  ;;  %v2450_v0 = vpop.f32.mrb[17].mxu0 }
 0xb07   :  { %v804_v60 = vpop.f32.mrb[18].mxu0 }
 0xb08   :  { %v808_v61 = vmul.f32 0.70710677, %v802_v57  ;;  %v2451_v62 = vpop.f32.mrb[19].mxu0  ;;  %v807_v8 = vmul.f32 0.5, %v802_v57  ;;  %v3157_v57 = vld [vmem:[%s3618_s1 + $0x10] sm:$0xff] }
 0xb0a   :  { %2648 = verf.f32 %v808_v61 }
 0xb14   :  { %v2649_v63 = vpop.eup %2648 }
 0xb15   :  { %v810_v11 = vadd.f32 1.0, %v2649_v63 }
 0xb17   :  { %v811_v13 = vmul.f32 %v810_v11, %v807_v8 }
 0xb19   :  { %v812_v24 = vpack.c.bf16 %v811_v13, %v811_v13 }
 0xb1b   :  { %2457 = vmatmul.mubr.msk.bf16.vlgmr.msra.gmra.mrb[20].mxu1 %vm169_vm1, %v812_v24 }
 0xb1c   :  { %2461 = vmatpush3.bf16.msra.mxu1 %v2887_v5  ;;  %2464 = vmatprep.mubr.msk.bf16.mxu1 %vm2787_vm0, %v2786_v6 }
 0xb1d   :  { %2462 = vmatprep.subr.bf16.mxu1 %v2786_v6 }
 0xb20   :  { %2463 = vmatpush3.bf16.msra.mxu1 %v2900_v7 }
 0xb21   :  { %2474 = vmatprep.subr.bf16.mxu1 %v2786_v6 }
 0xbee   :  { %v850_v15 = vpop.f32.mrb[20].mxu1 }
 0xbef   :  { %v851_v25 = vadd.f32 %v3013_v23, %v850_v15  ;;  %v2458_v26 = vpop.f32.mrb[21].mxu1 }
 0xbf0   :  { %v853_v27 = vpop.f32.mrb[22].mxu1 }
 0xbf1   :  { %v857_v28 = vmul.f32 0.70710677, %v851_v25  ;;  %v2459_v29 = vpop.f32.mrb[23].mxu1  ;;  %v856_v31 = vmul.f32 0.5, %v851_v25 }
 0xbf3   :  { %2650 = verf.f32 %v857_v28 }
 0xbfd   :  { %v2651_v30 = vpop.eup %2650 }
 0xbfe   :  { %v859_v32 = vadd.f32 1.0, %v2651_v30 }
 0xc00   :  { %v860_v33 = vmul.f32 %v859_v32, %v856_v31 }
 0xc02   :  { %v861_v34 = vpack.c.bf16 %v860_v33, %v860_v33 }
 0xc04   :  { %2309 = vmatmul.mubr.msk.bf16.vlgmr.msra.gmra.mrb[20].mxu0 %vm169_vm1, %v861_v34 }
 0xc05   :  { %2469 = vmatpush3.bf16.msra.mxu0 %v2945_v38  ;;  %2470 = vmatprep.mubr.msk.bf16.mxu0 %vm2787_vm0, %v2786_v6 }
 0xc06   :  { %1120 = vmatprep.subr.bf16.mxu0 %v2988_v10 }
 0xcd7   :  { %v899_v36 = vpop.f32.mrb[20].mxu0 }
 0xcd8   :  { %v901_v37 = vpop.f32.mrb[21].mxu0  ;;  %v906_v50 = vadd.f32 %v3033_v47, %v899_v36 }
 0xcd9   :  { %v907_v40 = vadd.f32 %v3024_v35, %v901_v37  ;;  %v903_v41 = vpop.f32.mrb[22].mxu0 }
 0xcda   :  { %v904_v42 = vpop.f32.mrb[23].mxu0  ;;  %v915_v54 = vmul.f32 0.125, %v906_v50 }
 0xcdb   :  { %2652 = vtanh.f32 %v907_v40 }
 0xcdc   :  { %v916_v0 = vadd.f32 %v915_v54, %v3099_v59 }
 0xce5   :  { %v2653_v45 = vpop.eup %2652 }
 0xce6   :  { %v3150_v46 = vmul.f32 4.0, %v2653_v45 }
 0xce8   :  { %v911_v48 = vmul.f32 0.5, %v3150_v46 }
 0xcea   :  { %v912_v49 = vmul.f32 1.442695, %v911_v48 }
 0xcec   :  { %2654 = vpow2.f32 %v912_v49 }
 0xcf6   :  { %v2655_v55 = vpop.eup %2654 }
 0xcf7   :  { %v914_v56 = vmul.f32 0.35355338, %v2655_v55 }
 0xcf9   :  { %v917_v60 = vmul.f32 %v914_v56, %v3157_v57 }
 0xcfb   :  { %v3161_v61 = vadd.f32 %v917_v60, %v916_v0  ;;  %v1018_v60 = vrot.slane %v2975_v53, %v147_v17 }
 0xcfd   :  { %v2212_v62 = vsel %vm419_vm3, %v3161_v61, 0.0  ;;  %943 = vperm.xlu0 %2590, %v3161_v61   ;;  %937 = vperm.xlu1 %2589, %v3161_v61  }
 0xcfe   :  { %2221 = vst [vmem:[%s3630_s13 + $0x18] sm:$0xff] %v2212_v62 }
 0xd01   :  { %2591 = vset.pattern.permute.xlu1 %v2783_v2  ;;  %2593 = vset.pattern.permute.xlu0 %v2782_v1 }
 0xd02   :  { %949 = vperm.xlu1 %2591, %v3161_v61  }
 0xd06   :  { %2592 = vset.pattern.permute.xlu1 %v2785_v4 }
 0xd07   :  { %955 = vperm.xlu1 %2592, %v3161_v61  }
 0xd0b   :  { %2594 = vset.pattern.permute.xlu1 %v2784_v3 }
 0xd7c   :  { %v938_v63 = vpop.permute.xlu1 %937  ;;  %v944_v11 = vpop.permute.xlu0 %943 }
 0xd7d   :  { %v940_v8 = vmul.f32 %v938_v63, %v2913_v12  ;;  %v946_v24 = vmul.f32 %v944_v11, %v2921_v19 }
 0xd7f   :  { %v941_v13 = vadd.f32 %v2926_v20, %v940_v8 }
 0xd81   :  { %v950_v15 = vpop.permute.xlu1 %949  ;;  %v947_v25 = vadd.f32 %v946_v24, %v941_v13 }
 0xd82   :  { %v952_v26 = vmul.f32 %v950_v15, %v2930_v21 }
 0xd84   :  { %v953_v28 = vadd.f32 %v952_v26, %v947_v25 }
 0xd86   :  { %v956_v27 = vpop.permute.xlu1 %955 }
 0xd87   :  { %v958_v29 = vmul.f32 %v956_v27, %v2934_v22 }
 0xd89   :  { %v959_v30 = vadd.f32 %v958_v29, %v953_v28 }
 0xd8b   :  { %v961_v31 = vmul.f32 0.70710677, %v959_v30  ;;  %v960_v33 = vmul.f32 0.5, %v959_v30 }
 0xd8d   :  { %2656 = verf.f32 %v961_v31 }
 0xd97   :  { %v2657_v32 = vpop.eup %2656 }
 0xd98   :  { %v963_v34 = vadd.f32 1.0, %v2657_v32 }
 0xd9a   :  { %v964_v36 = vmul.f32 %v963_v34, %v960_v33 }
 0xd9c   :  { %v965_v37 = vpack.c.bf16 %v964_v36, %v964_v36 }
 0xd9e   :  { %2465 = vmatmul.mubr.msk.bf16.vlgmr.msra.gmra.mrb[24].mxu1 %vm169_vm1, %v965_v37 }
 0xd9f   :  { %2475 = vmatpush3.bf16.msra.mxu1 %v2961_v51  ;;  %2478 = vmatprep.mubr.msk.bf16.mxu1 %vm2787_vm0, %v2786_v6 }
 0xda0   :  { %2476 = vmatprep.subr.bf16.mxu1 %v2786_v6 }
 0xda3   :  { %2477 = vmatpush3.bf16.msra.mxu1 %v2968_v52 }
 0xda4   :  { %2482 = vmatprep.subr.bf16.mxu1 %v2786_v6 }
 0xe71   :  { %v1003_v40 = vpop.f32.mrb[24].mxu1 }
 0xe72   :  { %v1004_v41 = vadd.f32 %v2952_v39, %v1003_v40  ;;  %v2466_v42 = vpop.f32.mrb[25].mxu1 }
 0xe73   :  { %v1006_v45 = vpop.f32.mrb[26].mxu1 }
 0xe74   :  { %v1010_v48 = vmul.f32 0.70710677, %v1004_v41  ;;  %v2467_v49 = vpop.f32.mrb[27].mxu1  ;;  %v1009_v54 = vmul.f32 0.5, %v1004_v41 }
 0xe76   :  { %2658 = verf.f32 %v1010_v48 }
 0xe80   :  { %v2659_v50 = vpop.eup %2658 }
 0xe81   :  { %v1012_v55 = vadd.f32 1.0, %v2659_v50 }
 0xe83   :  { %v1013_v56 = vmul.f32 %v1012_v55, %v1009_v54 }
 0xe85   :  { %v1014_v0 = vpack.c.bf16 %v1013_v56, %v1013_v56 }
 0xe87   :  { %2471 = vmatmul.mubr.msk.bf16.vlgmr.msra.gmra.mrb[24].mxu0 %vm229_vm2, %v1014_v0 }
 0xe88   :  { %1121 = vmatpush1.bf16.msra.mxu0 %v2993_v14  ;;  %1152 = vmatprep.mubr.bf16.mxu0 %v2782_v1 }
 0xe89   :  { %1122 = vmatprep.subr.bf16.mxu0 %v3000_v16 }
 0xe8c   :  { %1123 = vmatpush1.bf16.msra.mxu0 %v3005_v18 }
 0xe8d   :  { %2490 = vmatprep.subr.bf16.mxu0 %v2786_v6 }
 0xf5a   :  { %v1056_v62 = vpop.f32.mrb[24].mxu0 }
 0xf5b   :  { %v1057_v63 = vadd.f32 %v1056_v62, %v1018_v60  ;;  %v2472_v8 = vpop.f32.mrb[25].mxu0 }
 0xf5c   :  { %v1059_v11 = vpop.f32.mrb[26].mxu0 }
 0xf5d   :  { %v1063_v13 = vmul.f32 0.70710677, %v1057_v63  ;;  %v2473_v24 = vpop.f32.mrb[27].mxu0  ;;  %v1062_v25 = vmul.f32 0.5, %v1057_v63  ;;  %v3219_v63 = vld [vmem:[%s3618_s1 + $0x18] sm:$0xff] }
 0xf5f   :  { %2660 = verf.f32 %v1063_v13 }
 0xf69   :  { %v2661_v15 = vpop.eup %2660 }
 0xf6a   :  { %v1065_v26 = vadd.f32 1.0, %v2661_v15 }
 0xf6c   :  { %v1066_v27 = vmul.f32 %v1065_v26, %v1062_v25 }
 0xf6e   :  { %v1067_v28 = vpack.c.bf16 %v1066_v27, %v1066_v27 }
 0xf70   :  { %2479 = vmatmul.mubr.msk.bf16.vlgmr.msra.gmra.mrb[28].mxu1 %vm169_vm1, %v1067_v28 }
 0xf71   :  { %2483 = vmatpush3.bf16.msra.mxu1 %v2887_v5  ;;  %2486 = vmatprep.mubr.msk.bf16.mxu1 %vm2787_vm0, %v2786_v6 }
 0xf72   :  { %2484 = vmatprep.subr.bf16.mxu1 %v2786_v6 }
 0xf75   :  { %2485 = vmatpush3.bf16.msra.mxu1 %v2900_v7 }
 0xf76   :  { %2496 = vmatprep.subr.bf16.mxu1 %v2786_v6 }
0x1043   :  { %v1105_v17 = vpop.f32.mrb[28].mxu1 }
0x1044   :  { %v1106_v29 = vadd.f32 %v3013_v23, %v1105_v17  ;;  %v2480_v30 = vpop.f32.mrb[29].mxu1 }
0x1045   :  { %v1108_v31 = vpop.f32.mrb[30].mxu1 }
0x1046   :  { %v1112_v32 = vmul.f32 0.70710677, %v1106_v29  ;;  %v2481_v33 = vpop.f32.mrb[31].mxu1  ;;  %v1111_v36 = vmul.f32 0.5, %v1106_v29 }
0x1048   :  { %2662 = verf.f32 %v1112_v32 }
0x1052   :  { %v2663_v34 = vpop.eup %2662 }
0x1053   :  { %v1114_v5 = vadd.f32 1.0, %v2663_v34 }
0x1055   :  { %v1115_v37 = vmul.f32 %v1114_v5, %v1111_v36 }
0x1057   :  { %v1116_v40 = vpack.c.bf16 %v1115_v37, %v1115_v37 }
0x1059   :  { %2313 = vmatmul.mubr.msk.bf16.vlgmr.msra.gmra.mrb[28].mxu0 %vm169_vm1, %v1116_v40 }
0x105a   :  { %2491 = vmatpush3.bf16.msra.mxu0 %v2945_v38  ;;  %2492 = vmatprep.mubr.msk.bf16.mxu0 %vm2787_vm0, %v2786_v6 }
0x105b   :  { %1375 = vmatprep.subr.bf16.mxu0 %v2988_v10 }
0x112c   :  { %v1154_v7 = vpop.f32.mrb[28].mxu0 }
0x112d   :  { %v1156_v41 = vpop.f32.mrb[29].mxu0  ;;  %v1161_v56 = vadd.f32 %v3033_v47, %v1154_v7 }
0x112e   :  { %v1162_v42 = vadd.f32 %v3024_v35, %v1156_v41  ;;  %v1158_v45 = vpop.f32.mrb[30].mxu0 }
0x112f   :  { %v1159_v48 = vpop.f32.mrb[31].mxu0  ;;  %v1170_v0 = vmul.f32 0.125, %v1161_v56 }
0x1130   :  { %2664 = vtanh.f32 %v1162_v42 }
0x1131   :  { %v1171_v8 = vadd.f32 %v1170_v0, %v3161_v61 }
0x113a   :  { %v2665_v49 = vpop.eup %2664 }
0x113b   :  { %v3212_v50 = vmul.f32 4.0, %v2665_v49 }
0x113d   :  { %v1166_v54 = vmul.f32 0.5, %v3212_v50 }
0x113f   :  { %v1167_v55 = vmul.f32 1.442695, %v1166_v54 }
0x1141   :  { %2666 = vpow2.f32 %v1167_v55 }
0x114b   :  { %v2667_v60 = vpop.eup %2666 }
0x114c   :  { %v1169_v62 = vmul.f32 0.35355338, %v2667_v60 }
0x114e   :  { %v1172_v11 = vmul.f32 %v1169_v62, %v3219_v63 }
0x1150   :  { %v3223_v13 = vadd.f32 %v1172_v11, %v1171_v8 }
0x1152   :  { %v2213_v24 = vsel %vm419_vm3, %v3223_v13, 0.0  ;;  %1198 = vperm.xlu1 %2594, %v3223_v13   ;;  %1192 = vperm.xlu0 %2593, %v3223_v13  }
0x1153   :  { %2222 = vst [vmem:[%s3630_s13 + $0x20] sm:$0xff] %v2213_v24 }
0x1156   :  { %2595 = vset.pattern.permute.xlu1 %v2783_v2  ;;  %2596 = vset.pattern.permute.xlu0 %v2785_v4 }
0x1157   :  { %1204 = vperm.xlu1 %2595, %v3223_v13   ;;  %1210 = vperm.xlu0 %2596, %v3223_v13  }
0x115b   :  { %2597 = vset.pattern.permute.xlu1 %v2782_v1  ;;  %2599 = vset.pattern.permute.xlu0 %v2783_v2 }
0x11d1   :  { %v1199_v15 = vpop.permute.xlu1 %1198  ;;  %v1193_v25 = vpop.permute.xlu0 %1192 }
0x11d2   :  { %v1195_v26 = vmul.f32 %v1193_v25, %v2913_v12  ;;  %v1201_v27 = vmul.f32 %v1199_v15, %v2921_v19 }
0x11d4   :  { %v1196_v28 = vadd.f32 %v2926_v20, %v1195_v26 }
0x11d6   :  { %v1205_v17 = vpop.permute.xlu1 %1204  ;;  %v1202_v29 = vadd.f32 %v1201_v27, %v1196_v28  ;;  %v1211_v30 = vpop.permute.xlu0 %1210 }
0x11d7   :  { %v1207_v31 = vmul.f32 %v1205_v17, %v2930_v21  ;;  %v1213_v33 = vmul.f32 %v1211_v30, %v2934_v22 }
0x11d9   :  { %v1208_v32 = vadd.f32 %v1207_v31, %v1202_v29 }
0x11db   :  { %v1214_v34 = vadd.f32 %v1213_v33, %v1208_v32 }
0x11dd   :  { %v1216_v36 = vmul.f32 0.70710677, %v1214_v34  ;;  %v1215_v37 = vmul.f32 0.5, %v1214_v34 }
0x11df   :  { %2668 = verf.f32 %v1216_v36 }
0x11e9   :  { %v2669_v5 = vpop.eup %2668 }
0x11ea   :  { %v1218_v40 = vadd.f32 1.0, %v2669_v5 }
0x11ec   :  { %v1219_v7 = vmul.f32 %v1218_v40, %v1215_v37 }
0x11ee   :  { %v1220_v41 = vpack.c.bf16 %v1219_v7, %v1219_v7 }
0x11f0   :  { %2487 = vmatmul.mubr.msk.bf16.vlgmr.msra.gmra.mrb[32].mxu1 %vm169_vm1, %v1220_v41 }
0x11f1   :  { %2497 = vmatpush3.bf16.msra.mxu1 %v2961_v51  ;;  %2500 = vmatprep.mubr.msk.bf16.mxu1 %vm2787_vm0, %v2786_v6 }
0x11f2   :  { %2498 = vmatprep.subr.bf16.mxu1 %v2786_v6 }
0x11f5   :  { %2499 = vmatpush3.bf16.msra.mxu1 %v2968_v52 }
0x11f6   :  { %2504 = vmatprep.subr.bf16.mxu1 %v2786_v6 }
0x12c3   :  { %v1258_v20 = vpop.f32.mrb[32].mxu1 }
0x12c4   :  { %v1259_v42 = vadd.f32 %v2952_v39, %v1258_v20  ;;  %v2488_v45 = vpop.f32.mrb[33].mxu1  ;;  %v1272_v39 = vsub.s32 4, %v2907_v9 }
0x12c5   :  { %v1261_v48 = vpop.f32.mrb[34].mxu1 }
0x12c6   :  { %v1265_v49 = vmul.f32 0.70710677, %v1259_v42  ;;  %v2489_v54 = vpop.f32.mrb[35].mxu1  ;;  %v1264_v56 = vmul.f32 0.5, %v1259_v42  ;;  %v1273_v52 = vrot.slane %v2975_v53, %v1272_v39  ;;  %v3269_v53 = vld [vmem:[%s3630_s13] sm:$0xff] }
0x12c8   :  { %2670 = verf.f32 %v1265_v49 }
0x12d2   :  { %v2671_v55 = vpop.eup %2670 }
0x12d3   :  { %v1267_v51 = vadd.f32 1.0, %v2671_v55 }
0x12d5   :  { %v1268_v0 = vmul.f32 %v1267_v51, %v1264_v56 }
0x12d7   :  { %v1269_v60 = vpack.c.bf16 %v1268_v0, %v1268_v0 }
0x12d9   :  { %2493 = vmatmul.mubr.msk.bf16.vlgmr.msra.gmra.mrb[32].mxu0 %vm229_vm2, %v1269_v60 }
0x12da   :  { %1376 = vmatpush1.bf16.msra.mxu0 %v2993_v14  ;;  %1407 = vmatprep.mubr.bf16.mxu0 %v2782_v1 }
0x12db   :  { %1377 = vmatprep.subr.bf16.mxu0 %v3000_v16 }
0x12de   :  { %1378 = vmatpush1.bf16.msra.mxu0 %v3005_v18  ;;  %v3277_v18 = vld [vmem:[%s3622_s5 + $0x8] sm:$0xff]  }
0x12df   :  { %2512 = vmatprep.subr.bf16.mxu0 %v2786_v6  ;;  %v3263_v6 = vld [vmem:[%s3622_s5] sm:$0xff]  }
0x13ac   :  { %v1311_v62 = vpop.f32.mrb[32].mxu0 }
0x13ad   :  { %v1312_v8 = vadd.f32 %v1311_v62, %v1273_v52  ;;  %v2494_v11 = vpop.f32.mrb[33].mxu0 }
0x13ae   :  { %v1314_v24 = vpop.f32.mrb[34].mxu0  ;;  %v3318_v11 = vld [vmem:[%s3621_s4] ss:$0 sm:$0xff] }
0x13af   :  { %v1318_v15 = vmul.f32 0.70710677, %v1312_v8  ;;  %v2495_v25 = vpop.f32.mrb[35].mxu0  ;;  %v1317_v26 = vmul.f32 0.5, %v1312_v8 }
0x13b1   :  { %2672 = verf.f32 %v1318_v15 }
0x13bb   :  { %v2673_v14 = vpop.eup %2672 }
0x13bc   :  { %v1320_v27 = vadd.f32 1.0, %v2673_v14 }
0x13be   :  { %v1321_v28 = vmul.f32 %v1320_v27, %v1317_v26 }
0x13c0   :  { %v1322_v16 = vpack.c.bf16 %v1321_v28, %v1321_v28 }
0x13c2   :  { %2501 = vmatmul.mubr.msk.bf16.vlgmr.msra.gmra.mrb[36].mxu1 %vm169_vm1, %v1322_v16 }
0x13c3   :  { %2505 = vmatpush3.bf16.msra.mxu1 %v3263_v6  ;;  %2508 = vmatprep.mubr.msk.bf16.mxu1 %vm2787_vm0, %v3269_v53 }
0x13c4   :  { %2506 = vmatprep.subr.bf16.mxu1 %v3269_v53 }
0x13c7   :  { %2507 = vmatpush3.bf16.msra.mxu1 %v3277_v18 }
0x13c8   :  { %2518 = vmatprep.subr.bf16.mxu1 %v3269_v53 }
0x1495   :  { %v1360_v17 = vpop.f32.mrb[36].mxu1 }
0x1496   :  { %v1361_v29 = vadd.f32 %v3013_v23, %v1360_v17  ;;  %v2502_v30 = vpop.f32.mrb[37].mxu1 }
0x1497   :  { %v1363_v31 = vpop.f32.mrb[38].mxu1 }
0x1498   :  { %v1367_v32 = vmul.f32 0.70710677, %v1361_v29  ;;  %v2503_v33 = vpop.f32.mrb[39].mxu1  ;;  %v1366_v36 = vmul.f32 0.5, %v1361_v29 }
0x149a   :  { %2674 = verf.f32 %v1367_v32 }
0x14a4   :  { %v2675_v34 = vpop.eup %2674 }
0x14a5   :  { %v1369_v5 = vadd.f32 1.0, %v2675_v34  ;;  %v3328_v34 = vld [vmem:[%s3625_s8] sm:$0xff]  }
0x14a7   :  { %v1370_v37 = vmul.f32 %v1369_v5, %v1366_v36  ;;  %v3337_v36 = vld [vmem:[%s3625_s8 + $0x8] sm:$0xff]  }
0x14a9   :  { %v1371_v40 = vpack.c.bf16 %v1370_v37, %v1370_v37  ;;  %v3344_v37 = vld [vmem:[%s3623_s6] ss:$0 sm:$0xff] }
0x14ab   :  { %2317 = vmatmul.mubr.msk.bf16.vlgmr.msra.gmra.mrb[36].mxu0 %vm169_vm1, %v1371_v40 }
0x14ac   :  { %2513 = vmatpush3.bf16.msra.mxu0 %v2945_v38  ;;  %2514 = vmatprep.mubr.msk.bf16.mxu0 %vm2787_vm0, %v3269_v53 }
0x14ad   :  { %1630 = vmatprep.subr.bf16.mxu0 %v2988_v10  ;;  %v3295_v10 = vld [vmem:[%s3618_s1 + $0x20] sm:$0xff] }
0x157e   :  { %v1409_v23 = vpop.f32.mrb[36].mxu0 }
0x157f   :  { %v1411_v7 = vpop.f32.mrb[37].mxu0  ;;  %v1416_v38 = vadd.f32 %v3033_v47, %v1409_v23 }
0x1580   :  { %v1417_v41 = vadd.f32 %v3024_v35, %v1411_v7  ;;  %v1413_v20 = vpop.f32.mrb[38].mxu0 }
0x1581   :  { %v1414_v42 = vpop.f32.mrb[39].mxu0  ;;  %v1425_v55 = vmul.f32 0.125, %v1416_v38 }
0x1582   :  { %2676 = vtanh.f32 %v1417_v41 }
0x1583   :  { %v1426_v35 = vadd.f32 %v1425_v55, %v3223_v13  ;;  %v3351_v55 = vld [vmem:[%s3627_s10] ss:$8 sps:$4 sm:$0xff]  }
0x158c   :  { %v2677_v45 = vpop.eup %2676 }
0x158d   :  { %v3288_v48 = vmul.f32 4.0, %v2677_v45 }
0x158f   :  { %v1421_v49 = vmul.f32 0.5, %v3288_v48 }
0x1591   :  { %v1422_v54 = vmul.f32 1.442695, %v1421_v49 }
0x1593   :  { %2678 = vpow2.f32 %v1422_v54 }
0x159d   :  { %v2679_v56 = vpop.eup %2678 }
0x159e   :  { %v1424_v51 = vmul.f32 0.35355338, %v2679_v56  ;;  %v3358_v56 = vld [vmem:[%s3627_s10 + $0x14] ss:$8 sps:$4 sm:$0xff]  }
0x15a0   :  { %v1427_v0 = vmul.f32 %v1424_v51, %v3295_v10  ;;  %v3364_v51 = vld [vmem:[%s3627_s10 + $0x10] ss:$8 sps:$4 sm:$0xff]  }
0x15a2   :  { %v3299_v60 = vadd.f32 %v1427_v0, %v1426_v35  ;;  %v1527_v35 = vsub.s32 5, %v2907_v9  ;;  %v3372_v0 = vld [vmem:[%s3619_s2] sm:$0xff] }
0x15a4   :  { %v2214_v39 = vsel %vm419_vm3, %v3299_v60, 0.0  ;;  %1459 = vperm.xlu0 %2599, %v3299_v60   ;;  %1447 = vperm.xlu1 %2597, %v3299_v60  }
0x15a5   :  { %2223 = vst [vmem:[%s3630_s13 + $0x28] sm:$0xff] %v2214_v39  ;;  %v1528_v39 = vrot.slane %v3372_v0, %v1527_v35 }
0x15a8   :  { %2598 = vset.pattern.permute.xlu1 %v2784_v3  ;;  %2602 = vset.pattern.permute.xlu0 %v2784_v3 }
0x15a9   :  { %1453 = vperm.xlu1 %2598, %v3299_v60  }
0x15ad   :  { %2600 = vset.pattern.permute.xlu1 %v2785_v4 }
0x15ae   :  { %1465 = vperm.xlu1 %2600, %v3299_v60  }
0x15b2   :  { %2601 = vset.pattern.permute.xlu1 %v2782_v1 }
0x1623   :  { %v1448_v47 = vpop.permute.xlu1 %1447  ;;  %v1460_v62 = vpop.permute.xlu0 %1459 }
0x1624   :  { %v1450_v52 = vmul.f32 %v1448_v47, %v2913_v12  ;;  %v1462_v25 = vmul.f32 %v1460_v62, %v2930_v21 }
0x1626   :  { %v1451_v24 = vadd.f32 %v3318_v11, %v1450_v52 }
0x1628   :  { %v1454_v8 = vpop.permute.xlu1 %1453 }
0x1629   :  { %v1456_v15 = vmul.f32 %v1454_v8, %v2921_v19 }
0x162b   :  { %v1457_v14 = vadd.f32 %v1456_v15, %v1451_v24 }
0x162d   :  { %v1463_v26 = vadd.f32 %v1462_v25, %v1457_v14  ;;  %v1466_v27 = vpop.permute.xlu1 %1465 }
0x162e   :  { %v1468_v28 = vmul.f32 %v1466_v27, %v2934_v22 }
0x1630   :  { %v1469_v16 = vadd.f32 %v1468_v28, %v1463_v26 }
0x1632   :  { %v1471_v17 = vmul.f32 0.70710677, %v1469_v16  ;;  %v1470_v30 = vmul.f32 0.5, %v1469_v16 }
0x1634   :  { %2680 = verf.f32 %v1471_v17  ;;  %v3385_v17 = vld [vmem:[%s3626_s9] ss:$0 sm:$0xff] }
0x163e   :  { %v2681_v29 = vpop.eup %2680 }
0x163f   :  { %v1473_v31 = vadd.f32 1.0, %v2681_v29 }
0x1641   :  { %v1474_v32 = vmul.f32 %v1473_v31, %v1470_v30 }
0x1643   :  { %v1475_v33 = vpack.c.bf16 %v1474_v32, %v1474_v32 }
0x1645   :  { %2509 = vmatmul.mubr.msk.bf16.vlgmr.msra.gmra.mrb[40].mxu1 %vm169_vm1, %v1475_v33 }
0x1646   :  { %2519 = vmatpush3.bf16.msra.mxu1 %v3328_v34  ;;  %2522 = vmatprep.mubr.msk.bf16.mxu1 %vm2787_vm0, %v3269_v53 }
0x1647   :  { %2520 = vmatprep.subr.bf16.mxu1 %v3269_v53 }
0x164a   :  { %2521 = vmatpush3.bf16.msra.mxu1 %v3337_v36 }
0x164b   :  { %2526 = vmatprep.subr.bf16.mxu1 %v3269_v53 }
0x1718   :  { %v1513_v5 = vpop.f32.mrb[40].mxu1 }
0x1719   :  { %v1514_v40 = vadd.f32 %v3344_v37, %v1513_v5  ;;  %v2510_v23 = vpop.f32.mrb[41].mxu1 }
0x171a   :  { %v1516_v7 = vpop.f32.mrb[42].mxu1 }
0x171b   :  { %v1520_v41 = vmul.f32 0.70710677, %v1514_v40  ;;  %v2511_v20 = vpop.f32.mrb[43].mxu1  ;;  %v1519_v45 = vmul.f32 0.5, %v1514_v40 }
0x171c   :  { %v3392_v20 = vld [vmem:[%s3624_s7] sm:$0xff]  }
0x171d   :  { %2682 = verf.f32 %v1520_v41 }
0x1727   :  { %v2683_v42 = vpop.eup %2682 }
0x1728   :  { %v1522_v49 = vadd.f32 1.0, %v2683_v42  ;;  %v3400_v42 = vld [vmem:[%s3627_s10 + $0x4] ss:$8 sps:$4 sm:$0xff]  }
0x172a   :  { %v1523_v54 = vmul.f32 %v1522_v49, %v1519_v45 }
0x172c   :  { %v1524_v38 = vpack.c.bf16 %v1523_v54, %v1523_v54  ;;  %v3406_v54 = vld [vmem:[%s3629_s12] ss:$0 sm:$0xff] }
0x172e   :  { %2515 = vmatmul.mubr.msk.bf16.vlgmr.msra.gmra.mrb[40].mxu0 %vm229_vm2, %v1524_v38 }
0x172f   :  { %1631 = vmatpush1.bf16.msra.mxu0 %v3351_v55  ;;  %1662 = vmatprep.mubr.bf16.mxu0 %v2782_v1 }
0x1730   :  { %1632 = vmatprep.subr.bf16.mxu0 %v3358_v56 }
0x1733   :  { %1633 = vmatpush1.bf16.msra.mxu0 %v3364_v51 }
0x1734   :  { %2534 = vmatprep.subr.bf16.mxu0 %v3269_v53 }
0x1801   :  { %v1566_v47 = vpop.f32.mrb[40].mxu0 }
0x1802   :  { %v1567_v52 = vadd.f32 %v1566_v47, %v1528_v39  ;;  %v2516_v62 = vpop.f32.mrb[41].mxu0 }
0x1803   :  { %v1569_v8 = vpop.f32.mrb[42].mxu0 }
0x1804   :  { %v1573_v24 = vmul.f32 0.70710677, %v1567_v52  ;;  %v2517_v15 = vpop.f32.mrb[43].mxu0  ;;  %v1572_v14 = vmul.f32 0.5, %v1567_v52 }
0x1806   :  { %2684 = verf.f32 %v1573_v24  ;;  %v3415_v24 = vld [vmem:[%s3628_s11] ss:$0 sm:$0xff] }
0x1810   :  { %v2685_v25 = vpop.eup %2684 }
0x1811   :  { %v1575_v26 = vadd.f32 1.0, %v2685_v25 }
0x1813   :  { %v1576_v27 = vmul.f32 %v1575_v26, %v1572_v14 }
0x1815   :  { %v1577_v28 = vpack.c.bf16 %v1576_v27, %v1576_v27  ;;  %v3421_v27 = vld [vmem:[%s3618_s1 + $0x28] sm:$0xff] }
0x1817   :  { %2523 = vmatmul.mubr.msk.bf16.vlgmr.msra.gmra.mrb[44].mxu1 %vm169_vm1, %v1577_v28 }
0x1818   :  { %2527 = vmatpush3.bf16.msra.mxu1 %v3263_v6  ;;  %2530 = vmatprep.mubr.msk.bf16.mxu1 %vm2787_vm0, %v3269_v53 }
0x1819   :  { %2528 = vmatprep.subr.bf16.mxu1 %v3269_v53 }
0x181c   :  { %2529 = vmatpush3.bf16.msra.mxu1 %v3277_v18 }
0x181d   :  { %2540 = vmatprep.subr.bf16.mxu1 %v3269_v53 }
0x18ea   :  { %v1615_v16 = vpop.f32.mrb[44].mxu1 }
0x18eb   :  { %v1616_v29 = vadd.f32 %v3385_v17, %v1615_v16  ;;  %v2524_v30 = vpop.f32.mrb[45].mxu1 }
0x18ec   :  { %v1618_v31 = vpop.f32.mrb[46].mxu1 }
0x18ed   :  { %v1622_v32 = vmul.f32 0.70710677, %v1616_v29  ;;  %v2525_v33 = vpop.f32.mrb[47].mxu1  ;;  %v1621_v40 = vmul.f32 0.5, %v1616_v29 }
0x18ef   :  { %2686 = verf.f32 %v1622_v32 }
0x18f9   :  { %v2687_v5 = vpop.eup %2686 }
0x18fa   :  { %v1624_v23 = vadd.f32 1.0, %v2687_v5 }
0x18fc   :  { %v1625_v7 = vmul.f32 %v1624_v23, %v1621_v40 }
0x18fe   :  { %v1626_v41 = vpack.c.bf16 %v1625_v7, %v1625_v7 }
0x1900   :  { %2321 = vmatmul.mubr.msk.bf16.vlgmr.msra.gmra.mrb[44].mxu0 %vm169_vm1, %v1626_v41 }
0x1901   :  { %2535 = vmatpush3.bf16.msra.mxu0 %v3392_v20  ;;  %2536 = vmatprep.mubr.msk.bf16.mxu0 %vm2787_vm0, %v3269_v53 }
0x1902   :  { %1885 = vmatprep.subr.bf16.mxu0 %v3400_v42 }
0x19d3   :  { %v1664_v45 = vpop.f32.mrb[44].mxu0 }
0x19d4   :  { %v1666_v49 = vpop.f32.mrb[45].mxu0  ;;  %v1671_v15 = vadd.f32 %v3415_v24, %v1664_v45 }
0x19d5   :  { %v1672_v38 = vadd.f32 %v3406_v54, %v1666_v49  ;;  %v1668_v35 = vpop.f32.mrb[46].mxu0 }
0x19d6   :  { %v1669_v39 = vpop.f32.mrb[47].mxu0  ;;  %v1680_v25 = vmul.f32 0.125, %v1671_v15 }
0x19d7   :  { %2688 = vtanh.f32 %v1672_v38 }
0x19d8   :  { %v1681_v28 = vadd.f32 %v1680_v25, %v3299_v60 }
0x19e1   :  { %v2689_v47 = vpop.eup %2688 }
0x19e2   :  { %v3409_v52 = vmul.f32 4.0, %v2689_v47 }
0x19e4   :  { %v1676_v62 = vmul.f32 0.5, %v3409_v52 }
0x19e6   :  { %v1677_v8 = vmul.f32 1.442695, %v1676_v62 }
0x19e8   :  { %2690 = vpow2.f32 %v1677_v8 }
0x19f2   :  { %v2691_v14 = vpop.eup %2690 }
0x19f3   :  { %v1679_v26 = vmul.f32 0.35355338, %v2691_v14 }
0x19f5   :  { %v1682_v16 = vmul.f32 %v1679_v26, %v3421_v27 }
0x19f7   :  { %v3425_v29 = vadd.f32 %v1682_v16, %v1681_v28 }
0x19f9   :  { %v2215_v30 = vsel %vm419_vm3, %v3425_v29, 0.0  ;;  %1708 = vperm.xlu0 %2602, %v3425_v29   ;;  %1702 = vperm.xlu1 %2601, %v3425_v29  }
0x19fa   :  { %2224 = vst [vmem:[%s3630_s13 + $0x30] sm:$0xff] %v2215_v30 }
0x19fd   :  { %2603 = vset.pattern.permute.xlu1 %v2783_v2  ;;  %2605 = vset.pattern.permute.xlu0 %v2782_v1 }
0x19fe   :  { %1714 = vperm.xlu1 %2603, %v3425_v29  }
0x1a02   :  { %2604 = vset.pattern.permute.xlu1 %v2785_v4 }
0x1a03   :  { %1720 = vperm.xlu1 %2604, %v3425_v29  }
0x1a07   :  { %2606 = vset.pattern.permute.xlu1 %v2784_v3 }
0x1a78   :  { %v1703_v31 = vpop.permute.xlu1 %1702  ;;  %v1709_v33 = vpop.permute.xlu0 %1708 }
0x1a79   :  { %v1705_v32 = vmul.f32 %v1703_v31, %v2913_v12  ;;  %v1711_v40 = vmul.f32 %v1709_v33, %v2921_v19 }
0x1a7b   :  { %v1706_v5 = vadd.f32 %v3318_v11, %v1705_v32 }
0x1a7d   :  { %v1715_v23 = vpop.permute.xlu1 %1714  ;;  %v1712_v7 = vadd.f32 %v1711_v40, %v1706_v5 }
0x1a7e   :  { %v1717_v41 = vmul.f32 %v1715_v23, %v2930_v21  ;;  %v1782_v23 = vsub.s32 6, %v2907_v9 }
0x1a80   :  { %v1718_v49 = vadd.f32 %v1717_v41, %v1712_v7  ;;  %v1783_v7 = vrot.slane %v3372_v0, %v1782_v23 }
0x1a82   :  { %v1721_v45 = vpop.permute.xlu1 %1720 }
0x1a83   :  { %v1723_v38 = vmul.f32 %v1721_v45, %v2934_v22 }
0x1a85   :  { %v1724_v35 = vadd.f32 %v1723_v38, %v1718_v49 }
0x1a87   :  { %v1726_v39 = vmul.f32 0.70710677, %v1724_v35  ;;  %v1725_v47 = vmul.f32 0.5, %v1724_v35 }
0x1a89   :  { %2692 = verf.f32 %v1726_v39 }
0x1a93   :  { %v2693_v3 = vpop.eup %2692 }
0x1a94   :  { %v1728_v62 = vadd.f32 1.0, %v2693_v3 }
0x1a96   :  { %v1729_v8 = vmul.f32 %v1728_v62, %v1725_v47 }
0x1a98   :  { %v1730_v15 = vpack.c.bf16 %v1729_v8, %v1729_v8 }
0x1a9a   :  { %2531 = vmatmul.mubr.msk.bf16.vlgmr.msra.gmra.mrb[48].mxu1 %vm169_vm1, %v1730_v15 }
0x1a9b   :  { %2541 = vmatpush3.bf16.msra.mxu1 %v3328_v34  ;;  %2544 = vmatprep.mubr.msk.bf16.mxu1 %vm2787_vm0, %v3269_v53 }
0x1a9c   :  { %2542 = vmatprep.subr.bf16.mxu1 %v3269_v53 }
0x1a9f   :  { %2543 = vmatpush3.bf16.msra.mxu1 %v3337_v36 }
0x1aa0   :  { %2548 = vmatprep.subr.bf16.mxu1 %v3269_v53 }
0x1b6d   :  { %v1768_v25 = vpop.f32.mrb[48].mxu1 }
0x1b6e   :  { %v1769_v14 = vadd.f32 %v3344_v37, %v1768_v25  ;;  %v2532_v26 = vpop.f32.mrb[49].mxu1 }
0x1b6f   :  { %v1771_v28 = vpop.f32.mrb[50].mxu1 }
0x1b70   :  { %v1775_v16 = vmul.f32 0.70710677, %v1769_v14  ;;  %v2533_v30 = vpop.f32.mrb[51].mxu1  ;;  %v1774_v32 = vmul.f32 0.5, %v1769_v14 }
0x1b72   :  { %2694 = verf.f32 %v1775_v16 }
0x1b7c   :  { %v2695_v31 = vpop.eup %2694 }
0x1b7d   :  { %v1777_v33 = vadd.f32 1.0, %v2695_v31 }
0x1b7f   :  { %v1778_v5 = vmul.f32 %v1777_v33, %v1774_v32 }
0x1b81   :  { %v1779_v40 = vpack.c.bf16 %v1778_v5, %v1778_v5 }
0x1b83   :  { %2537 = vmatmul.mubr.msk.bf16.vlgmr.msra.gmra.mrb[48].mxu0 %vm229_vm2, %v1779_v40 }
0x1b84   :  { %1886 = vmatpush1.bf16.msra.mxu0 %v3351_v55  ;;  %1917 = vmatprep.mubr.bf16.mxu0 %v2782_v1 }
0x1b85   :  { %1887 = vmatprep.subr.bf16.mxu0 %v3358_v56 }
0x1b88   :  { %1888 = vmatpush1.bf16.msra.mxu0 %v3364_v51 }
0x1b89   :  { %2556 = vmatprep.subr.bf16.mxu0 %v3269_v53 }
0x1c56   :  { %v1821_v41 = vpop.f32.mrb[48].mxu0 }
0x1c57   :  { %v1822_v45 = vadd.f32 %v1821_v41, %v1783_v7  ;;  %v2538_v49 = vpop.f32.mrb[49].mxu0 }
0x1c58   :  { %v1824_v38 = vpop.f32.mrb[50].mxu0 }
0x1c59   :  { %v1828_v35 = vmul.f32 0.70710677, %v1822_v45  ;;  %v2539_v39 = vpop.f32.mrb[51].mxu0  ;;  %v1827_v47 = vmul.f32 0.5, %v1822_v45 }
0x1c5b   :  { %2696 = verf.f32 %v1828_v35 }
0x1c65   :  { %v2697_v3 = vpop.eup %2696 }
0x1c66   :  { %v1830_v62 = vadd.f32 1.0, %v2697_v3 }
0x1c68   :  { %v1831_v8 = vmul.f32 %v1830_v62, %v1827_v47 }
0x1c6a   :  { %v1832_v15 = vpack.c.bf16 %v1831_v8, %v1831_v8 }
0x1c6c   :  { %2545 = vmatmul.mubr.msk.bf16.vlgmr.msra.gmra.mrb[52].mxu1 %vm169_vm1, %v1832_v15 }
0x1c6d   :  { %2549 = vmatpush3.bf16.msra.mxu1 %v3263_v6  ;;  %2552 = vmatprep.mubr.msk.bf16.mxu1 %vm2787_vm0, %v3269_v53 }
0x1c6e   :  { %2550 = vmatprep.subr.bf16.mxu1 %v3269_v53 }
0x1c71   :  { %2551 = vmatpush3.bf16.msra.mxu1 %v3277_v18 }
0x1c72   :  { %2562 = vmatprep.subr.bf16.mxu1 %v3269_v53 }
0x1d3f   :  { %v1870_v25 = vpop.f32.mrb[52].mxu1 }
0x1d40   :  { %v1871_v14 = vadd.f32 %v3385_v17, %v1870_v25  ;;  %v2546_v26 = vpop.f32.mrb[53].mxu1 }
0x1d41   :  { %v1873_v28 = vpop.f32.mrb[54].mxu1 }
0x1d42   :  { %v1877_v16 = vmul.f32 0.70710677, %v1871_v14  ;;  %v2547_v30 = vpop.f32.mrb[55].mxu1  ;;  %v1876_v32 = vmul.f32 0.5, %v1871_v14  ;;  %v2732_v14 = vld [vmem:[%s3618_s1 + $0x8] sm:$0xff]  ;;  %v671_v28 = vmul.f32 0.5, %v3099_v59 }
0x1d43   :  { %v664_v26 = vmul.f32 %v2732_v14, %v2732_v14  ;;  %v919_v30 = vmul.f32 %v3157_v57, %v3157_v57 }
0x1d44   :  { %2698 = verf.f32 %v1877_v16 }
0x1d45   :  { %v665_v16 = vadd.f32 %v664_v26, %v3091_v43 }
0x1d4e   :  { %v2699_v31 = vpop.eup %2698 }
0x1d4f   :  { %v1879_v6 = vadd.f32 1.0, %v2699_v31 }
0x1d51   :  { %v1880_v33 = vmul.f32 %v1879_v6, %v1876_v32  ;;  %v672_v32 = vsub.f32 %v3040_v58, %v671_v28  ;;  %v666_v6 = vsel %vm419_vm3, %v665_v16, 0.0  ;;  %v1429_v58 = vmul.f32 %v3295_v10, %v3295_v10 }
0x1d53   :  { %v1881_v5 = vpack.c.bf16 %v1880_v33, %v1880_v33  ;;  %v920_v33 = vadd.f32 %v919_v30, %v3150_v46 }
0x1d55   :  { %2325 = vmatmul.mubr.msk.bf16.vlgmr.msra.gmra.mrb[52].mxu0 %vm169_vm1, %v1881_v5  ;;  %v1174_v5 = vmul.f32 %v3219_v63, %v3219_v63 }
0x1d56   :  { %2557 = vmatpush3.bf16.msra.mxu0 %v3392_v20  ;;  %2558 = vmatprep.mubr.msk.bf16.mxu0 %vm2787_vm0, %v3269_v53 }
0x1d57   :  { %2140 = vmatprep.subr.bf16.mxu0 %v3400_v42  ;;  %v107_v42 = vld [vmem:[%s3618_s1 + $0x30] sm:$0xff] }
0x1e28   :  { %v1919_v18 = vpop.f32.mrb[52].mxu0 }
0x1e29   :  { %v1921_v40 = vpop.f32.mrb[53].mxu0  ;;  %v1926_v20 = vadd.f32 %v3415_v24, %v1919_v18  ;;  %v673_v18 = vmul.f32 4.0, %v672_v32 }
0x1e2a   :  { %v1927_v23 = vadd.f32 %v3406_v54, %v1921_v40  ;;  %v1923_v7 = vpop.f32.mrb[54].mxu0  ;;  %v1181_v40 = vmul.f32 0.75, %v3223_v13 }
0x1e2b   :  { %v1924_v41 = vpop.f32.mrb[55].mxu0  ;;  %v1935_v39 = vmul.f32 0.125, %v1926_v20  ;;  %v1175_v7 = vadd.f32 %v1174_v5, %v3212_v50  ;;  %v674_v63 = vmul.f32 %v673_v18, %v673_v18  ;;  %v1684_v50 = vmul.f32 %v3421_v27, %v3421_v27 }
0x1e2c   :  { %2700 = vtanh.f32 %v1927_v23  ;;  %v921_v23 = vsel %vm419_vm3, %v920_v33, 0.0 }
0x1e2d   :  { %v1936_v62 = vadd.f32 %v1935_v39, %v3425_v29  ;;  %v675_v10 = vsel %vm419_vm3, %v674_v63, 0.0 }
0x1e36   :  { %v2701_v45 = vpop.eup %2700 }
0x1e37   :  { %v3475_v49 = vmul.f32 4.0, %v2701_v45  ;;  %v1436_v45 = vmul.f32 0.8, %v3299_v60 }
0x1e39   :  { %v1931_v38 = vmul.f32 0.5, %v3475_v49  ;;  %v1437_v39 = vsub.f32 %v3223_v13, %v1436_v45 }
0x1e3b   :  { %v1932_v35 = vmul.f32 1.442695, %v1931_v38  ;;  %v1430_v38 = vadd.f32 %v1429_v58, %v3288_v48  ;;  %v1939_v48 = vmul.f32 %v107_v42, %v107_v42 }
0x1e3d   :  { %2702 = vpow2.f32 %v1932_v35  ;;  %v1940_v26 = vadd.f32 %v1939_v48, %v3475_v49 }
0x1e47   :  { %v2703_v3 = vpop.eup %2702 }
0x1e48   :  { %v1934_v47 = vmul.f32 0.35355338, %v2703_v3  ;;  %v1691_v3 = vmul.f32 0.8333333, %v3425_v29 }
0x1e4a   :  { %v1937_v8 = vmul.f32 %v1934_v47, %v107_v42  ;;  %v1692_v27 = vsub.f32 %v3299_v60, %v1691_v3  ;;  %v1941_v42 = vsel %vm419_vm3, %v1940_v26, 0.0 }
0x1e4c   :  { %v3483_v15 = vadd.f32 %v1937_v8, %v1936_v62  ;;  %v1685_v62 = vadd.f32 %v1684_v50, %v3409_v52  ;;  %v1693_v30 = vmul.f32 3.0983868, %v1692_v27 }
0x1e4e   :  { %v2216_v25 = vsel %vm419_vm3, %v3483_v15, 0.0  ;;  %1963 = vperm.xlu1 %2606, %v3483_v15   ;;  %1957 = vperm.xlu0 %2605, %v3483_v15   ;;  %v1946_v14 = vmul.f32 0.85714287, %v3483_v15  ;;  %v1686_v13 = vsel %vm419_vm3, %v1685_v62, 0.0 }
0x1e4f   :  { %2225 = vst [vmem:[%s3630_s13 + $0x38] sm:$0xff] %v2216_v25  ;;  %v1438_v25 = vmul.f32 3.1622777, %v1437_v39 }
0x1e50   :  { %v1947_v52 = vsub.f32 %v3425_v29, %v1946_v14 }
0x1e51   :  { %v1439_v16 = vmul.f32 %v1438_v25, %v1438_v25 }
0x1e52   :  { %2607 = vset.pattern.permute.xlu1 %v2783_v2  ;;  %2608 = vset.pattern.permute.xlu0 %v2785_v4  ;;  %v926_v2 = vmul.f32 0.6666667, %v3161_v61  ;;  %v2733_v4 = vld [vmem:[%s3618_s1] sm:$0xff] }
0x1e53   :  { %1969 = vperm.xlu1 %2607, %v3483_v15   ;;  %1975 = vperm.xlu0 %2608, %v3483_v15   ;;  %v417_v31 = vmul.f32 %v2733_v4, %v2733_v4  ;;  %v1440_v60 = vsel %vm419_vm3, %v1439_v16, 0.0  ;;  %v1948_v4 = vmul.f32 3.0550504, %v1947_v52 }
0x1e54   :  { %v927_v43 = vsub.f32 %v3099_v59, %v926_v2  ;;  %v1182_v59 = vsub.f32 %v3161_v61, %v1181_v40  ;;  %v1431_v61 = vsel %vm419_vm3, %v1430_v38, 0.0  ;;  %v1694_v2 = vmul.f32 %v1693_v30, %v1693_v30 }
0x1e55   :  { %v418_v57 = vadd.f32 %v417_v31, %v3027_v44  ;;  %v1176_v44 = vsel %vm419_vm3, %v1175_v7, 0.0  ;;  %v1949_v32 = vmul.f32 %v1948_v4, %v1948_v4 }
0x1e56   :  { %v928_v41 = vmul.f32 3.4641016, %v927_v43  ;;  %v1183_v20 = vmul.f32 3.2659864, %v1182_v59  ;;  %v1695_v31 = vsel %vm419_vm3, %v1694_v2, 0.0 }
0x1e57   :  { %v420_v46 = vsel %vm419_vm3, %v418_v57, 0.0  ;;  %v1950_v49 = vsel %vm419_vm3, %v1949_v32, 0.0 }
0x1e58   :  { %v929_v35 = vmul.f32 %v928_v41, %v928_v41  ;;  %v1184_v8 = vmul.f32 %v1183_v20, %v1183_v20 }
0x1e5a   :  { %v930_v47 = vsel %vm419_vm3, %v929_v35, 0.0  ;;  %v1185_v28 = vsel %vm419_vm3, %v1184_v8, 0.0 }
0x1e72   :  { %667 = vadd.xlane.f32.xlu0 %v666_v6 }
0x1e76   :  { %922 = vadd.xlane.f32.xlu0 %v921_v23 }
0x1e77   :  { %421 = vadd.xlane.f32.xlu1 %v420_v46 }
0x1e7a   :  { %1177 = vadd.xlane.f32.xlu0 %v1176_v44 }
0x1e7b   :  { %676 = vadd.xlane.f32.xlu1 %v675_v10 }
0x1e7e   :  { %1432 = vadd.xlane.f32.xlu0 %v1431_v61 }
0x1e7f   :  { %931 = vadd.xlane.f32.xlu1 %v930_v47 }
0x1e82   :  { %1687 = vadd.xlane.f32.xlu0 %v1686_v13 }
0x1e83   :  { %1186 = vadd.xlane.f32.xlu1 %v1185_v28 }
0x1e86   :  { %1942 = vadd.xlane.f32.xlu0 %v1941_v42 }
0x1e87   :  { %1441 = vadd.xlane.f32.xlu1 %v1440_v60 }
0x1e8b   :  { %1696 = vadd.xlane.f32.xlu1 %v1695_v31 }
0x1e8f   :  { %1951 = vadd.xlane.f32.xlu1 %v1950_v49 }
0x1ecd   :  { %v1964_v6 = vpop.permute.xlu1 %1963  ;;  %v1958_v33 = vpop.permute.xlu0 %1957 }
0x1ece   :  { %v1960_v29 = vmul.f32 %v1958_v33, %v2913_v12  ;;  %v1966_v5 = vmul.f32 %v1964_v6, %v2921_v19 }
0x1ed0   :  { %v1961_v43 = vadd.f32 %v3318_v11, %v1960_v29 }
0x1ed2   :  { %v1970_v57 = vpop.permute.xlu1 %1969  ;;  %v1967_v18 = vadd.f32 %v1966_v5, %v1961_v43  ;;  %v1976_v40 = vpop.permute.xlu0 %1975 }
0x1ed3   :  { %v1972_v23 = vmul.f32 %v1970_v57, %v2930_v21  ;;  %v1978_v58 = vmul.f32 %v1976_v40, %v2934_v22 }
0x1ed5   :  { %v1973_v7 = vadd.f32 %v1972_v23, %v1967_v18 }
0x1ed7   :  { %v1979_v41 = vadd.f32 %v1978_v58, %v1973_v7 }
0x1ed9   :  { %v1981_v46 = vmul.f32 0.70710677, %v1979_v41  ;;  %v1980_v59 = vmul.f32 0.5, %v1979_v41 }
0x1edb   :  { %2704 = verf.f32 %v1981_v46 }
0x1ee5   :  { %v2705_v63 = vpop.eup %2704 }
0x1ee6   :  { %v1983_v45 = vadd.f32 1.0, %v2705_v63 }
0x1ee8   :  { %v1984_v44 = vmul.f32 %v1983_v45, %v1980_v59 }
0x1eea   :  { %v1985_v12 = vpack.c.bf16 %v1984_v44, %v1984_v44 }
0x1eec   :  { %2553 = vmatmul.mubr.msk.bf16.vlgmr.msra.gmra.mrb[56].mxu1 %vm169_vm1, %v1985_v12 }
0x1eed   :  { %2563 = vmatpush3.bf16.msra.mxu1 %v3328_v34  ;;  %2566 = vmatprep.mubr.msk.bf16.mxu1 %vm2787_vm0, %v3269_v53 }
0x1eee   :  { %2564 = vmatprep.subr.bf16.mxu1 %v3269_v53  ;;  %v2037_v53 = vsub.s32 7, %v2907_v9 }
0x1ef1   :  { %2565 = vmatpush3.bf16.msra.mxu1 %v3337_v36  ;;  %v2038_v36 = vrot.slane %v3372_v0, %v2037_v53 }
0x1eff   :  { %v668_v44 = vpop.xlane.xlu0 %667 }
0x1f03   :  { %v923_v12 = vpop.xlane.xlu0 %922 }
0x1fbf   :  { %v2023_v19 = vpop.f32.mrb[56].mxu1 }
0x1fc0   :  { %v2024_v21 = vadd.f32 %v3344_v37, %v2023_v19  ;;  %v2554_v22 = vpop.f32.mrb[57].mxu1  ;;  %v1178_v19 = vpop.xlane.xlu0 %1177 }
0x1fc1   :  { %v2026_v11 = vpop.f32.mrb[58].mxu1  ;;  %v422_v22 = vpop.xlane.xlu1 %421 }
0x1fc2   :  { %v2030_v38 = vmul.f32 0.70710677, %v2024_v21  ;;  %v2555_v35 = vpop.f32.mrb[59].mxu1  ;;  %v2029_v10 = vmul.f32 0.5, %v2024_v21  ;;  %v423_v11 = vadd.f32 -0.96625793, %v422_v22 }
0x1fc3   :  { %v669_v35 = vadd.f32 -0.96625793, %v668_v44 }
0x1fc4   :  { %2706 = verf.f32 %v2030_v38  ;;  %v1433_v21 = vpop.xlane.xlu0 %1432 }
0x1fc5   :  { %v1434_v53 = vadd.f32 -0.96625793, %v1433_v21 }
0x1fc8   :  { %v1688_v38 = vpop.xlane.xlu0 %1687 }
0x1fce   :  { %v2707_v50 = vpop.eup %2706 }
0x1fcf   :  { %v2032_v20 = vadd.f32 1.0, %v2707_v50  ;;  %v677_v50 = vpop.xlane.xlu1 %676 }
0x1fd1   :  { %v2033_v39 = vmul.f32 %v2032_v20, %v2029_v10  ;;  %v424_v10 = vmul.f32 -0.5, %v423_v11  ;;  %v924_v20 = vadd.f32 -0.96625793, %v923_v12 }
0x1fd3   :  { %v2034_v34 = vpack.c.bf16 %v2033_v39, %v2033_v39  ;;  %v670_v39 = vmul.f32 -0.5, %v669_v35 }
0x1fd5   :  { %2559 = vmatmul.mubr.msk.bf16.vlgmr.msra.gmra.mrb[56].mxu0 %vm229_vm2, %v2034_v34  ;;  %v1179_v34 = vadd.f32 -0.96625793, %v1178_v19 }
0x1fd6   :  { %2141 = vmatpush1.bf16.msra.mxu0 %v3351_v55  ;;  %2172 = vmatprep.mubr.bf16.mxu0 %v2782_v1 }
0x1fd7   :  { %2142 = vmatprep.subr.bf16.mxu0 %v3358_v56 }
0x1fda   :  { %2143 = vmatpush1.bf16.msra.mxu0 %v3364_v51 }
0x20a8   :  { %v2076_v37 = vpop.f32.mrb[56].mxu0 }
0x20a9   :  { %v2077_v3 = vadd.f32 %v2076_v37, %v2038_v36  ;;  %v2560_v61 = vpop.f32.mrb[57].mxu0  ;;  %v2228_v36 = vsel %vm2227_vm4, %v424_v10, %v670_v39  ;;  %v1689_v37 = vadd.f32 -0.96625793, %v1688_v38 }
0x20aa   :  { %v2079_v47 = vpop.f32.mrb[58].mxu0  ;;  %v932_v61 = vpop.xlane.xlu1 %931 }
0x20ab   :  { %v2083_v62 = vmul.f32 0.70710677, %v2077_v3  ;;  %v2561_v48 = vpop.f32.mrb[59].mxu0  ;;  %v2082_v25 = vmul.f32 0.5, %v2077_v3  ;;  %v925_v3 = vmul.f32 -0.5, %v924_v20 }
0x20ad   :  { %2708 = verf.f32 %v2083_v62  ;;  %v1180_v62 = vmul.f32 -0.5, %v1179_v34  ;;  %v2230_v48 = vsel %vm2229_vm5, %v2228_v36, %v925_v3 }
0x20b7   :  { %v2709_v8 = vpop.eup %2708 }
0x20b8   :  { %v2085_v55 = vadd.f32 1.0, %v2709_v8  ;;  %v1435_v8 = vmul.f32 -0.5, %v1434_v53 }
0x20ba   :  { %v2086_v27 = vmul.f32 %v2085_v55, %v2082_v25  ;;  %v1690_v25 = vmul.f32 -0.5, %v1689_v37 }
0x20bc   :  { %v2087_v1 = vpack.c.bf16 %v2086_v27, %v2086_v27 }
0x20be   :  { %2567 = vmatmul.mubr.msk.bf16.vlgmr.msra.gmra.mrb[60].mxu1 %vm169_vm1, %v2087_v1  ;;  %v2232_v1 = vsel %vm2231_vm6, %v2230_v48, %v1180_v62 }
0x2191   :  { %v2125_v56 = vpop.f32.mrb[60].mxu1 }
0x2192   :  { %v2126_v51 = vadd.f32 %v3385_v17, %v2125_v56  ;;  %v2568_v9 = vpop.f32.mrb[61].mxu1  ;;  %v108_v17 = vld [vmem:[%s3618_s1 + $0x38] sm:$0xff] }
0x2193   :  { %v2128_v14 = vpop.f32.mrb[62].mxu1  ;;  %v2194_v32 = vmul.f32 %v108_v17, %v108_v17  ;;  %v1187_v9 = vpop.xlane.xlu1 %1186 }
0x2194   :  { %v2132_v0 = vmul.f32 0.70710677, %v2126_v51  ;;  %v2569_v13 = vpop.f32.mrb[63].mxu1  ;;  %v2131_v28 = vmul.f32 0.5, %v2126_v51  ;;  %v2233_v51 = vsel %vm419_vm3, %v2232_v1, %v1435_v8 }
0x2195   :  { %v2235_v14 = vsel %vm2234_vm7, %v2233_v51, %v1690_v25 }
0x2196   :  { %2710 = verf.f32 %v2132_v0 }
0x21a0   :  { %v2711_v26 = vpop.eup %2710 }
0x21a1   :  { %v2134_v16 = vadd.f32 1.0, %v2711_v26 }
0x21a3   :  { %v2135_v30 = vmul.f32 %v2134_v16, %v2131_v28  ;;  %v1442_v16 = vpop.xlane.xlu1 %1441 }
0x21a5   :  { %v2136_v52 = vpack.c.bf16 %v2135_v30, %v2135_v30 }
0x21a7   :  { %2329 = vmatmul.mubr.msk.bf16.vlgmr.msra.gmra.mrb[60].mxu0 %vm169_vm1, %v2136_v52 }
0x227a   :  { %v2174_v42 = vpop.f32.mrb[60].mxu0 }
0x227b   :  { %v2176_v60 = vpop.f32.mrb[61].mxu0  ;;  %v2181_v57 = vadd.f32 %v3415_v24, %v2174_v42 }
0x227c   :  { %v2182_v2 = vadd.f32 %v3406_v54, %v2176_v60  ;;  %v2178_v4 = vpop.f32.mrb[62].mxu0 }
0x227d   :  { %v2179_v31 = vpop.f32.mrb[63].mxu0  ;;  %v2190_v54 = vmul.f32 0.125, %v2181_v57 }
0x227e   :  { %2712 = vtanh.f32 %v2182_v2 }
0x227f   :  { %v2191_v23 = vadd.f32 %v2190_v54, %v3483_v15 }
0x2288   :  { %v2713_v49 = vpop.eup %2712 }
0x2289   :  { %v2184_v6 = vmul.f32 4.0, %v2713_v49 }
0x228b   :  { %v2186_v33 = vmul.f32 0.5, %v2184_v6  ;;  %v2195_v29 = vadd.f32 %v2194_v32, %v2184_v6 }
0x228d   :  { %v2187_v5 = vmul.f32 1.442695, %v2186_v33  ;;  %v2196_v43 = vsel %vm419_vm3, %v2195_v29, 0.0 }
0x228e   :  { %2197 = vadd.xlane.f32.xlu0 %v2196_v43 }
0x228f   :  { %2714 = vpow2.f32 %v2187_v5 }
0x2299   :  { %v2715_v18 = vpop.eup %2714 }
0x229a   :  { %v2189_v40 = vmul.f32 0.35355338, %v2715_v18 }
0x229c   :  { %v2192_v7 = vmul.f32 %v2189_v40, %v108_v17 }
0x229e   :  { %v2193_v58 = vadd.f32 %v2192_v7, %v2191_v23 }
0x22a0   :  { %v2201_v41 = vmul.f32 0.875, %v2193_v58  ;;  %v2217_v46 = vsel %vm419_vm3, %v2193_v58, 0.0 }
0x22a1   :  { %2226 = vst [vmem:[%s3630_s13 + $0x40] sm:$0xff] %v2217_v46  ;;  %s2788_s13 = smov [#allocation2]  }
0x22a2   :  { %v2202_v63 = vsub.f32 %v3483_v15, %v2201_v41  ;;  %v1943_v15 = vpop.xlane.xlu0 %1942  ;;  %s2260_s21 = sshll.u32 %s2788_s13, 4  ;;  %s2261_s21 = int_to_ptr.vmem [resolvable:$true] %s2260_s21 }
0x22a3   :  { %v1944_v47 = vadd.f32 -0.96625793, %v1943_v15  ;;  %s2734_s22 = scalar_lea.vmem %s2261_s21, 128  ;;  %p2739_p1 = scmp.lt.s32.totalorder %s2261_s21, %s2261_s21 }
0x22a4   :  { %v2203_v59 = vmul.f32 3.0237157, %v2202_v63  ;;  %p2735_p0 = scmp.ne.s32.totalorder %s2261_s21, %s2734_s22  ;;  %p2740_p2 = scmp.lt.s32.totalorder %s2734_s22, %s2734_s22 }
0x22a5   :  { %v1945_v55 = vmul.f32 -0.5, %v1944_v47 }
0x22a6   :  { %v2204_v45 = vmul.f32 %v2203_v59, %v2203_v59  ;;  %p2741_p3 = por %p2740_p2, %p2739_p1 }
0x22a7   :  { %v2237_v13 = vsel %vm2236_vm8, %v2235_v14, %v1945_v55 }
0x22a8   :  { %v2205_v24 = vsel %vm419_vm3, %v2204_v45, 0.0  ;;  %p2742_p4 = pnand %p2741_p3, %p2735_p0 }
0x22a9   :  { %2206 = vadd.xlane.f32.xlu1 %v2205_v24 }
0x231b   :  { %v2198_v27 = vpop.xlane.xlu0 %2197 }
0x231c   :  { %v2199_v56 = vadd.f32 -0.96625793, %v2198_v27 }
0x231e   :  { %v2200_v0 = vmul.f32 -0.5, %v2199_v56 }
0x2320   :  { %v2239_v26 = vsel %vm2238_vm9, %v2237_v13, %v2200_v0 }
0x2321   :  { %v2248_v28 = vsel %vm2247_vm10, %v2239_v26, 0.0 }
0x2322   :  { %2250 = vst [vmem:[#allocation2] sm:$0xff] %v2248_v28 }
0x2323   :  { %2745 = shalt.err (!%p2742_p4)
}
0x2324   :  { %s2746_s5 = scalar_lea.hbm %s3631_s14, 128 }
0x2325   :  { %p2747_p5 = scmp.ne.s32.totalorder %s3631_s14, %s2746_s5  ;;  %p2750_p6 = scmp.lt.u32.totalorder %s2746_s5, %s3631_s14 }
0x2327   :  { %p2752_p7 = pnand %p2750_p6, %p2747_p5 }
0x2329   :  { %2755 = shalt.err (!%p2752_p7)
}
0x232a   :  { %2263 = dma.vmem_to_hbm [thread:$0]  %s2261_s21, 128, %s3631_s14, [#allocation3]   ;;  %v1697_v30 = vpop.xlane.xlu1 %1696  ;;  %v678_v52 = vadd.f32 -3.7388465, %v677_v50  ;;  %v933_v42 = vadd.f32 -2.5881183, %v932_v61 }
0x232b   :  { %v1188_v60 = vadd.f32 -2.1169863, %v1187_v9  ;;  %v1443_v4 = vadd.f32 -1.8588321, %v1442_v16  ;;  %v1698_v17 = vadd.f32 -1.6955441, %v1697_v30 }
0x232c   :  { %v679_v31 = vmul.f32 -0.5, %v678_v52  ;;  %v934_v32 = vmul.f32 -0.5, %v933_v42  ;;  %s2789_s14 = smov [#allocation4]  }
0x232d   :  { %v1189_v6 = vmul.f32 -0.5, %v1188_v60  ;;  %v1444_v33 = vmul.f32 -0.5, %v1443_v4  ;;  %v1699_v5 = vmul.f32 -0.5, %v1698_v17  ;;  %s2270_s10 = sshll.u32 %s2789_s14, 4  ;;  %s2271_s10 = int_to_ptr.vmem [resolvable:$true] %s2270_s10 }
0x232e   :  { %v1952_v2 = vpop.xlane.xlu1 %1951  ;;  %v2240_v29 = vsel %vm2227_vm4, 0.0, %v679_v31  ;;  %s2756_s12 = scalar_lea.vmem %s2271_s10, 128  ;;  %p2761_p9 = scmp.lt.s32.totalorder %s2271_s10, %s2271_s10 }
0x232f   :  { %v1953_v49 = vadd.f32 -1.5828606, %v1952_v2  ;;  %v2241_v43 = vsel %vm2229_vm5, %v2240_v29, %v934_v32  ;;  %p2757_p8 = scmp.ne.s32.totalorder %s2271_s10, %s2756_s12  ;;  %p2762_p10 = scmp.lt.s32.totalorder %s2756_s12, %s2756_s12 }
0x2330   :  { %v2242_v18 = vsel %vm2231_vm6, %v2241_v43, %v1189_v6 }
0x2331   :  { %v1954_v57 = vmul.f32 -0.5, %v1953_v49  ;;  %v2243_v23 = vsel %vm419_vm3, %v2242_v18, %v1444_v33  ;;  %p2763_p11 = por %p2762_p10, %p2761_p9 }
0x2332   :  { %v2244_v7 = vsel %vm2234_vm7, %v2243_v23, %v1699_v5 }
0x2333   :  { %v2245_v41 = vsel %vm2236_vm8, %v2244_v7, %v1954_v57  ;;  %p2764_p12 = pnand %p2763_p11, %p2757_p8 }
0x2336   :  { %v2207_v54 = vpop.xlane.xlu1 %2206 }
0x2337   :  { %v2208_v40 = vadd.f32 -1.5003835, %v2207_v54 }
0x2339   :  { %v2209_v58 = vmul.f32 -0.5, %v2208_v40 }
0x233b   :  { %v2246_v46 = vsel %vm2238_vm9, %v2245_v41, %v2209_v58 }
0x233c   :  { %v2249_v63 = vsel %vm2247_vm10, %v2246_v46, 0.0 }
0x233d   :  { %2251 = vst [vmem:[#allocation4] sm:$0xff] %v2249_v63 }
0x233e   :  { %2767 = shalt.err (!%p2764_p12)
}
0x233f   :  { %s2768_s4 = scalar_lea.hbm %s3632_s15, 128 }
0x2340   :  { %p2769_p13 = scmp.ne.s32.totalorder %s3632_s15, %s2768_s4  ;;  %p2772_p0 = scmp.lt.u32.totalorder %s2768_s4, %s3632_s15 }
0x2342   :  { %p2774_p1 = pnand %p2772_p0, %p2769_p13 }
0x2344   :  { %2777 = shalt.err (!%p2774_p1)
}
0x2345   :  { %2273 = dma.vmem_to_hbm [thread:$0]  %s2271_s10, 128, %s3632_s15, [#allocation5]  }
0x2346   :  { %2778 = dma.done.wait [#allocation3], 128  }
0x2347   :  { %2779 = vsyncadd [#allocation3], 4294967168 }
0x2348   :  { %2780 = dma.done.wait [#allocation5], 128  }
0x2349   :  { %2781 = vsyncadd [#allocation5], 4294967168 }
0x234a   :  { %2282 = vsyncpa [#allocation3], 1 }
0x234b   :  { %2283 = vsyncpa [#allocation5], 1 }

</bundles_post_ra>
